<compile_context>
chip_gen: v6e
topology: v6e:2x2x1
jax: 0.10.0
libtpu: 0.0.40
codegen_flags: <defaults>
</compile_context>

<pallas_src>
import jax
import jax.numpy as jnp
from jax.experimental import pallas as pl
from jax.experimental.pallas import tpu as pltpu  # noqa: F401  (kept for TODOs)


# ----------------------------------------------------------------------------
# Fused Pallas kernel
# ----------------------------------------------------------------------------
def _make_fused_kernel(T, E, H, L):
    """Fused kernel for seq-len T, embed dim E, hidden H, L stacked bi-layers.

    Inputs (refs, all full-array blocks, grid=()):
      x_ref    : (T, E)            f32   embedded sentence
      wih_ref  : (L, Din, 8H)      bf16  [W_ih_f^T | W_ih_b^T], i/f/o cols *0.5
      whh_ref  : (L, 2H, 8H)       bf16  block-diag [W_hh_f^T ; W_hh_b^T]
      bias_ref : (L+1, 1, 8H)      f32   rows 0..L-1: combined biases;
                                         row L: [fc_w (2H) | fc_b | 0...]
      out_ref  : (T, 1)            f32   output
    """
    H4, H8 = 4 * H, 8 * H

    def kernel(x_ref, wih_ref, whh_ref, bias_ref, out_ref):
        act_bf = x_ref[...].astype(jnp.bfloat16)       # layer-0 input (T, E)
        act_f32 = None
        in_dim = E

        for layer in range(L):
            wih = wih_ref[layer, 0:in_dim, :]          # (in_dim, 8H) bf16
            whh = whh_ref[layer]                       # (2H, 8H)     bf16
            b = bias_ref[layer]                        # (1, 8H)      f32

            # Hoisted input projection: whole sequence, both directions,
            # one MXU matmul (bias folded in here, already pre-scaled).
            xw = jnp.dot(act_bf, wih,
                         preferred_element_type=jnp.float32) + b   # (T, 8H)

            h_f = jnp.zeros((1, H), jnp.float32)
            h_b = jnp.zeros((1, H), jnp.float32)
            c_f = jnp.zeros((1, H), jnp.float32)
            c_b = jnp.zeros((1, H), jnp.float32)
            hc_bf = jnp.zeros((1, 2 * H), jnp.bfloat16)   # [h_f | h_b]

            rows_f = [None] * T
            rows_b = [None] * T
            # Fully unrolled; forward at time t, backward at time T-1-t.
            for t in range(T):
                tb = T - 1 - t
                # ONE recurrent matmul for both directions (block-diag W_hh).
                hh = jnp.dot(hc_bf, whh,
                             preferred_element_type=jnp.float32)   # (1, 8H)
                gates = hh + jnp.concatenate(
                    [xw[t:t + 1, 0:H4], xw[tb:tb + 1, H4:H8]], axis=1)
                # Single EUP pass over the whole (1, 8H) gates row.
                tg = jnp.tanh(gates)

                # Forward direction (time t): sigmoid(z) = 0.5*(tanh(z/2)+1).
                i_g = 0.5 * (tg[:, 0:H] + 1.0)
                f_g = 0.5 * (tg[:, H:2 * H] + 1.0)
                g_g = tg[:, 2 * H:3 * H]
                o_g = 0.5 * (tg[:, 3 * H:H4] + 1.0)
                c_f = f_g * c_f + i_g * g_g
                h_f = o_g * jnp.tanh(c_f)

                # Backward direction (time T-1-t).
                i_g = 0.5 * (tg[:, H4:H4 + H] + 1.0)
                f_g = 0.5 * (tg[:, H4 + H:H4 + 2 * H] + 1.0)
                g_g = tg[:, H4 + 2 * H:H4 + 3 * H]
                o_g = 0.5 * (tg[:, H4 + 3 * H:H8] + 1.0)
                c_b = f_g * c_b + i_g * g_g
                h_b = o_g * jnp.tanh(c_b)

                rows_f[t] = h_f
                rows_b[tb] = h_b
                hc_bf = jnp.concatenate([h_f, h_b], axis=1).astype(jnp.bfloat16)

            # One lane-contiguous (T, 2H) activation per layer (SSA, no
            # scratch, no per-step masked stores).
            act_f32 = jnp.concatenate(
                [jnp.concatenate(rows_f, axis=0),
                 jnp.concatenate(rows_b, axis=0)], axis=1)          # (T, 2H)
            act_bf = act_f32.astype(jnp.bfloat16)
            in_dim = 2 * H

        # fc + sigmoid epilogue: VPU multiply + lane reduce (MXU not used).
        fc_row = bias_ref[L]                           # (1, 8H) f32
        fc_w = fc_row[:, 0:2 * H]                      # (1, 2H)
        fc_b = fc_row[:, 2 * H:2 * H + 1]              # (1, 1)
        logits = jnp.sum(act_f32 * fc_w, axis=-1, keepdims=True) + fc_b
        out_ref[...] = 0.5 * (jnp.tanh(0.5 * logits) + 1.0)   # sigmoid

    return kernel


# ----------------------------------------------------------------------------
# Wrapper
# ----------------------------------------------------------------------------
def _fused_forward(x, kparams):
    """x: (T, E) f32 embedded sentence -> (T, 1) f32 tag scores."""
    T, E = x.shape
    wih, whh, bias_fc = kparams["wih"], kparams["whh"], kparams["bias_fc"]
    L, _, H8 = whh.shape
    H = H8 // 8

    return pl.pallas_call(
        _make_fused_kernel(T, E, H, L),
        out_shape=jax.ShapeDtypeStruct((T, 1), jnp.float32),
        in_specs=[
            pl.BlockSpec(x.shape, lambda: (0, 0)),
            pl.BlockSpec(wih.shape, lambda: (0, 0, 0)),
            pl.BlockSpec(whh.shape, lambda: (0, 0, 0)),
            pl.BlockSpec(bias_fc.shape, lambda: (0, 0, 0)),
        ],
        out_specs=pl.BlockSpec((T, 1), lambda: (0, 0)),
    )(x.astype(jnp.float32), wih, whh, bias_fc)


@jax.jit
def lstm_tagger_forward(sentence, kparams):
    """sentence: (T,) int32 token ids.  Returns (T, 1) float32 in (0, 1)."""
    # Embedding lookup (tiny gather) stays as plain-JAX glue.
    x = kparams["embedding"][sentence]                 # (T, E)
    return _fused_forward(x, kparams)                  # (T, 1)


# ----------------------------------------------------------------------------
# Parameters: PyTorch-layout init + one-time kernel-ready packing
# ----------------------------------------------------------------------------
def init_params(key, *, vocab_size, embedding_dim, hidden_dim, stacked_layers):
    """Parameter init mirroring the PyTorch module's shapes (f32)."""
    params = {}
    key, k_emb = jax.random.split(key)
    params["embedding"] = jax.random.normal(
        k_emb, (vocab_size, embedding_dim), jnp.float32)

    bound = 1.0 / jnp.sqrt(jnp.float32(hidden_dim))
    layers = []
    for layer in range(stacked_layers):
        in_dim = embedding_dim if layer == 0 else 2 * hidden_dim
        dirs = []
        for _ in range(2):  # forward / backward directions
            key, k1, k2, k3, k4 = jax.random.split(key, 5)
            dirs.append(dict(
                w_ih=jax.random.uniform(k1, (4 * hidden_dim, in_dim),
                                        jnp.float32, -bound, bound),
                w_hh=jax.random.uniform(k2, (4 * hidden_dim, hidden_dim),
                                        jnp.float32, -bound, bound),
                b_ih=jax.random.uniform(k3, (4 * hidden_dim,),
                                        jnp.float32, -bound, bound),
                b_hh=jax.random.uniform(k4, (4 * hidden_dim,),
                                        jnp.float32, -bound, bound),
            ))
        layers.append(dirs)
    params["lstm"] = layers

    fc_bound = 1.0 / jnp.sqrt(jnp.float32(2 * hidden_dim))
    key, k_w, k_b = jax.random.split(key, 3)
    params["fc_w"] = jax.random.uniform(k_w, (1, 2 * hidden_dim),
                                        jnp.float32, -fc_bound, fc_bound)
    params["fc_b"] = jax.random.uniform(k_b, (1,),
                                        jnp.float32, -fc_bound, fc_bound)
    return params


def prepare_params(raw):
    """One-time packing into 3 contiguous kernel arrays:
       * wih  (L, Din, 8H) bf16 : [W_ih_f^T | W_ih_b^T], i/f/o cols * 0.5
       * whh  (L, 2H, 8H)  bf16 : block-diag(W_hh_f^T, W_hh_b^T), same scaling
       * bias_fc (L+1, 1, 8H) f32: combined per-layer biases; last row packs
         the fc weight row and fc bias."""
    L = len(raw["lstm"])
    H = raw["lstm"][0][0]["w_hh"].shape[1]
    E = raw["lstm"][0][0]["w_ih"].shape[1]
    Din = max(E, 2 * H)
    H4, H8 = 4 * H, 8 * H

    # PyTorch gate order along 4H: [i, f, g, o]; g stays tanh (scale 1.0).
    scale4 = jnp.concatenate([
        jnp.full((2 * H,), 0.5, jnp.float32),
        jnp.ones((H,), jnp.float32),
        jnp.full((H,), 0.5, jnp.float32),
    ])

    wih_all = jnp.zeros((L, Din, H8), jnp.float32)
    whh_all = jnp.zeros((L, 2 * H, H8), jnp.float32)
    bias_fc = jnp.zeros((L + 1, 1, H8), jnp.float32)

    for layer, dirs in enumerate(raw["lstm"]):
        in_dim = E if layer == 0 else 2 * H
        for d, p in enumerate(dirs):
            cols = slice(d * H4, (d + 1) * H4)
            wih_all = wih_all.at[layer, 0:in_dim, cols].set(
                p["w_ih"].T * scale4[None, :])
            whh_all = whh_all.at[layer, d * H:(d + 1) * H, cols].set(
                p["w_hh"].T * scale4[None, :])
            bias_fc = bias_fc.at[layer, 0, cols].set(
                (p["b_ih"] + p["b_hh"]) * scale4)

    bias_fc = bias_fc.at[L, 0, 0:2 * H].set(raw["fc_w"][0])
    bias_fc = bias_fc.at[L, 0, 2 * H].set(raw["fc_b"][0])

    return dict(
        embedding=raw["embedding"].astype(jnp.float32),
        wih=wih_all.astype(jnp.bfloat16),
        whh=whh_all.astype(jnp.bfloat16),
        bias_fc=bias_fc,
    )


# ----------------------------------------------------------------------------
# Pure-JAX f32 reference (mirrors the PyTorch module, inference mode)
# ----------------------------------------------------------------------------
def _reference_forward(sentence, raw):
    x = raw["embedding"][sentence]
    T = x.shape[0]
    inp = x
    for dirs in raw["lstm"]:
        outs = []
        for d, p in enumerate(dirs):
            H = p["w_hh"].shape[1]
            h = jnp.zeros((H,), jnp.float32)
            c = jnp.zeros((H,), jnp.float32)
            hs = [None] * T
            order = range(T) if d == 0 else range(T - 1, -1, -1)
            for t in order:
                z = p["w_ih"] @ inp[t] + p["b_ih"] + p["w_hh"] @ h + p["b_hh"]
                i = jax.nn.sigmoid(z[0:H])
                f = jax.nn.sigmoid(z[H:2 * H])
                g = jnp.tanh(z[2 * H:3 * H])
                o = jax.nn.sigmoid(z[3 * H:4 * H])
                c = f * c + i * g
                h = o * jnp.tanh(c)
                hs[t] = h
            outs.append(jnp.stack(hs))
        inp = jnp.concatenate(outs, axis=1)
    logits = inp @ raw["fc_w"].T + raw["fc_b"]
    return jax.nn.sigmoid(logits)


# ----------------------------------------------------------------------------
if __name__ == "__main__":
    VOCAB_SIZE = 50
    EMBEDDING_DIM = 16
    HIDDEN_DIM = 32
    STACKED_LAYERS = 2
    SEQ_LEN = 8

    key = jax.random.PRNGKey(0)
    key, k_sent = jax.random.split(key)

    raw_params = init_params(
        key,
        vocab_size=VOCAB_SIZE,
        embedding_dim=EMBEDDING_DIM,
        hidden_dim=HIDDEN_DIM,
        stacked_layers=STACKED_LAYERS,
    )
    kparams = prepare_params(raw_params)

    sentence = jax.random.randint(k_sent, (SEQ_LEN,), 0, VOCAB_SIZE,
                                  dtype=jnp.int32)

    out = jax.block_until_ready(lstm_tagger_forward(sentence, kparams))

    assert out.shape == (SEQ_LEN, 1), out.shape
    assert out.dtype == jnp.float32
    assert bool(jnp.all((out > 0.0) & (out < 1.0)))

    # Tolerance check vs. f32 reference (bf16 MXU operands => not bit-exact).
    ref = _reference_forward(sentence, raw_params)
    max_err = float(jnp.max(jnp.abs(out - ref)))
    assert max_err < 3e-2, f"kernel vs reference max |err| = {max_err}"

    print("KERNEL_OK")
</pallas_src>

<mosaic_0001>
module attributes {stable_mosaic.version = 11 : i64} {
  func.func @kernel(%arg0: memref<8x16xf32, #tpu.memory_space<vmem>>, %arg1: memref<2x64x256xbf16, #tpu.memory_space<vmem>>, %arg2: memref<2x64x256xbf16, #tpu.memory_space<vmem>>, %arg3: memref<3x1x256xf32, #tpu.memory_space<vmem>>, %arg4: memref<8x1xf32, #tpu.memory_space<vmem>>) attributes {dimension_semantics = [], scalar_prefetch = 0 : i64, scratch_operands = 0 : i64, tpu.core_type = #tpu.core_type<tc>} {
    %c0 = arith.constant 0 : index
    %c0_0 = arith.constant 0 : index
    %0 = vector.load %arg0[%c0, %c0_0] : memref<8x16xf32, #tpu.memory_space<vmem>>, vector<8x16xf32>
    %1 = arith.truncf %0 : vector<8x16xf32> to vector<8x16xbf16>
    %c0_1 = arith.constant 0 : index
    %c0_2 = arith.constant 0 : index
    %c0_3 = arith.constant 0 : index
    %2 = vector.load %arg1[%c0_1, %c0_2, %c0_3] : memref<2x64x256xbf16, #tpu.memory_space<vmem>>, vector<1x16x256xbf16>
    %3 = vector.shape_cast %2 : vector<1x16x256xbf16> to vector<16x256xbf16>
    %c0_4 = arith.constant 0 : index
    %c0_5 = arith.constant 0 : index
    %c0_6 = arith.constant 0 : index
    %4 = vector.load %arg2[%c0_4, %c0_5, %c0_6] : memref<2x64x256xbf16, #tpu.memory_space<vmem>>, vector<1x64x256xbf16>
    %5 = vector.shape_cast %4 : vector<1x64x256xbf16> to vector<64x256xbf16>
    %c0_7 = arith.constant 0 : index
    %c0_8 = arith.constant 0 : index
    %c0_9 = arith.constant 0 : index
    %6 = vector.load %arg3[%c0_7, %c0_8, %c0_9] : memref<3x1x256xf32, #tpu.memory_space<vmem>>, vector<1x1x256xf32>
    %7 = vector.shape_cast %6 : vector<1x1x256xf32> to vector<1x256xf32>
    %cst = arith.constant dense<0.000000e+00> : vector<8x256xf32>
    %8 = tpu.matmul %1, %3, %cst {dimension_numbers = #tpu.dot_dimension_numbers<[1], [0], [0], [1], [0, 0, 1, 1], [], []>} : vector<8x16xbf16>, vector<16x256xbf16>, vector<8x256xf32> -> vector<8x256xf32>
    %9 = vector.broadcast %7 : vector<1x256xf32> to vector<8x256xf32>
    %10 = arith.addf %8, %9 : vector<8x256xf32>
    %cst_10 = arith.constant 0.000000e+00 : f32
    %11 = vector.broadcast %cst_10 : f32 to vector<1x32xf32>
    %cst_11 = arith.constant 0.000000e+00 : f32
    %12 = vector.broadcast %cst_11 : f32 to vector<1x32xf32>
    %cst_12 = arith.constant 0.000000e+00 : bf16
    %13 = vector.broadcast %cst_12 : bf16 to vector<1x64xbf16>
    %cst_13 = arith.constant dense<0.000000e+00> : vector<1x256xf32>
    %14 = tpu.matmul %13, %5, %cst_13 {dimension_numbers = #tpu.dot_dimension_numbers<[1], [0], [0], [1], [0, 0, 1, 1], [], []>} : vector<1x64xbf16>, vector<64x256xbf16>, vector<1x256xf32> -> vector<1x256xf32>
    %15 = vector.extract_strided_slice %10 {offsets = [0, 0], sizes = [1, 128], strides = [1, 1]} : vector<8x256xf32> to vector<1x128xf32>
    %16 = vector.extract_strided_slice %10 {offsets = [7, 128], sizes = [1, 128], strides = [1, 1]} : vector<8x256xf32> to vector<1x128xf32>
    %17 = tpu.concatenate %15, %16 in 1 : vector<1x128xf32>, vector<1x128xf32> -> vector<1x256xf32>
    %18 = arith.addf %14, %17 : vector<1x256xf32>
    %19 = math.tanh %18 : vector<1x256xf32>
    %20 = vector.extract_strided_slice %19 {offsets = [0, 0], sizes = [1, 32], strides = [1, 1]} : vector<1x256xf32> to vector<1x32xf32>
    %cst_14 = arith.constant 1.000000e+00 : f32
    %21 = vector.broadcast %cst_14 : f32 to vector<1x32xf32>
    %22 = arith.addf %20, %21 : vector<1x32xf32>
    %cst_15 = arith.constant 5.000000e-01 : f32
    %23 = vector.broadcast %cst_15 : f32 to vector<1x32xf32>
    %24 = arith.mulf %23, %22 : vector<1x32xf32>
    %25 = vector.extract_strided_slice %19 {offsets = [0, 32], sizes = [1, 32], strides = [1, 1]} : vector<1x256xf32> to vector<1x32xf32>
    %cst_16 = arith.constant 1.000000e+00 : f32
    %26 = vector.broadcast %cst_16 : f32 to vector<1x32xf32>
    %27 = arith.addf %25, %26 : vector<1x32xf32>
    %cst_17 = arith.constant 5.000000e-01 : f32
    %28 = vector.broadcast %cst_17 : f32 to vector<1x32xf32>
    %29 = arith.mulf %28, %27 : vector<1x32xf32>
    %30 = vector.extract_strided_slice %19 {offsets = [0, 64], sizes = [1, 32], strides = [1, 1]} : vector<1x256xf32> to vector<1x32xf32>
    %31 = vector.extract_strided_slice %19 {offsets = [0, 96], sizes = [1, 32], strides = [1, 1]} : vector<1x256xf32> to vector<1x32xf32>
    %cst_18 = arith.constant 1.000000e+00 : f32
    %32 = vector.broadcast %cst_18 : f32 to vector<1x32xf32>
    %33 = arith.addf %31, %32 : vector<1x32xf32>
    %cst_19 = arith.constant 5.000000e-01 : f32
    %34 = vector.broadcast %cst_19 : f32 to vector<1x32xf32>
    %35 = arith.mulf %34, %33 : vector<1x32xf32>
    %36 = arith.mulf %29, %11 : vector<1x32xf32>
    %37 = arith.mulf %24, %30 : vector<1x32xf32>
    %38 = arith.addf %36, %37 : vector<1x32xf32>
    %39 = math.tanh %38 : vector<1x32xf32>
    %40 = arith.mulf %35, %39 : vector<1x32xf32>
    %41 = vector.extract_strided_slice %19 {offsets = [0, 128], sizes = [1, 32], strides = [1, 1]} : vector<1x256xf32> to vector<1x32xf32>
    %cst_20 = arith.constant 1.000000e+00 : f32
    %42 = vector.broadcast %cst_20 : f32 to vector<1x32xf32>
    %43 = arith.addf %41, %42 : vector<1x32xf32>
    %cst_21 = arith.constant 5.000000e-01 : f32
    %44 = vector.broadcast %cst_21 : f32 to vector<1x32xf32>
    %45 = arith.mulf %44, %43 : vector<1x32xf32>
    %46 = vector.extract_strided_slice %19 {offsets = [0, 160], sizes = [1, 32], strides = [1, 1]} : vector<1x256xf32> to vector<1x32xf32>
    %cst_22 = arith.constant 1.000000e+00 : f32
    %47 = vector.broadcast %cst_22 : f32 to vector<1x32xf32>
    %48 = arith.addf %46, %47 : vector<1x32xf32>
    %cst_23 = arith.constant 5.000000e-01 : f32
    %49 = vector.broadcast %cst_23 : f32 to vector<1x32xf32>
    %50 = arith.mulf %49, %48 : vector<1x32xf32>
    %51 = vector.extract_strided_slice %19 {offsets = [0, 192], sizes = [1, 32], strides = [1, 1]} : vector<1x256xf32> to vector<1x32xf32>
    %52 = vector.extract_strided_slice %19 {offsets = [0, 224], sizes = [1, 32], strides = [1, 1]} : vector<1x256xf32> to vector<1x32xf32>
    %cst_24 = arith.constant 1.000000e+00 : f32
    %53 = vector.broadcast %cst_24 : f32 to vector<1x32xf32>
    %54 = arith.addf %52, %53 : vector<1x32xf32>
    %cst_25 = arith.constant 5.000000e-01 : f32
    %55 = vector.broadcast %cst_25 : f32 to vector<1x32xf32>
    %56 = arith.mulf %55, %54 : vector<1x32xf32>
    %57 = arith.mulf %50, %12 : vector<1x32xf32>
    %58 = arith.mulf %45, %51 : vector<1x32xf32>
    %59 = arith.addf %57, %58 : vector<1x32xf32>
    %60 = math.tanh %59 : vector<1x32xf32>
    %61 = arith.mulf %56, %60 : vector<1x32xf32>
    %62 = tpu.concatenate %40, %61 in 1 : vector<1x32xf32>, vector<1x32xf32> -> vector<1x64xf32>
    %63 = arith.truncf %62 : vector<1x64xf32> to vector<1x64xbf16>
    %cst_26 = arith.constant dense<0.000000e+00> : vector<1x256xf32>
    %64 = tpu.matmul %63, %5, %cst_26 {dimension_numbers = #tpu.dot_dimension_numbers<[1], [0], [0], [1], [0, 0, 1, 1], [], []>} : vector<1x64xbf16>, vector<64x256xbf16>, vector<1x256xf32> -> vector<1x256xf32>
    %65 = vector.extract_strided_slice %10 {offsets = [1, 0], sizes = [1, 128], strides = [1, 1]} : vector<8x256xf32> to vector<1x128xf32>
    %66 = vector.extract_strided_slice %10 {offsets = [6, 128], sizes = [1, 128], strides = [1, 1]} : vector<8x256xf32> to vector<1x128xf32>
    %67 = tpu.concatenate %65, %66 in 1 : vector<1x128xf32>, vector<1x128xf32> -> vector<1x256xf32>
    %68 = arith.addf %64, %67 : vector<1x256xf32>
    %69 = math.tanh %68 : vector<1x256xf32>
    %70 = vector.extract_strided_slice %69 {offsets = [0, 0], sizes = [1, 32], strides = [1, 1]} : vector<1x256xf32> to vector<1x32xf32>
    %cst_27 = arith.constant 1.000000e+00 : f32
    %71 = vector.broadcast %cst_27 : f32 to vector<1x32xf32>
    %72 = arith.addf %70, %71 : vector<1x32xf32>
    %cst_28 = arith.constant 5.000000e-01 : f32
    %73 = vector.broadcast %cst_28 : f32 to vector<1x32xf32>
    %74 = arith.mulf %73, %72 : vector<1x32xf32>
    %75 = vector.extract_strided_slice %69 {offsets = [0, 32], sizes = [1, 32], strides = [1, 1]} : vector<1x256xf32> to vector<1x32xf32>
    %cst_29 = arith.constant 1.000000e+00 : f32
    %76 = vector.broadcast %cst_29 : f32 to vector<1x32xf32>
    %77 = arith.addf %75, %76 : vector<1x32xf32>
    %cst_30 = arith.constant 5.000000e-01 : f32
    %78 = vector.broadcast %cst_30 : f32 to vector<1x32xf32>
    %79 = arith.mulf %78, %77 : vector<1x32xf32>
    %80 = vector.extract_strided_slice %69 {offsets = [0, 64], sizes = [1, 32], strides = [1, 1]} : vector<1x256xf32> to vector<1x32xf32>
    %81 = vector.extract_strided_slice %69 {offsets = [0, 96], sizes = [1, 32], strides = [1, 1]} : vector<1x256xf32> to vector<1x32xf32>
    %cst_31 = arith.constant 1.000000e+00 : f32
    %82 = vector.broadcast %cst_31 : f32 to vector<1x32xf32>
    %83 = arith.addf %81, %82 : vector<1x32xf32>
    %cst_32 = arith.constant 5.000000e-01 : f32
    %84 = vector.broadcast %cst_32 : f32 to vector<1x32xf32>
    %85 = arith.mulf %84, %83 : vector<1x32xf32>
    %86 = arith.mulf %79, %38 : vector<1x32xf32>
    %87 = arith.mulf %74, %80 : vector<1x32xf32>
    %88 = arith.addf %86, %87 : vector<1x32xf32>
    %89 = math.tanh %88 : vector<1x32xf32>
    %90 = arith.mulf %85, %89 : vector<1x32xf32>
    %91 = vector.extract_strided_slice %69 {offsets = [0, 128], sizes = [1, 32], strides = [1, 1]} : vector<1x256xf32> to vector<1x32xf32>
    %cst_33 = arith.constant 1.000000e+00 : f32
    %92 = vector.broadcast %cst_33 : f32 to vector<1x32xf32>
    %93 = arith.addf %91, %92 : vector<1x32xf32>
    %cst_34 = arith.constant 5.000000e-01 : f32
    %94 = vector.broadcast %cst_34 : f32 to vector<1x32xf32>
    %95 = arith.mulf %94, %93 : vector<1x32xf32>
    %96 = vector.extract_strided_slice %69 {offsets = [0, 160], sizes = [1, 32], strides = [1, 1]} : vector<1x256xf32> to vector<1x32xf32>
    %cst_35 = arith.constant 1.000000e+00 : f32
    %97 = vector.broadcast %cst_35 : f32 to vector<1x32xf32>
    %98 = arith.addf %96, %97 : vector<1x32xf32>
    %cst_36 = arith.constant 5.000000e-01 : f32
    %99 = vector.broadcast %cst_36 : f32 to vector<1x32xf32>
    %100 = arith.mulf %99, %98 : vector<1x32xf32>
    %101 = vector.extract_strided_slice %69 {offsets = [0, 192], sizes = [1, 32], strides = [1, 1]} : vector<1x256xf32> to vector<1x32xf32>
    %102 = vector.extract_strided_slice %69 {offsets = [0, 224], sizes = [1, 32], strides = [1, 1]} : vector<1x256xf32> to vector<1x32xf32>
    %cst_37 = arith.constant 1.000000e+00 : f32
    %103 = vector.broadcast %cst_37 : f32 to vector<1x32xf32>
    %104 = arith.addf %102, %103 : vector<1x32xf32>
    %cst_38 = arith.constant 5.000000e-01 : f32
    %105 = vector.broadcast %cst_38 : f32 to vector<1x32xf32>
    %106 = arith.mulf %105, %104 : vector<1x32xf32>
    %107 = arith.mulf %100, %59 : vector<1x32xf32>
    %108 = arith.mulf %95, %101 : vector<1x32xf32>
    %109 = arith.addf %107, %108 : vector<1x32xf32>
    %110 = math.tanh %109 : vector<1x32xf32>
    %111 = arith.mulf %106, %110 : vector<1x32xf32>
    %112 = tpu.concatenate %90, %111 in 1 : vector<1x32xf32>, vector<1x32xf32> -> vector<1x64xf32>
    %113 = arith.truncf %112 : vector<1x64xf32> to vector<1x64xbf16>
    %cst_39 = arith.constant dense<0.000000e+00> : vector<1x256xf32>
    %114 = tpu.matmul %113, %5, %cst_39 {dimension_numbers = #tpu.dot_dimension_numbers<[1], [0], [0], [1], [0, 0, 1, 1], [], []>} : vector<1x64xbf16>, vector<64x256xbf16>, vector<1x256xf32> -> vector<1x256xf32>
    %115 = vector.extract_strided_slice %10 {offsets = [2, 0], sizes = [1, 128], strides = [1, 1]} : vector<8x256xf32> to vector<1x128xf32>
    %116 = vector.extract_strided_slice %10 {offsets = [5, 128], sizes = [1, 128], strides = [1, 1]} : vector<8x256xf32> to vector<1x128xf32>
    %117 = tpu.concatenate %115, %116 in 1 : vector<1x128xf32>, vector<1x128xf32> -> vector<1x256xf32>
    %118 = arith.addf %114, %117 : vector<1x256xf32>
    %119 = math.tanh %118 : vector<1x256xf32>
    %120 = vector.extract_strided_slice %119 {offsets = [0, 0], sizes = [1, 32], strides = [1, 1]} : vector<1x256xf32> to vector<1x32xf32>
    %cst_40 = arith.constant 1.000000e+00 : f32
    %121 = vector.broadcast %cst_40 : f32 to vector<1x32xf32>
    %122 = arith.addf %120, %121 : vector<1x32xf32>
    %cst_41 = arith.constant 5.000000e-01 : f32
    %123 = vector.broadcast %cst_41 : f32 to vector<1x32xf32>
    %124 = arith.mulf %123, %122 : vector<1x32xf32>
    %125 = vector.extract_strided_slice %119 {offsets = [0, 32], sizes = [1, 32], strides = [1, 1]} : vector<1x256xf32> to vector<1x32xf32>
    %cst_42 = arith.constant 1.000000e+00 : f32
    %126 = vector.broadcast %cst_42 : f32 to vector<1x32xf32>
    %127 = arith.addf %125, %126 : vector<1x32xf32>
    %cst_43 = arith.constant 5.000000e-01 : f32
    %128 = vector.broadcast %cst_43 : f32 to vector<1x32xf32>
    %129 = arith.mulf %128, %127 : vector<1x32xf32>
    %130 = vector.extract_strided_slice %119 {offsets = [0, 64], sizes = [1, 32], strides = [1, 1]} : vector<1x256xf32> to vector<1x32xf32>
    %131 = vector.extract_strided_slice %119 {offsets = [0, 96], sizes = [1, 32], strides = [1, 1]} : vector<1x256xf32> to vector<1x32xf32>
    %cst_44 = arith.constant 1.000000e+00 : f32
    %132 = vector.broadcast %cst_44 : f32 to vector<1x32xf32>
    %133 = arith.addf %131, %132 : vector<1x32xf32>
    %cst_45 = arith.constant 5.000000e-01 : f32
    %134 = vector.broadcast %cst_45 : f32 to vector<1x32xf32>
    %135 = arith.mulf %134, %133 : vector<1x32xf32>
    %136 = arith.mulf %129, %88 : vector<1x32xf32>
    %137 = arith.mulf %124, %130 : vector<1x32xf32>
    %138 = arith.addf %136, %137 : vector<1x32xf32>
    %139 = math.tanh %138 : vector<1x32xf32>
    %140 = arith.mulf %135, %139 : vector<1x32xf32>
    %141 = vector.extract_strided_slice %119 {offsets = [0, 128], sizes = [1, 32], strides = [1, 1]} : vector<1x256xf32> to vector<1x32xf32>
    %cst_46 = arith.constant 1.000000e+00 : f32
    %142 = vector.broadcast %cst_46 : f32 to vector<1x32xf32>
    %143 = arith.addf %141, %142 : vector<1x32xf32>
    %cst_47 = arith.constant 5.000000e-01 : f32
    %144 = vector.broadcast %cst_47 : f32 to vector<1x32xf32>
    %145 = arith.mulf %144, %143 : vector<1x32xf32>
    %146 = vector.extract_strided_slice %119 {offsets = [0, 160], sizes = [1, 32], strides = [1, 1]} : vector<1x256xf32> to vector<1x32xf32>
    %cst_48 = arith.constant 1.000000e+00 : f32
    %147 = vector.broadcast %cst_48 : f32 to vector<1x32xf32>
    %148 = arith.addf %146, %147 : vector<1x32xf32>
    %cst_49 = arith.constant 5.000000e-01 : f32
    %149 = vector.broadcast %cst_49 : f32 to vector<1x32xf32>
    %150 = arith.mulf %149, %148 : vector<1x32xf32>
    %151 = vector.extract_strided_slice %119 {offsets = [0, 192], sizes = [1, 32], strides = [1, 1]} : vector<1x256xf32> to vector<1x32xf32>
    %152 = vector.extract_strided_slice %119 {offsets = [0, 224], sizes = [1, 32], strides = [1, 1]} : vector<1x256xf32> to vector<1x32xf32>
    %cst_50 = arith.constant 1.000000e+00 : f32
    %153 = vector.broadcast %cst_50 : f32 to vector<1x32xf32>
    %154 = arith.addf %152, %153 : vector<1x32xf32>
    %cst_51 = arith.constant 5.000000e-01 : f32
    %155 = vector.broadcast %cst_51 : f32 to vector<1x32xf32>
    %156 = arith.mulf %155, %154 : vector<1x32xf32>
    %157 = arith.mulf %150, %109 : vector<1x32xf32>
    %158 = arith.mulf %145, %151 : vector<1x32xf32>
    %159 = arith.addf %157, %158 : vector<1x32xf32>
    %160 = math.tanh %159 : vector<1x32xf32>
    %161 = arith.mulf %156, %160 : vector<1x32xf32>
    %162 = tpu.concatenate %140, %161 in 1 : vector<1x32xf32>, vector<1x32xf32> -> vector<1x64xf32>
    %163 = arith.truncf %162 : vector<1x64xf32> to vector<1x64xbf16>
    %cst_52 = arith.constant dense<0.000000e+00> : vector<1x256xf32>
    %164 = tpu.matmul %163, %5, %cst_52 {dimension_numbers = #tpu.dot_dimension_numbers<[1], [0], [0], [1], [0, 0, 1, 1], [], []>} : vector<1x64xbf16>, vector<64x256xbf16>, vector<1x256xf32> -> vector<1x256xf32>
    %165 = vector.extract_strided_slice %10 {offsets = [3, 0], sizes = [1, 128], strides = [1, 1]} : vector<8x256xf32> to vector<1x128xf32>
    %166 = vector.extract_strided_slice %10 {offsets = [4, 128], sizes = [1, 128], strides = [1, 1]} : vector<8x256xf32> to vector<1x128xf32>
    %167 = tpu.concatenate %165, %166 in 1 : vector<1x128xf32>, vector<1x128xf32> -> vector<1x256xf32>
    %168 = arith.addf %164, %167 : vector<1x256xf32>
    %169 = math.tanh %168 : vector<1x256xf32>
    %170 = vector.extract_strided_slice %169 {offsets = [0, 0], sizes = [1, 32], strides = [1, 1]} : vector<1x256xf32> to vector<1x32xf32>
    %cst_53 = arith.constant 1.000000e+00 : f32
    %171 = vector.broadcast %cst_53 : f32 to vector<1x32xf32>
    %172 = arith.addf %170, %171 : vector<1x32xf32>
    %cst_54 = arith.constant 5.000000e-01 : f32
    %173 = vector.broadcast %cst_54 : f32 to vector<1x32xf32>
    %174 = arith.mulf %173, %172 : vector<1x32xf32>
    %175 = vector.extract_strided_slice %169 {offsets = [0, 32], sizes = [1, 32], strides = [1, 1]} : vector<1x256xf32> to vector<1x32xf32>
    %cst_55 = arith.constant 1.000000e+00 : f32
    %176 = vector.broadcast %cst_55 : f32 to vector<1x32xf32>
    %177 = arith.addf %175, %176 : vector<1x32xf32>
    %cst_56 = arith.constant 5.000000e-01 : f32
    %178 = vector.broadcast %cst_56 : f32 to vector<1x32xf32>
    %179 = arith.mulf %178, %177 : vector<1x32xf32>
    %180 = vector.extract_strided_slice %169 {offsets = [0, 64], sizes = [1, 32], strides = [1, 1]} : vector<1x256xf32> to vector<1x32xf32>
    %181 = vector.extract_strided_slice %169 {offsets = [0, 96], sizes = [1, 32], strides = [1, 1]} : vector<1x256xf32> to vector<1x32xf32>
    %cst_57 = arith.constant 1.000000e+00 : f32
    %182 = vector.broadcast %cst_57 : f32 to vector<1x32xf32>
    %183 = arith.addf %181, %182 : vector<1x32xf32>
    %cst_58 = arith.constant 5.000000e-01 : f32
    %184 = vector.broadcast %cst_58 : f32 to vector<1x32xf32>
    %185 = arith.mulf %184, %183 : vector<1x32xf32>
    %186 = arith.mulf %179, %138 : vector<1x32xf32>
    %187 = arith.mulf %174, %180 : vector<1x32xf32>
    %188 = arith.addf %186, %187 : vector<1x32xf32>
    %189 = math.tanh %188 : vector<1x32xf32>
    %190 = arith.mulf %185, %189 : vector<1x32xf32>
    %191 = vector.extract_strided_slice %169 {offsets = [0, 128], sizes = [1, 32], strides = [1, 1]} : vector<1x256xf32> to vector<1x32xf32>
    %cst_59 = arith.constant 1.000000e+00 : f32
    %192 = vector.broadcast %cst_59 : f32 to vector<1x32xf32>
    %193 = arith.addf %191, %192 : vector<1x32xf32>
    %cst_60 = arith.constant 5.000000e-01 : f32
    %194 = vector.broadcast %cst_60 : f32 to vector<1x32xf32>
    %195 = arith.mulf %194, %193 : vector<1x32xf32>
    %196 = vector.extract_strided_slice %169 {offsets = [0, 160], sizes = [1, 32], strides = [1, 1]} : vector<1x256xf32> to vector<1x32xf32>
    %cst_61 = arith.constant 1.000000e+00 : f32
    %197 = vector.broadcast %cst_61 : f32 to vector<1x32xf32>
    %198 = arith.addf %196, %197 : vector<1x32xf32>
    %cst_62 = arith.constant 5.000000e-01 : f32
    %199 = vector.broadcast %cst_62 : f32 to vector<1x32xf32>
    %200 = arith.mulf %199, %198 : vector<1x32xf32>
    %201 = vector.extract_strided_slice %169 {offsets = [0, 192], sizes = [1, 32], strides = [1, 1]} : vector<1x256xf32> to vector<1x32xf32>
    %202 = vector.extract_strided_slice %169 {offsets = [0, 224], sizes = [1, 32], strides = [1, 1]} : vector<1x256xf32> to vector<1x32xf32>
    %cst_63 = arith.constant 1.000000e+00 : f32
    %203 = vector.broadcast %cst_63 : f32 to vector<1x32xf32>
    %204 = arith.addf %202, %203 : vector<1x32xf32>
    %cst_64 = arith.constant 5.000000e-01 : f32
    %205 = vector.broadcast %cst_64 : f32 to vector<1x32xf32>
    %206 = arith.mulf %205, %204 : vector<1x32xf32>
    %207 = arith.mulf %200, %159 : vector<1x32xf32>
    %208 = arith.mulf %195, %201 : vector<1x32xf32>
    %209 = arith.addf %207, %208 : vector<1x32xf32>
    %210 = math.tanh %209 : vector<1x32xf32>
    %211 = arith.mulf %206, %210 : vector<1x32xf32>
    %212 = tpu.concatenate %190, %211 in 1 : vector<1x32xf32>, vector<1x32xf32> -> vector<1x64xf32>
    %213 = arith.truncf %212 : vector<1x64xf32> to vector<1x64xbf16>
    %cst_65 = arith.constant dense<0.000000e+00> : vector<1x256xf32>
    %214 = tpu.matmul %213, %5, %cst_65 {dimension_numbers = #tpu.dot_dimension_numbers<[1], [0], [0], [1], [0, 0, 1, 1], [], []>} : vector<1x64xbf16>, vector<64x256xbf16>, vector<1x256xf32> -> vector<1x256xf32>
    %215 = vector.extract_strided_slice %10 {offsets = [4, 0], sizes = [1, 128], strides = [1, 1]} : vector<8x256xf32> to vector<1x128xf32>
    %216 = vector.extract_strided_slice %10 {offsets = [3, 128], sizes = [1, 128], strides = [1, 1]} : vector<8x256xf32> to vector<1x128xf32>
    %217 = tpu.concatenate %215, %216 in 1 : vector<1x128xf32>, vector<1x128xf32> -> vector<1x256xf32>
    %218 = arith.addf %214, %217 : vector<1x256xf32>
    %219 = math.tanh %218 : vector<1x256xf32>
    %220 = vector.extract_strided_slice %219 {offsets = [0, 0], sizes = [1, 32], strides = [1, 1]} : vector<1x256xf32> to vector<1x32xf32>
    %cst_66 = arith.constant 1.000000e+00 : f32
    %221 = vector.broadcast %cst_66 : f32 to vector<1x32xf32>
    %222 = arith.addf %220, %221 : vector<1x32xf32>
    %cst_67 = arith.constant 5.000000e-01 : f32
    %223 = vector.broadcast %cst_67 : f32 to vector<1x32xf32>
    %224 = arith.mulf %223, %222 : vector<1x32xf32>
    %225 = vector.extract_strided_slice %219 {offsets = [0, 32], sizes = [1, 32], strides = [1, 1]} : vector<1x256xf32> to vector<1x32xf32>
    %cst_68 = arith.constant 1.000000e+00 : f32
    %226 = vector.broadcast %cst_68 : f32 to vector<1x32xf32>
    %227 = arith.addf %225, %226 : vector<1x32xf32>
    %cst_69 = arith.constant 5.000000e-01 : f32
    %228 = vector.broadcast %cst_69 : f32 to vector<1x32xf32>
    %229 = arith.mulf %228, %227 : vector<1x32xf32>
    %230 = vector.extract_strided_slice %219 {offsets = [0, 64], sizes = [1, 32], strides = [1, 1]} : vector<1x256xf32> to vector<1x32xf32>
    %231 = vector.extract_strided_slice %219 {offsets = [0, 96], sizes = [1, 32], strides = [1, 1]} : vector<1x256xf32> to vector<1x32xf32>
    %cst_70 = arith.constant 1.000000e+00 : f32
    %232 = vector.broadcast %cst_70 : f32 to vector<1x32xf32>
    %233 = arith.addf %231, %232 : vector<1x32xf32>
    %cst_71 = arith.constant 5.000000e-01 : f32
    %234 = vector.broadcast %cst_71 : f32 to vector<1x32xf32>
    %235 = arith.mulf %234, %233 : vector<1x32xf32>
    %236 = arith.mulf %229, %188 : vector<1x32xf32>
    %237 = arith.mulf %224, %230 : vector<1x32xf32>
    %238 = arith.addf %236, %237 : vector<1x32xf32>
    %239 = math.tanh %238 : vector<1x32xf32>
    %240 = arith.mulf %235, %239 : vector<1x32xf32>
    %241 = vector.extract_strided_slice %219 {offsets = [0, 128], sizes = [1, 32], strides = [1, 1]} : vector<1x256xf32> to vector<1x32xf32>
    %cst_72 = arith.constant 1.000000e+00 : f32
    %242 = vector.broadcast %cst_72 : f32 to vector<1x32xf32>
    %243 = arith.addf %241, %242 : vector<1x32xf32>
    %cst_73 = arith.constant 5.000000e-01 : f32
    %244 = vector.broadcast %cst_73 : f32 to vector<1x32xf32>
    %245 = arith.mulf %244, %243 : vector<1x32xf32>
    %246 = vector.extract_strided_slice %219 {offsets = [0, 160], sizes = [1, 32], strides = [1, 1]} : vector<1x256xf32> to vector<1x32xf32>
    %cst_74 = arith.constant 1.000000e+00 : f32
    %247 = vector.broadcast %cst_74 : f32 to vector<1x32xf32>
    %248 = arith.addf %246, %247 : vector<1x32xf32>
    %cst_75 = arith.constant 5.000000e-01 : f32
    %249 = vector.broadcast %cst_75 : f32 to vector<1x32xf32>
    %250 = arith.mulf %249, %248 : vector<1x32xf32>
    %251 = vector.extract_strided_slice %219 {offsets = [0, 192], sizes = [1, 32], strides = [1, 1]} : vector<1x256xf32> to vector<1x32xf32>
    %252 = vector.extract_strided_slice %219 {offsets = [0, 224], sizes = [1, 32], strides = [1, 1]} : vector<1x256xf32> to vector<1x32xf32>
    %cst_76 = arith.constant 1.000000e+00 : f32
    %253 = vector.broadcast %cst_76 : f32 to vector<1x32xf32>
    %254 = arith.addf %252, %253 : vector<1x32xf32>
    %cst_77 = arith.constant 5.000000e-01 : f32
    %255 = vector.broadcast %cst_77 : f32 to vector<1x32xf32>
    %256 = arith.mulf %255, %254 : vector<1x32xf32>
    %257 = arith.mulf %250, %209 : vector<1x32xf32>
    %258 = arith.mulf %245, %251 : vector<1x32xf32>
    %259 = arith.addf %257, %258 : vector<1x32xf32>
    %260 = math.tanh %259 : vector<1x32xf32>
    %261 = arith.mulf %256, %260 : vector<1x32xf32>
    %262 = tpu.concatenate %240, %261 in 1 : vector<1x32xf32>, vector<1x32xf32> -> vector<1x64xf32>
    %263 = arith.truncf %262 : vector<1x64xf32> to vector<1x64xbf16>
    %cst_78 = arith.constant dense<0.000000e+00> : vector<1x256xf32>
    %264 = tpu.matmul %263, %5, %cst_78 {dimension_numbers = #tpu.dot_dimension_numbers<[1], [0], [0], [1], [0, 0, 1, 1], [], []>} : vector<1x64xbf16>, vector<64x256xbf16>, vector<1x256xf32> -> vector<1x256xf32>
    %265 = vector.extract_strided_slice %10 {offsets = [5, 0], sizes = [1, 128], strides = [1, 1]} : vector<8x256xf32> to vector<1x128xf32>
    %266 = vector.extract_strided_slice %10 {offsets = [2, 128], sizes = [1, 128], strides = [1, 1]} : vector<8x256xf32> to vector<1x128xf32>
    %267 = tpu.concatenate %265, %266 in 1 : vector<1x128xf32>, vector<1x128xf32> -> vector<1x256xf32>
    %268 = arith.addf %264, %267 : vector<1x256xf32>
    %269 = math.tanh %268 : vector<1x256xf32>
    %270 = vector.extract_strided_slice %269 {offsets = [0, 0], sizes = [1, 32], strides = [1, 1]} : vector<1x256xf32> to vector<1x32xf32>
    %cst_79 = arith.constant 1.000000e+00 : f32
    %271 = vector.broadcast %cst_79 : f32 to vector<1x32xf32>
    %272 = arith.addf %270, %271 : vector<1x32xf32>
    %cst_80 = arith.constant 5.000000e-01 : f32
    %273 = vector.broadcast %cst_80 : f32 to vector<1x32xf32>
    %274 = arith.mulf %273, %272 : vector<1x32xf32>
    %275 = vector.extract_strided_slice %269 {offsets = [0, 32], sizes = [1, 32], strides = [1, 1]} : vector<1x256xf32> to vector<1x32xf32>
    %cst_81 = arith.constant 1.000000e+00 : f32
    %276 = vector.broadcast %cst_81 : f32 to vector<1x32xf32>
    %277 = arith.addf %275, %276 : vector<1x32xf32>
    %cst_82 = arith.constant 5.000000e-01 : f32
    %278 = vector.broadcast %cst_82 : f32 to vector<1x32xf32>
    %279 = arith.mulf %278, %277 : vector<1x32xf32>
    %280 = vector.extract_strided_slice %269 {offsets = [0, 64], sizes = [1, 32], strides = [1, 1]} : vector<1x256xf32> to vector<1x32xf32>
    %281 = vector.extract_strided_slice %269 {offsets = [0, 96], sizes = [1, 32], strides = [1, 1]} : vector<1x256xf32> to vector<1x32xf32>
    %cst_83 = arith.constant 1.000000e+00 : f32
    %282 = vector.broadcast %cst_83 : f32 to vector<1x32xf32>
    %283 = arith.addf %281, %282 : vector<1x32xf32>
    %cst_84 = arith.constant 5.000000e-01 : f32
    %284 = vector.broadcast %cst_84 : f32 to vector<1x32xf32>
    %285 = arith.mulf %284, %283 : vector<1x32xf32>
    %286 = arith.mulf %279, %238 : vector<1x32xf32>
    %287 = arith.mulf %274, %280 : vector<1x32xf32>
    %288 = arith.addf %286, %287 : vector<1x32xf32>
    %289 = math.tanh %288 : vector<1x32xf32>
    %290 = arith.mulf %285, %289 : vector<1x32xf32>
    %291 = vector.extract_strided_slice %269 {offsets = [0, 128], sizes = [1, 32], strides = [1, 1]} : vector<1x256xf32> to vector<1x32xf32>
    %cst_85 = arith.constant 1.000000e+00 : f32
    %292 = vector.broadcast %cst_85 : f32 to vector<1x32xf32>
    %293 = arith.addf %291, %292 : vector<1x32xf32>
    %cst_86 = arith.constant 5.000000e-01 : f32
    %294 = vector.broadcast %cst_86 : f32 to vector<1x32xf32>
    %295 = arith.mulf %294, %293 : vector<1x32xf32>
    %296 = vector.extract_strided_slice %269 {offsets = [0, 160], sizes = [1, 32], strides = [1, 1]} : vector<1x256xf32> to vector<1x32xf32>
    %cst_87 = arith.constant 1.000000e+00 : f32
    %297 = vector.broadcast %cst_87 : f32 to vector<1x32xf32>
    %298 = arith.addf %296, %297 : vector<1x32xf32>
    %cst_88 = arith.constant 5.000000e-01 : f32
    %299 = vector.broadcast %cst_88 : f32 to vector<1x32xf32>
    %300 = arith.mulf %299, %298 : vector<1x32xf32>
    %301 = vector.extract_strided_slice %269 {offsets = [0, 192], sizes = [1, 32], strides = [1, 1]} : vector<1x256xf32> to vector<1x32xf32>
    %302 = vector.extract_strided_slice %269 {offsets = [0, 224], sizes = [1, 32], strides = [1, 1]} : vector<1x256xf32> to vector<1x32xf32>
    %cst_89 = arith.constant 1.000000e+00 : f32
    %303 = vector.broadcast %cst_89 : f32 to vector<1x32xf32>
    %304 = arith.addf %302, %303 : vector<1x32xf32>
    %cst_90 = arith.constant 5.000000e-01 : f32
    %305 = vector.broadcast %cst_90 : f32 to vector<1x32xf32>
    %306 = arith.mulf %305, %304 : vector<1x32xf32>
    %307 = arith.mulf %300, %259 : vector<1x32xf32>
    %308 = arith.mulf %295, %301 : vector<1x32xf32>
    %309 = arith.addf %307, %308 : vector<1x32xf32>
    %310 = math.tanh %309 : vector<1x32xf32>
    %311 = arith.mulf %306, %310 : vector<1x32xf32>
    %312 = tpu.concatenate %290, %311 in 1 : vector<1x32xf32>, vector<1x32xf32> -> vector<1x64xf32>
    %313 = arith.truncf %312 : vector<1x64xf32> to vector<1x64xbf16>
    %cst_91 = arith.constant dense<0.000000e+00> : vector<1x256xf32>
    %314 = tpu.matmul %313, %5, %cst_91 {dimension_numbers = #tpu.dot_dimension_numbers<[1], [0], [0], [1], [0, 0, 1, 1], [], []>} : vector<1x64xbf16>, vector<64x256xbf16>, vector<1x256xf32> -> vector<1x256xf32>
    %315 = vector.extract_strided_slice %10 {offsets = [6, 0], sizes = [1, 128], strides = [1, 1]} : vector<8x256xf32> to vector<1x128xf32>
    %316 = vector.extract_strided_slice %10 {offsets = [1, 128], sizes = [1, 128], strides = [1, 1]} : vector<8x256xf32> to vector<1x128xf32>
    %317 = tpu.concatenate %315, %316 in 1 : vector<1x128xf32>, vector<1x128xf32> -> vector<1x256xf32>
    %318 = arith.addf %314, %317 : vector<1x256xf32>
    %319 = math.tanh %318 : vector<1x256xf32>
    %320 = vector.extract_strided_slice %319 {offsets = [0, 0], sizes = [1, 32], strides = [1, 1]} : vector<1x256xf32> to vector<1x32xf32>
    %cst_92 = arith.constant 1.000000e+00 : f32
    %321 = vector.broadcast %cst_92 : f32 to vector<1x32xf32>
    %322 = arith.addf %320, %321 : vector<1x32xf32>
    %cst_93 = arith.constant 5.000000e-01 : f32
    %323 = vector.broadcast %cst_93 : f32 to vector<1x32xf32>
    %324 = arith.mulf %323, %322 : vector<1x32xf32>
    %325 = vector.extract_strided_slice %319 {offsets = [0, 32], sizes = [1, 32], strides = [1, 1]} : vector<1x256xf32> to vector<1x32xf32>
    %cst_94 = arith.constant 1.000000e+00 : f32
    %326 = vector.broadcast %cst_94 : f32 to vector<1x32xf32>
    %327 = arith.addf %325, %326 : vector<1x32xf32>
    %cst_95 = arith.constant 5.000000e-01 : f32
    %328 = vector.broadcast %cst_95 : f32 to vector<1x32xf32>
    %329 = arith.mulf %328, %327 : vector<1x32xf32>
    %330 = vector.extract_strided_slice %319 {offsets = [0, 64], sizes = [1, 32], strides = [1, 1]} : vector<1x256xf32> to vector<1x32xf32>
    %331 = vector.extract_strided_slice %319 {offsets = [0, 96], sizes = [1, 32], strides = [1, 1]} : vector<1x256xf32> to vector<1x32xf32>
    %cst_96 = arith.constant 1.000000e+00 : f32
    %332 = vector.broadcast %cst_96 : f32 to vector<1x32xf32>
    %333 = arith.addf %331, %332 : vector<1x32xf32>
    %cst_97 = arith.constant 5.000000e-01 : f32
    %334 = vector.broadcast %cst_97 : f32 to vector<1x32xf32>
    %335 = arith.mulf %334, %333 : vector<1x32xf32>
    %336 = arith.mulf %329, %288 : vector<1x32xf32>
    %337 = arith.mulf %324, %330 : vector<1x32xf32>
    %338 = arith.addf %336, %337 : vector<1x32xf32>
    %339 = math.tanh %338 : vector<1x32xf32>
    %340 = arith.mulf %335, %339 : vector<1x32xf32>
    %341 = vector.extract_strided_slice %319 {offsets = [0, 128], sizes = [1, 32], strides = [1, 1]} : vector<1x256xf32> to vector<1x32xf32>
    %cst_98 = arith.constant 1.000000e+00 : f32
    %342 = vector.broadcast %cst_98 : f32 to vector<1x32xf32>
    %343 = arith.addf %341, %342 : vector<1x32xf32>
    %cst_99 = arith.constant 5.000000e-01 : f32
    %344 = vector.broadcast %cst_99 : f32 to vector<1x32xf32>
    %345 = arith.mulf %344, %343 : vector<1x32xf32>
    %346 = vector.extract_strided_slice %319 {offsets = [0, 160], sizes = [1, 32], strides = [1, 1]} : vector<1x256xf32> to vector<1x32xf32>
    %cst_100 = arith.constant 1.000000e+00 : f32
    %347 = vector.broadcast %cst_100 : f32 to vector<1x32xf32>
    %348 = arith.addf %346, %347 : vector<1x32xf32>
    %cst_101 = arith.constant 5.000000e-01 : f32
    %349 = vector.broadcast %cst_101 : f32 to vector<1x32xf32>
    %350 = arith.mulf %349, %348 : vector<1x32xf32>
    %351 = vector.extract_strided_slice %319 {offsets = [0, 192], sizes = [1, 32], strides = [1, 1]} : vector<1x256xf32> to vector<1x32xf32>
    %352 = vector.extract_strided_slice %319 {offsets = [0, 224], sizes = [1, 32], strides = [1, 1]} : vector<1x256xf32> to vector<1x32xf32>
    %cst_102 = arith.constant 1.000000e+00 : f32
    %353 = vector.broadcast %cst_102 : f32 to vector<1x32xf32>
    %354 = arith.addf %352, %353 : vector<1x32xf32>
    %cst_103 = arith.constant 5.000000e-01 : f32
    %355 = vector.broadcast %cst_103 : f32 to vector<1x32xf32>
    %356 = arith.mulf %355, %354 : vector<1x32xf32>
    %357 = arith.mulf %350, %309 : vector<1x32xf32>
    %358 = arith.mulf %345, %351 : vector<1x32xf32>
    %359 = arith.addf %357, %358 : vector<1x32xf32>
    %360 = math.tanh %359 : vector<1x32xf32>
    %361 = arith.mulf %356, %360 : vector<1x32xf32>
    %362 = tpu.concatenate %340, %361 in 1 : vector<1x32xf32>, vector<1x32xf32> -> vector<1x64xf32>
    %363 = arith.truncf %362 : vector<1x64xf32> to vector<1x64xbf16>
    %cst_104 = arith.constant dense<0.000000e+00> : vector<1x256xf32>
    %364 = tpu.matmul %363, %5, %cst_104 {dimension_numbers = #tpu.dot_dimension_numbers<[1], [0], [0], [1], [0, 0, 1, 1], [], []>} : vector<1x64xbf16>, vector<64x256xbf16>, vector<1x256xf32> -> vector<1x256xf32>
    %365 = vector.extract_strided_slice %10 {offsets = [7, 0], sizes = [1, 128], strides = [1, 1]} : vector<8x256xf32> to vector<1x128xf32>
    %366 = vector.extract_strided_slice %10 {offsets = [0, 128], sizes = [1, 128], strides = [1, 1]} : vector<8x256xf32> to vector<1x128xf32>
    %367 = tpu.concatenate %365, %366 in 1 : vector<1x128xf32>, vector<1x128xf32> -> vector<1x256xf32>
    %368 = arith.addf %364, %367 : vector<1x256xf32>
    %369 = math.tanh %368 : vector<1x256xf32>
    %370 = vector.extract_strided_slice %369 {offsets = [0, 0], sizes = [1, 32], strides = [1, 1]} : vector<1x256xf32> to vector<1x32xf32>
    %cst_105 = arith.constant 1.000000e+00 : f32
    %371 = vector.broadcast %cst_105 : f32 to vector<1x32xf32>
    %372 = arith.addf %370, %371 : vector<1x32xf32>
    %cst_106 = arith.constant 5.000000e-01 : f32
    %373 = vector.broadcast %cst_106 : f32 to vector<1x32xf32>
    %374 = arith.mulf %373, %372 : vector<1x32xf32>
    %375 = vector.extract_strided_slice %369 {offsets = [0, 32], sizes = [1, 32], strides = [1, 1]} : vector<1x256xf32> to vector<1x32xf32>
    %cst_107 = arith.constant 1.000000e+00 : f32
    %376 = vector.broadcast %cst_107 : f32 to vector<1x32xf32>
    %377 = arith.addf %375, %376 : vector<1x32xf32>
    %cst_108 = arith.constant 5.000000e-01 : f32
    %378 = vector.broadcast %cst_108 : f32 to vector<1x32xf32>
    %379 = arith.mulf %378, %377 : vector<1x32xf32>
    %380 = vector.extract_strided_slice %369 {offsets = [0, 64], sizes = [1, 32], strides = [1, 1]} : vector<1x256xf32> to vector<1x32xf32>
    %381 = vector.extract_strided_slice %369 {offsets = [0, 96], sizes = [1, 32], strides = [1, 1]} : vector<1x256xf32> to vector<1x32xf32>
    %cst_109 = arith.constant 1.000000e+00 : f32
    %382 = vector.broadcast %cst_109 : f32 to vector<1x32xf32>
    %383 = arith.addf %381, %382 : vector<1x32xf32>
    %cst_110 = arith.constant 5.000000e-01 : f32
    %384 = vector.broadcast %cst_110 : f32 to vector<1x32xf32>
    %385 = arith.mulf %384, %383 : vector<1x32xf32>
    %386 = arith.mulf %379, %338 : vector<1x32xf32>
    %387 = arith.mulf %374, %380 : vector<1x32xf32>
    %388 = arith.addf %386, %387 : vector<1x32xf32>
    %389 = math.tanh %388 : vector<1x32xf32>
    %390 = arith.mulf %385, %389 : vector<1x32xf32>
    %391 = vector.extract_strided_slice %369 {offsets = [0, 128], sizes = [1, 32], strides = [1, 1]} : vector<1x256xf32> to vector<1x32xf32>
    %cst_111 = arith.constant 1.000000e+00 : f32
    %392 = vector.broadcast %cst_111 : f32 to vector<1x32xf32>
    %393 = arith.addf %391, %392 : vector<1x32xf32>
    %cst_112 = arith.constant 5.000000e-01 : f32
    %394 = vector.broadcast %cst_112 : f32 to vector<1x32xf32>
    %395 = arith.mulf %394, %393 : vector<1x32xf32>
    %396 = vector.extract_strided_slice %369 {offsets = [0, 160], sizes = [1, 32], strides = [1, 1]} : vector<1x256xf32> to vector<1x32xf32>
    %cst_113 = arith.constant 1.000000e+00 : f32
    %397 = vector.broadcast %cst_113 : f32 to vector<1x32xf32>
    %398 = arith.addf %396, %397 : vector<1x32xf32>
    %cst_114 = arith.constant 5.000000e-01 : f32
    %399 = vector.broadcast %cst_114 : f32 to vector<1x32xf32>
    %400 = arith.mulf %399, %398 : vector<1x32xf32>
    %401 = vector.extract_strided_slice %369 {offsets = [0, 192], sizes = [1, 32], strides = [1, 1]} : vector<1x256xf32> to vector<1x32xf32>
    %402 = vector.extract_strided_slice %369 {offsets = [0, 224], sizes = [1, 32], strides = [1, 1]} : vector<1x256xf32> to vector<1x32xf32>
    %cst_115 = arith.constant 1.000000e+00 : f32
    %403 = vector.broadcast %cst_115 : f32 to vector<1x32xf32>
    %404 = arith.addf %402, %403 : vector<1x32xf32>
    %cst_116 = arith.constant 5.000000e-01 : f32
    %405 = vector.broadcast %cst_116 : f32 to vector<1x32xf32>
    %406 = arith.mulf %405, %404 : vector<1x32xf32>
    %407 = arith.mulf %400, %359 : vector<1x32xf32>
    %408 = arith.mulf %395, %401 : vector<1x32xf32>
    %409 = arith.addf %407, %408 : vector<1x32xf32>
    %410 = math.tanh %409 : vector<1x32xf32>
    %411 = arith.mulf %406, %410 : vector<1x32xf32>
    %412 = tpu.concatenate %40, %90, %140, %190, %240, %290, %340, %390 in 0 : vector<1x32xf32>, vector<1x32xf32>, vector<1x32xf32>, vector<1x32xf32>, vector<1x32xf32>, vector<1x32xf32>, vector<1x32xf32>, vector<1x32xf32> -> vector<8x32xf32>
    %413 = tpu.concatenate %411, %361, %311, %261, %211, %161, %111, %61 in 0 : vector<1x32xf32>, vector<1x32xf32>, vector<1x32xf32>, vector<1x32xf32>, vector<1x32xf32>, vector<1x32xf32>, vector<1x32xf32>, vector<1x32xf32> -> vector<8x32xf32>
    %414 = tpu.concatenate %412, %413 in 1 : vector<8x32xf32>, vector<8x32xf32> -> vector<8x64xf32>
    %415 = arith.truncf %414 : vector<8x64xf32> to vector<8x64xbf16>
    %c1 = arith.constant 1 : index
    %c0_117 = arith.constant 0 : index
    %c0_118 = arith.constant 0 : index
    %416 = vector.load %arg1[%c1, %c0_117, %c0_118] : memref<2x64x256xbf16, #tpu.memory_space<vmem>>, vector<1x64x256xbf16>
    %417 = vector.shape_cast %416 : vector<1x64x256xbf16> to vector<64x256xbf16>
    %c1_119 = arith.constant 1 : index
    %c0_120 = arith.constant 0 : index
    %c0_121 = arith.constant 0 : index
    %418 = vector.load %arg2[%c1_119, %c0_120, %c0_121] : memref<2x64x256xbf16, #tpu.memory_space<vmem>>, vector<1x64x256xbf16>
    %419 = vector.shape_cast %418 : vector<1x64x256xbf16> to vector<64x256xbf16>
    %c1_122 = arith.constant 1 : index
    %c0_123 = arith.constant 0 : index
    %c0_124 = arith.constant 0 : index
    %420 = vector.load %arg3[%c1_122, %c0_123, %c0_124] : memref<3x1x256xf32, #tpu.memory_space<vmem>>, vector<1x1x256xf32>
    %421 = vector.shape_cast %420 : vector<1x1x256xf32> to vector<1x256xf32>
    %cst_125 = arith.constant dense<0.000000e+00> : vector<8x256xf32>
    %422 = tpu.matmul %415, %417, %cst_125 {dimension_numbers = #tpu.dot_dimension_numbers<[1], [0], [0], [1], [0, 0, 1, 1], [], []>} : vector<8x64xbf16>, vector<64x256xbf16>, vector<8x256xf32> -> vector<8x256xf32>
    %423 = vector.broadcast %421 : vector<1x256xf32> to vector<8x256xf32>
    %424 = arith.addf %422, %423 : vector<8x256xf32>
    %cst_126 = arith.constant 0.000000e+00 : f32
    %425 = vector.broadcast %cst_126 : f32 to vector<1x32xf32>
    %cst_127 = arith.constant 0.000000e+00 : f32
    %426 = vector.broadcast %cst_127 : f32 to vector<1x32xf32>
    %cst_128 = arith.constant 0.000000e+00 : bf16
    %427 = vector.broadcast %cst_128 : bf16 to vector<1x64xbf16>
    %cst_129 = arith.constant dense<0.000000e+00> : vector<1x256xf32>
    %428 = tpu.matmul %427, %419, %cst_129 {dimension_numbers = #tpu.dot_dimension_numbers<[1], [0], [0], [1], [0, 0, 1, 1], [], []>} : vector<1x64xbf16>, vector<64x256xbf16>, vector<1x256xf32> -> vector<1x256xf32>
    %429 = vector.extract_strided_slice %424 {offsets = [0, 0], sizes = [1, 128], strides = [1, 1]} : vector<8x256xf32> to vector<1x128xf32>
    %430 = vector.extract_strided_slice %424 {offsets = [7, 128], sizes = [1, 128], strides = [1, 1]} : vector<8x256xf32> to vector<1x128xf32>
    %431 = tpu.concatenate %429, %430 in 1 : vector<1x128xf32>, vector<1x128xf32> -> vector<1x256xf32>
    %432 = arith.addf %428, %431 : vector<1x256xf32>
    %433 = math.tanh %432 : vector<1x256xf32>
    %434 = vector.extract_strided_slice %433 {offsets = [0, 0], sizes = [1, 32], strides = [1, 1]} : vector<1x256xf32> to vector<1x32xf32>
    %cst_130 = arith.constant 1.000000e+00 : f32
    %435 = vector.broadcast %cst_130 : f32 to vector<1x32xf32>
    %436 = arith.addf %434, %435 : vector<1x32xf32>
    %cst_131 = arith.constant 5.000000e-01 : f32
    %437 = vector.broadcast %cst_131 : f32 to vector<1x32xf32>
    %438 = arith.mulf %437, %436 : vector<1x32xf32>
    %439 = vector.extract_strided_slice %433 {offsets = [0, 32], sizes = [1, 32], strides = [1, 1]} : vector<1x256xf32> to vector<1x32xf32>
    %cst_132 = arith.constant 1.000000e+00 : f32
    %440 = vector.broadcast %cst_132 : f32 to vector<1x32xf32>
    %441 = arith.addf %439, %440 : vector<1x32xf32>
    %cst_133 = arith.constant 5.000000e-01 : f32
    %442 = vector.broadcast %cst_133 : f32 to vector<1x32xf32>
    %443 = arith.mulf %442, %441 : vector<1x32xf32>
    %444 = vector.extract_strided_slice %433 {offsets = [0, 64], sizes = [1, 32], strides = [1, 1]} : vector<1x256xf32> to vector<1x32xf32>
    %445 = vector.extract_strided_slice %433 {offsets = [0, 96], sizes = [1, 32], strides = [1, 1]} : vector<1x256xf32> to vector<1x32xf32>
    %cst_134 = arith.constant 1.000000e+00 : f32
    %446 = vector.broadcast %cst_134 : f32 to vector<1x32xf32>
    %447 = arith.addf %445, %446 : vector<1x32xf32>
    %cst_135 = arith.constant 5.000000e-01 : f32
    %448 = vector.broadcast %cst_135 : f32 to vector<1x32xf32>
    %449 = arith.mulf %448, %447 : vector<1x32xf32>
    %450 = arith.mulf %443, %425 : vector<1x32xf32>
    %451 = arith.mulf %438, %444 : vector<1x32xf32>
    %452 = arith.addf %450, %451 : vector<1x32xf32>
    %453 = math.tanh %452 : vector<1x32xf32>
    %454 = arith.mulf %449, %453 : vector<1x32xf32>
    %455 = vector.extract_strided_slice %433 {offsets = [0, 128], sizes = [1, 32], strides = [1, 1]} : vector<1x256xf32> to vector<1x32xf32>
    %cst_136 = arith.constant 1.000000e+00 : f32
    %456 = vector.broadcast %cst_136 : f32 to vector<1x32xf32>
    %457 = arith.addf %455, %456 : vector<1x32xf32>
    %cst_137 = arith.constant 5.000000e-01 : f32
    %458 = vector.broadcast %cst_137 : f32 to vector<1x32xf32>
    %459 = arith.mulf %458, %457 : vector<1x32xf32>
    %460 = vector.extract_strided_slice %433 {offsets = [0, 160], sizes = [1, 32], strides = [1, 1]} : vector<1x256xf32> to vector<1x32xf32>
    %cst_138 = arith.constant 1.000000e+00 : f32
    %461 = vector.broadcast %cst_138 : f32 to vector<1x32xf32>
    %462 = arith.addf %460, %461 : vector<1x32xf32>
    %cst_139 = arith.constant 5.000000e-01 : f32
    %463 = vector.broadcast %cst_139 : f32 to vector<1x32xf32>
    %464 = arith.mulf %463, %462 : vector<1x32xf32>
    %465 = vector.extract_strided_slice %433 {offsets = [0, 192], sizes = [1, 32], strides = [1, 1]} : vector<1x256xf32> to vector<1x32xf32>
    %466 = vector.extract_strided_slice %433 {offsets = [0, 224], sizes = [1, 32], strides = [1, 1]} : vector<1x256xf32> to vector<1x32xf32>
    %cst_140 = arith.constant 1.000000e+00 : f32
    %467 = vector.broadcast %cst_140 : f32 to vector<1x32xf32>
    %468 = arith.addf %466, %467 : vector<1x32xf32>
    %cst_141 = arith.constant 5.000000e-01 : f32
    %469 = vector.broadcast %cst_141 : f32 to vector<1x32xf32>
    %470 = arith.mulf %469, %468 : vector<1x32xf32>
    %471 = arith.mulf %464, %426 : vector<1x32xf32>
    %472 = arith.mulf %459, %465 : vector<1x32xf32>
    %473 = arith.addf %471, %472 : vector<1x32xf32>
    %474 = math.tanh %473 : vector<1x32xf32>
    %475 = arith.mulf %470, %474 : vector<1x32xf32>
    %476 = tpu.concatenate %454, %475 in 1 : vector<1x32xf32>, vector<1x32xf32> -> vector<1x64xf32>
    %477 = arith.truncf %476 : vector<1x64xf32> to vector<1x64xbf16>
    %cst_142 = arith.constant dense<0.000000e+00> : vector<1x256xf32>
    %478 = tpu.matmul %477, %419, %cst_142 {dimension_numbers = #tpu.dot_dimension_numbers<[1], [0], [0], [1], [0, 0, 1, 1], [], []>} : vector<1x64xbf16>, vector<64x256xbf16>, vector<1x256xf32> -> vector<1x256xf32>
    %479 = vector.extract_strided_slice %424 {offsets = [1, 0], sizes = [1, 128], strides = [1, 1]} : vector<8x256xf32> to vector<1x128xf32>
    %480 = vector.extract_strided_slice %424 {offsets = [6, 128], sizes = [1, 128], strides = [1, 1]} : vector<8x256xf32> to vector<1x128xf32>
    %481 = tpu.concatenate %479, %480 in 1 : vector<1x128xf32>, vector<1x128xf32> -> vector<1x256xf32>
    %482 = arith.addf %478, %481 : vector<1x256xf32>
    %483 = math.tanh %482 : vector<1x256xf32>
    %484 = vector.extract_strided_slice %483 {offsets = [0, 0], sizes = [1, 32], strides = [1, 1]} : vector<1x256xf32> to vector<1x32xf32>
    %cst_143 = arith.constant 1.000000e+00 : f32
    %485 = vector.broadcast %cst_143 : f32 to vector<1x32xf32>
    %486 = arith.addf %484, %485 : vector<1x32xf32>
    %cst_144 = arith.constant 5.000000e-01 : f32
    %487 = vector.broadcast %cst_144 : f32 to vector<1x32xf32>
    %488 = arith.mulf %487, %486 : vector<1x32xf32>
    %489 = vector.extract_strided_slice %483 {offsets = [0, 32], sizes = [1, 32], strides = [1, 1]} : vector<1x256xf32> to vector<1x32xf32>
    %cst_145 = arith.constant 1.000000e+00 : f32
    %490 = vector.broadcast %cst_145 : f32 to vector<1x32xf32>
    %491 = arith.addf %489, %490 : vector<1x32xf32>
    %cst_146 = arith.constant 5.000000e-01 : f32
    %492 = vector.broadcast %cst_146 : f32 to vector<1x32xf32>
    %493 = arith.mulf %492, %491 : vector<1x32xf32>
    %494 = vector.extract_strided_slice %483 {offsets = [0, 64], sizes = [1, 32], strides = [1, 1]} : vector<1x256xf32> to vector<1x32xf32>
    %495 = vector.extract_strided_slice %483 {offsets = [0, 96], sizes = [1, 32], strides = [1, 1]} : vector<1x256xf32> to vector<1x32xf32>
    %cst_147 = arith.constant 1.000000e+00 : f32
    %496 = vector.broadcast %cst_147 : f32 to vector<1x32xf32>
    %497 = arith.addf %495, %496 : vector<1x32xf32>
    %cst_148 = arith.constant 5.000000e-01 : f32
    %498 = vector.broadcast %cst_148 : f32 to vector<1x32xf32>
    %499 = arith.mulf %498, %497 : vector<1x32xf32>
    %500 = arith.mulf %493, %452 : vector<1x32xf32>
    %501 = arith.mulf %488, %494 : vector<1x32xf32>
    %502 = arith.addf %500, %501 : vector<1x32xf32>
    %503 = math.tanh %502 : vector<1x32xf32>
    %504 = arith.mulf %499, %503 : vector<1x32xf32>
    %505 = vector.extract_strided_slice %483 {offsets = [0, 128], sizes = [1, 32], strides = [1, 1]} : vector<1x256xf32> to vector<1x32xf32>
    %cst_149 = arith.constant 1.000000e+00 : f32
    %506 = vector.broadcast %cst_149 : f32 to vector<1x32xf32>
    %507 = arith.addf %505, %506 : vector<1x32xf32>
    %cst_150 = arith.constant 5.000000e-01 : f32
    %508 = vector.broadcast %cst_150 : f32 to vector<1x32xf32>
    %509 = arith.mulf %508, %507 : vector<1x32xf32>
    %510 = vector.extract_strided_slice %483 {offsets = [0, 160], sizes = [1, 32], strides = [1, 1]} : vector<1x256xf32> to vector<1x32xf32>
    %cst_151 = arith.constant 1.000000e+00 : f32
    %511 = vector.broadcast %cst_151 : f32 to vector<1x32xf32>
    %512 = arith.addf %510, %511 : vector<1x32xf32>
    %cst_152 = arith.constant 5.000000e-01 : f32
    %513 = vector.broadcast %cst_152 : f32 to vector<1x32xf32>
    %514 = arith.mulf %513, %512 : vector<1x32xf32>
    %515 = vector.extract_strided_slice %483 {offsets = [0, 192], sizes = [1, 32], strides = [1, 1]} : vector<1x256xf32> to vector<1x32xf32>
    %516 = vector.extract_strided_slice %483 {offsets = [0, 224], sizes = [1, 32], strides = [1, 1]} : vector<1x256xf32> to vector<1x32xf32>
    %cst_153 = arith.constant 1.000000e+00 : f32
    %517 = vector.broadcast %cst_153 : f32 to vector<1x32xf32>
    %518 = arith.addf %516, %517 : vector<1x32xf32>
    %cst_154 = arith.constant 5.000000e-01 : f32
    %519 = vector.broadcast %cst_154 : f32 to vector<1x32xf32>
    %520 = arith.mulf %519, %518 : vector<1x32xf32>
    %521 = arith.mulf %514, %473 : vector<1x32xf32>
    %522 = arith.mulf %509, %515 : vector<1x32xf32>
    %523 = arith.addf %521, %522 : vector<1x32xf32>
    %524 = math.tanh %523 : vector<1x32xf32>
    %525 = arith.mulf %520, %524 : vector<1x32xf32>
    %526 = tpu.concatenate %504, %525 in 1 : vector<1x32xf32>, vector<1x32xf32> -> vector<1x64xf32>
    %527 = arith.truncf %526 : vector<1x64xf32> to vector<1x64xbf16>
    %cst_155 = arith.constant dense<0.000000e+00> : vector<1x256xf32>
    %528 = tpu.matmul %527, %419, %cst_155 {dimension_numbers = #tpu.dot_dimension_numbers<[1], [0], [0], [1], [0, 0, 1, 1], [], []>} : vector<1x64xbf16>, vector<64x256xbf16>, vector<1x256xf32> -> vector<1x256xf32>
    %529 = vector.extract_strided_slice %424 {offsets = [2, 0], sizes = [1, 128], strides = [1, 1]} : vector<8x256xf32> to vector<1x128xf32>
    %530 = vector.extract_strided_slice %424 {offsets = [5, 128], sizes = [1, 128], strides = [1, 1]} : vector<8x256xf32> to vector<1x128xf32>
    %531 = tpu.concatenate %529, %530 in 1 : vector<1x128xf32>, vector<1x128xf32> -> vector<1x256xf32>
    %532 = arith.addf %528, %531 : vector<1x256xf32>
    %533 = math.tanh %532 : vector<1x256xf32>
    %534 = vector.extract_strided_slice %533 {offsets = [0, 0], sizes = [1, 32], strides = [1, 1]} : vector<1x256xf32> to vector<1x32xf32>
    %cst_156 = arith.constant 1.000000e+00 : f32
    %535 = vector.broadcast %cst_156 : f32 to vector<1x32xf32>
    %536 = arith.addf %534, %535 : vector<1x32xf32>
    %cst_157 = arith.constant 5.000000e-01 : f32
    %537 = vector.broadcast %cst_157 : f32 to vector<1x32xf32>
    %538 = arith.mulf %537, %536 : vector<1x32xf32>
    %539 = vector.extract_strided_slice %533 {offsets = [0, 32], sizes = [1, 32], strides = [1, 1]} : vector<1x256xf32> to vector<1x32xf32>
    %cst_158 = arith.constant 1.000000e+00 : f32
    %540 = vector.broadcast %cst_158 : f32 to vector<1x32xf32>
    %541 = arith.addf %539, %540 : vector<1x32xf32>
    %cst_159 = arith.constant 5.000000e-01 : f32
    %542 = vector.broadcast %cst_159 : f32 to vector<1x32xf32>
    %543 = arith.mulf %542, %541 : vector<1x32xf32>
    %544 = vector.extract_strided_slice %533 {offsets = [0, 64], sizes = [1, 32], strides = [1, 1]} : vector<1x256xf32> to vector<1x32xf32>
    %545 = vector.extract_strided_slice %533 {offsets = [0, 96], sizes = [1, 32], strides = [1, 1]} : vector<1x256xf32> to vector<1x32xf32>
    %cst_160 = arith.constant 1.000000e+00 : f32
    %546 = vector.broadcast %cst_160 : f32 to vector<1x32xf32>
    %547 = arith.addf %545, %546 : vector<1x32xf32>
    %cst_161 = arith.constant 5.000000e-01 : f32
    %548 = vector.broadcast %cst_161 : f32 to vector<1x32xf32>
    %549 = arith.mulf %548, %547 : vector<1x32xf32>
    %550 = arith.mulf %543, %502 : vector<1x32xf32>
    %551 = arith.mulf %538, %544 : vector<1x32xf32>
    %552 = arith.addf %550, %551 : vector<1x32xf32>
    %553 = math.tanh %552 : vector<1x32xf32>
    %554 = arith.mulf %549, %553 : vector<1x32xf32>
    %555 = vector.extract_strided_slice %533 {offsets = [0, 128], sizes = [1, 32], strides = [1, 1]} : vector<1x256xf32> to vector<1x32xf32>
    %cst_162 = arith.constant 1.000000e+00 : f32
    %556 = vector.broadcast %cst_162 : f32 to vector<1x32xf32>
    %557 = arith.addf %555, %556 : vector<1x32xf32>
    %cst_163 = arith.constant 5.000000e-01 : f32
    %558 = vector.broadcast %cst_163 : f32 to vector<1x32xf32>
    %559 = arith.mulf %558, %557 : vector<1x32xf32>
    %560 = vector.extract_strided_slice %533 {offsets = [0, 160], sizes = [1, 32], strides = [1, 1]} : vector<1x256xf32> to vector<1x32xf32>
    %cst_164 = arith.constant 1.000000e+00 : f32
    %561 = vector.broadcast %cst_164 : f32 to vector<1x32xf32>
    %562 = arith.addf %560, %561 : vector<1x32xf32>
    %cst_165 = arith.constant 5.000000e-01 : f32
    %563 = vector.broadcast %cst_165 : f32 to vector<1x32xf32>
    %564 = arith.mulf %563, %562 : vector<1x32xf32>
    %565 = vector.extract_strided_slice %533 {offsets = [0, 192], sizes = [1, 32], strides = [1, 1]} : vector<1x256xf32> to vector<1x32xf32>
    %566 = vector.extract_strided_slice %533 {offsets = [0, 224], sizes = [1, 32], strides = [1, 1]} : vector<1x256xf32> to vector<1x32xf32>
    %cst_166 = arith.constant 1.000000e+00 : f32
    %567 = vector.broadcast %cst_166 : f32 to vector<1x32xf32>
    %568 = arith.addf %566, %567 : vector<1x32xf32>
    %cst_167 = arith.constant 5.000000e-01 : f32
    %569 = vector.broadcast %cst_167 : f32 to vector<1x32xf32>
    %570 = arith.mulf %569, %568 : vector<1x32xf32>
    %571 = arith.mulf %564, %523 : vector<1x32xf32>
    %572 = arith.mulf %559, %565 : vector<1x32xf32>
    %573 = arith.addf %571, %572 : vector<1x32xf32>
    %574 = math.tanh %573 : vector<1x32xf32>
    %575 = arith.mulf %570, %574 : vector<1x32xf32>
    %576 = tpu.concatenate %554, %575 in 1 : vector<1x32xf32>, vector<1x32xf32> -> vector<1x64xf32>
    %577 = arith.truncf %576 : vector<1x64xf32> to vector<1x64xbf16>
    %cst_168 = arith.constant dense<0.000000e+00> : vector<1x256xf32>
    %578 = tpu.matmul %577, %419, %cst_168 {dimension_numbers = #tpu.dot_dimension_numbers<[1], [0], [0], [1], [0, 0, 1, 1], [], []>} : vector<1x64xbf16>, vector<64x256xbf16>, vector<1x256xf32> -> vector<1x256xf32>
    %579 = vector.extract_strided_slice %424 {offsets = [3, 0], sizes = [1, 128], strides = [1, 1]} : vector<8x256xf32> to vector<1x128xf32>
    %580 = vector.extract_strided_slice %424 {offsets = [4, 128], sizes = [1, 128], strides = [1, 1]} : vector<8x256xf32> to vector<1x128xf32>
    %581 = tpu.concatenate %579, %580 in 1 : vector<1x128xf32>, vector<1x128xf32> -> vector<1x256xf32>
    %582 = arith.addf %578, %581 : vector<1x256xf32>
    %583 = math.tanh %582 : vector<1x256xf32>
    %584 = vector.extract_strided_slice %583 {offsets = [0, 0], sizes = [1, 32], strides = [1, 1]} : vector<1x256xf32> to vector<1x32xf32>
    %cst_169 = arith.constant 1.000000e+00 : f32
    %585 = vector.broadcast %cst_169 : f32 to vector<1x32xf32>
    %586 = arith.addf %584, %585 : vector<1x32xf32>
    %cst_170 = arith.constant 5.000000e-01 : f32
    %587 = vector.broadcast %cst_170 : f32 to vector<1x32xf32>
    %588 = arith.mulf %587, %586 : vector<1x32xf32>
    %589 = vector.extract_strided_slice %583 {offsets = [0, 32], sizes = [1, 32], strides = [1, 1]} : vector<1x256xf32> to vector<1x32xf32>
    %cst_171 = arith.constant 1.000000e+00 : f32
    %590 = vector.broadcast %cst_171 : f32 to vector<1x32xf32>
    %591 = arith.addf %589, %590 : vector<1x32xf32>
    %cst_172 = arith.constant 5.000000e-01 : f32
    %592 = vector.broadcast %cst_172 : f32 to vector<1x32xf32>
    %593 = arith.mulf %592, %591 : vector<1x32xf32>
    %594 = vector.extract_strided_slice %583 {offsets = [0, 64], sizes = [1, 32], strides = [1, 1]} : vector<1x256xf32> to vector<1x32xf32>
    %595 = vector.extract_strided_slice %583 {offsets = [0, 96], sizes = [1, 32], strides = [1, 1]} : vector<1x256xf32> to vector<1x32xf32>
    %cst_173 = arith.constant 1.000000e+00 : f32
    %596 = vector.broadcast %cst_173 : f32 to vector<1x32xf32>
    %597 = arith.addf %595, %596 : vector<1x32xf32>
    %cst_174 = arith.constant 5.000000e-01 : f32
    %598 = vector.broadcast %cst_174 : f32 to vector<1x32xf32>
    %599 = arith.mulf %598, %597 : vector<1x32xf32>
    %600 = arith.mulf %593, %552 : vector<1x32xf32>
    %601 = arith.mulf %588, %594 : vector<1x32xf32>
    %602 = arith.addf %600, %601 : vector<1x32xf32>
    %603 = math.tanh %602 : vector<1x32xf32>
    %604 = arith.mulf %599, %603 : vector<1x32xf32>
    %605 = vector.extract_strided_slice %583 {offsets = [0, 128], sizes = [1, 32], strides = [1, 1]} : vector<1x256xf32> to vector<1x32xf32>
    %cst_175 = arith.constant 1.000000e+00 : f32
    %606 = vector.broadcast %cst_175 : f32 to vector<1x32xf32>
    %607 = arith.addf %605, %606 : vector<1x32xf32>
    %cst_176 = arith.constant 5.000000e-01 : f32
    %608 = vector.broadcast %cst_176 : f32 to vector<1x32xf32>
    %609 = arith.mulf %608, %607 : vector<1x32xf32>
    %610 = vector.extract_strided_slice %583 {offsets = [0, 160], sizes = [1, 32], strides = [1, 1]} : vector<1x256xf32> to vector<1x32xf32>
    %cst_177 = arith.constant 1.000000e+00 : f32
    %611 = vector.broadcast %cst_177 : f32 to vector<1x32xf32>
    %612 = arith.addf %610, %611 : vector<1x32xf32>
    %cst_178 = arith.constant 5.000000e-01 : f32
    %613 = vector.broadcast %cst_178 : f32 to vector<1x32xf32>
    %614 = arith.mulf %613, %612 : vector<1x32xf32>
    %615 = vector.extract_strided_slice %583 {offsets = [0, 192], sizes = [1, 32], strides = [1, 1]} : vector<1x256xf32> to vector<1x32xf32>
    %616 = vector.extract_strided_slice %583 {offsets = [0, 224], sizes = [1, 32], strides = [1, 1]} : vector<1x256xf32> to vector<1x32xf32>
    %cst_179 = arith.constant 1.000000e+00 : f32
    %617 = vector.broadcast %cst_179 : f32 to vector<1x32xf32>
    %618 = arith.addf %616, %617 : vector<1x32xf32>
    %cst_180 = arith.constant 5.000000e-01 : f32
    %619 = vector.broadcast %cst_180 : f32 to vector<1x32xf32>
    %620 = arith.mulf %619, %618 : vector<1x32xf32>
    %621 = arith.mulf %614, %573 : vector<1x32xf32>
    %622 = arith.mulf %609, %615 : vector<1x32xf32>
    %623 = arith.addf %621, %622 : vector<1x32xf32>
    %624 = math.tanh %623 : vector<1x32xf32>
    %625 = arith.mulf %620, %624 : vector<1x32xf32>
    %626 = tpu.concatenate %604, %625 in 1 : vector<1x32xf32>, vector<1x32xf32> -> vector<1x64xf32>
    %627 = arith.truncf %626 : vector<1x64xf32> to vector<1x64xbf16>
    %cst_181 = arith.constant dense<0.000000e+00> : vector<1x256xf32>
    %628 = tpu.matmul %627, %419, %cst_181 {dimension_numbers = #tpu.dot_dimension_numbers<[1], [0], [0], [1], [0, 0, 1, 1], [], []>} : vector<1x64xbf16>, vector<64x256xbf16>, vector<1x256xf32> -> vector<1x256xf32>
    %629 = vector.extract_strided_slice %424 {offsets = [4, 0], sizes = [1, 128], strides = [1, 1]} : vector<8x256xf32> to vector<1x128xf32>
    %630 = vector.extract_strided_slice %424 {offsets = [3, 128], sizes = [1, 128], strides = [1, 1]} : vector<8x256xf32> to vector<1x128xf32>
    %631 = tpu.concatenate %629, %630 in 1 : vector<1x128xf32>, vector<1x128xf32> -> vector<1x256xf32>
    %632 = arith.addf %628, %631 : vector<1x256xf32>
    %633 = math.tanh %632 : vector<1x256xf32>
    %634 = vector.extract_strided_slice %633 {offsets = [0, 0], sizes = [1, 32], strides = [1, 1]} : vector<1x256xf32> to vector<1x32xf32>
    %cst_182 = arith.constant 1.000000e+00 : f32
    %635 = vector.broadcast %cst_182 : f32 to vector<1x32xf32>
    %636 = arith.addf %634, %635 : vector<1x32xf32>
    %cst_183 = arith.constant 5.000000e-01 : f32
    %637 = vector.broadcast %cst_183 : f32 to vector<1x32xf32>
    %638 = arith.mulf %637, %636 : vector<1x32xf32>
    %639 = vector.extract_strided_slice %633 {offsets = [0, 32], sizes = [1, 32], strides = [1, 1]} : vector<1x256xf32> to vector<1x32xf32>
    %cst_184 = arith.constant 1.000000e+00 : f32
    %640 = vector.broadcast %cst_184 : f32 to vector<1x32xf32>
    %641 = arith.addf %639, %640 : vector<1x32xf32>
    %cst_185 = arith.constant 5.000000e-01 : f32
    %642 = vector.broadcast %cst_185 : f32 to vector<1x32xf32>
    %643 = arith.mulf %642, %641 : vector<1x32xf32>
    %644 = vector.extract_strided_slice %633 {offsets = [0, 64], sizes = [1, 32], strides = [1, 1]} : vector<1x256xf32> to vector<1x32xf32>
    %645 = vector.extract_strided_slice %633 {offsets = [0, 96], sizes = [1, 32], strides = [1, 1]} : vector<1x256xf32> to vector<1x32xf32>
    %cst_186 = arith.constant 1.000000e+00 : f32
    %646 = vector.broadcast %cst_186 : f32 to vector<1x32xf32>
    %647 = arith.addf %645, %646 : vector<1x32xf32>
    %cst_187 = arith.constant 5.000000e-01 : f32
    %648 = vector.broadcast %cst_187 : f32 to vector<1x32xf32>
    %649 = arith.mulf %648, %647 : vector<1x32xf32>
    %650 = arith.mulf %643, %602 : vector<1x32xf32>
    %651 = arith.mulf %638, %644 : vector<1x32xf32>
    %652 = arith.addf %650, %651 : vector<1x32xf32>
    %653 = math.tanh %652 : vector<1x32xf32>
    %654 = arith.mulf %649, %653 : vector<1x32xf32>
    %655 = vector.extract_strided_slice %633 {offsets = [0, 128], sizes = [1, 32], strides = [1, 1]} : vector<1x256xf32> to vector<1x32xf32>
    %cst_188 = arith.constant 1.000000e+00 : f32
    %656 = vector.broadcast %cst_188 : f32 to vector<1x32xf32>
    %657 = arith.addf %655, %656 : vector<1x32xf32>
    %cst_189 = arith.constant 5.000000e-01 : f32
    %658 = vector.broadcast %cst_189 : f32 to vector<1x32xf32>
    %659 = arith.mulf %658, %657 : vector<1x32xf32>
    %660 = vector.extract_strided_slice %633 {offsets = [0, 160], sizes = [1, 32], strides = [1, 1]} : vector<1x256xf32> to vector<1x32xf32>
    %cst_190 = arith.constant 1.000000e+00 : f32
    %661 = vector.broadcast %cst_190 : f32 to vector<1x32xf32>
    %662 = arith.addf %660, %661 : vector<1x32xf32>
    %cst_191 = arith.constant 5.000000e-01 : f32
    %663 = vector.broadcast %cst_191 : f32 to vector<1x32xf32>
    %664 = arith.mulf %663, %662 : vector<1x32xf32>
    %665 = vector.extract_strided_slice %633 {offsets = [0, 192], sizes = [1, 32], strides = [1, 1]} : vector<1x256xf32> to vector<1x32xf32>
    %666 = vector.extract_strided_slice %633 {offsets = [0, 224], sizes = [1, 32], strides = [1, 1]} : vector<1x256xf32> to vector<1x32xf32>
    %cst_192 = arith.constant 1.000000e+00 : f32
    %667 = vector.broadcast %cst_192 : f32 to vector<1x32xf32>
    %668 = arith.addf %666, %667 : vector<1x32xf32>
    %cst_193 = arith.constant 5.000000e-01 : f32
    %669 = vector.broadcast %cst_193 : f32 to vector<1x32xf32>
    %670 = arith.mulf %669, %668 : vector<1x32xf32>
    %671 = arith.mulf %664, %623 : vector<1x32xf32>
    %672 = arith.mulf %659, %665 : vector<1x32xf32>
    %673 = arith.addf %671, %672 : vector<1x32xf32>
    %674 = math.tanh %673 : vector<1x32xf32>
    %675 = arith.mulf %670, %674 : vector<1x32xf32>
    %676 = tpu.concatenate %654, %675 in 1 : vector<1x32xf32>, vector<1x32xf32> -> vector<1x64xf32>
    %677 = arith.truncf %676 : vector<1x64xf32> to vector<1x64xbf16>
    %cst_194 = arith.constant dense<0.000000e+00> : vector<1x256xf32>
    %678 = tpu.matmul %677, %419, %cst_194 {dimension_numbers = #tpu.dot_dimension_numbers<[1], [0], [0], [1], [0, 0, 1, 1], [], []>} : vector<1x64xbf16>, vector<64x256xbf16>, vector<1x256xf32> -> vector<1x256xf32>
    %679 = vector.extract_strided_slice %424 {offsets = [5, 0], sizes = [1, 128], strides = [1, 1]} : vector<8x256xf32> to vector<1x128xf32>
    %680 = vector.extract_strided_slice %424 {offsets = [2, 128], sizes = [1, 128], strides = [1, 1]} : vector<8x256xf32> to vector<1x128xf32>
    %681 = tpu.concatenate %679, %680 in 1 : vector<1x128xf32>, vector<1x128xf32> -> vector<1x256xf32>
    %682 = arith.addf %678, %681 : vector<1x256xf32>
    %683 = math.tanh %682 : vector<1x256xf32>
    %684 = vector.extract_strided_slice %683 {offsets = [0, 0], sizes = [1, 32], strides = [1, 1]} : vector<1x256xf32> to vector<1x32xf32>
    %cst_195 = arith.constant 1.000000e+00 : f32
    %685 = vector.broadcast %cst_195 : f32 to vector<1x32xf32>
    %686 = arith.addf %684, %685 : vector<1x32xf32>
    %cst_196 = arith.constant 5.000000e-01 : f32
    %687 = vector.broadcast %cst_196 : f32 to vector<1x32xf32>
    %688 = arith.mulf %687, %686 : vector<1x32xf32>
    %689 = vector.extract_strided_slice %683 {offsets = [0, 32], sizes = [1, 32], strides = [1, 1]} : vector<1x256xf32> to vector<1x32xf32>
    %cst_197 = arith.constant 1.000000e+00 : f32
    %690 = vector.broadcast %cst_197 : f32 to vector<1x32xf32>
    %691 = arith.addf %689, %690 : vector<1x32xf32>
    %cst_198 = arith.constant 5.000000e-01 : f32
    %692 = vector.broadcast %cst_198 : f32 to vector<1x32xf32>
    %693 = arith.mulf %692, %691 : vector<1x32xf32>
    %694 = vector.extract_strided_slice %683 {offsets = [0, 64], sizes = [1, 32], strides = [1, 1]} : vector<1x256xf32> to vector<1x32xf32>
    %695 = vector.extract_strided_slice %683 {offsets = [0, 96], sizes = [1, 32], strides = [1, 1]} : vector<1x256xf32> to vector<1x32xf32>
    %cst_199 = arith.constant 1.000000e+00 : f32
    %696 = vector.broadcast %cst_199 : f32 to vector<1x32xf32>
    %697 = arith.addf %695, %696 : vector<1x32xf32>
    %cst_200 = arith.constant 5.000000e-01 : f32
    %698 = vector.broadcast %cst_200 : f32 to vector<1x32xf32>
    %699 = arith.mulf %698, %697 : vector<1x32xf32>
    %700 = arith.mulf %693, %652 : vector<1x32xf32>
    %701 = arith.mulf %688, %694 : vector<1x32xf32>
    %702 = arith.addf %700, %701 : vector<1x32xf32>
    %703 = math.tanh %702 : vector<1x32xf32>
    %704 = arith.mulf %699, %703 : vector<1x32xf32>
    %705 = vector.extract_strided_slice %683 {offsets = [0, 128], sizes = [1, 32], strides = [1, 1]} : vector<1x256xf32> to vector<1x32xf32>
    %cst_201 = arith.constant 1.000000e+00 : f32
    %706 = vector.broadcast %cst_201 : f32 to vector<1x32xf32>
    %707 = arith.addf %705, %706 : vector<1x32xf32>
    %cst_202 = arith.constant 5.000000e-01 : f32
    %708 = vector.broadcast %cst_202 : f32 to vector<1x32xf32>
    %709 = arith.mulf %708, %707 : vector<1x32xf32>
    %710 = vector.extract_strided_slice %683 {offsets = [0, 160], sizes = [1, 32], strides = [1, 1]} : vector<1x256xf32> to vector<1x32xf32>
    %cst_203 = arith.constant 1.000000e+00 : f32
    %711 = vector.broadcast %cst_203 : f32 to vector<1x32xf32>
    %712 = arith.addf %710, %711 : vector<1x32xf32>
    %cst_204 = arith.constant 5.000000e-01 : f32
    %713 = vector.broadcast %cst_204 : f32 to vector<1x32xf32>
    %714 = arith.mulf %713, %712 : vector<1x32xf32>
    %715 = vector.extract_strided_slice %683 {offsets = [0, 192], sizes = [1, 32], strides = [1, 1]} : vector<1x256xf32> to vector<1x32xf32>
    %716 = vector.extract_strided_slice %683 {offsets = [0, 224], sizes = [1, 32], strides = [1, 1]} : vector<1x256xf32> to vector<1x32xf32>
    %cst_205 = arith.constant 1.000000e+00 : f32
    %717 = vector.broadcast %cst_205 : f32 to vector<1x32xf32>
    %718 = arith.addf %716, %717 : vector<1x32xf32>
    %cst_206 = arith.constant 5.000000e-01 : f32
    %719 = vector.broadcast %cst_206 : f32 to vector<1x32xf32>
    %720 = arith.mulf %719, %718 : vector<1x32xf32>
    %721 = arith.mulf %714, %673 : vector<1x32xf32>
    %722 = arith.mulf %709, %715 : vector<1x32xf32>
    %723 = arith.addf %721, %722 : vector<1x32xf32>
    %724 = math.tanh %723 : vector<1x32xf32>
    %725 = arith.mulf %720, %724 : vector<1x32xf32>
    %726 = tpu.concatenate %704, %725 in 1 : vector<1x32xf32>, vector<1x32xf32> -> vector<1x64xf32>
    %727 = arith.truncf %726 : vector<1x64xf32> to vector<1x64xbf16>
    %cst_207 = arith.constant dense<0.000000e+00> : vector<1x256xf32>
    %728 = tpu.matmul %727, %419, %cst_207 {dimension_numbers = #tpu.dot_dimension_numbers<[1], [0], [0], [1], [0, 0, 1, 1], [], []>} : vector<1x64xbf16>, vector<64x256xbf16>, vector<1x256xf32> -> vector<1x256xf32>
    %729 = vector.extract_strided_slice %424 {offsets = [6, 0], sizes = [1, 128], strides = [1, 1]} : vector<8x256xf32> to vector<1x128xf32>
    %730 = vector.extract_strided_slice %424 {offsets = [1, 128], sizes = [1, 128], strides = [1, 1]} : vector<8x256xf32> to vector<1x128xf32>
    %731 = tpu.concatenate %729, %730 in 1 : vector<1x128xf32>, vector<1x128xf32> -> vector<1x256xf32>
    %732 = arith.addf %728, %731 : vector<1x256xf32>
    %733 = math.tanh %732 : vector<1x256xf32>
    %734 = vector.extract_strided_slice %733 {offsets = [0, 0], sizes = [1, 32], strides = [1, 1]} : vector<1x256xf32> to vector<1x32xf32>
    %cst_208 = arith.constant 1.000000e+00 : f32
    %735 = vector.broadcast %cst_208 : f32 to vector<1x32xf32>
    %736 = arith.addf %734, %735 : vector<1x32xf32>
    %cst_209 = arith.constant 5.000000e-01 : f32
    %737 = vector.broadcast %cst_209 : f32 to vector<1x32xf32>
    %738 = arith.mulf %737, %736 : vector<1x32xf32>
    %739 = vector.extract_strided_slice %733 {offsets = [0, 32], sizes = [1, 32], strides = [1, 1]} : vector<1x256xf32> to vector<1x32xf32>
    %cst_210 = arith.constant 1.000000e+00 : f32
    %740 = vector.broadcast %cst_210 : f32 to vector<1x32xf32>
    %741 = arith.addf %739, %740 : vector<1x32xf32>
    %cst_211 = arith.constant 5.000000e-01 : f32
    %742 = vector.broadcast %cst_211 : f32 to vector<1x32xf32>
    %743 = arith.mulf %742, %741 : vector<1x32xf32>
    %744 = vector.extract_strided_slice %733 {offsets = [0, 64], sizes = [1, 32], strides = [1, 1]} : vector<1x256xf32> to vector<1x32xf32>
    %745 = vector.extract_strided_slice %733 {offsets = [0, 96], sizes = [1, 32], strides = [1, 1]} : vector<1x256xf32> to vector<1x32xf32>
    %cst_212 = arith.constant 1.000000e+00 : f32
    %746 = vector.broadcast %cst_212 : f32 to vector<1x32xf32>
    %747 = arith.addf %745, %746 : vector<1x32xf32>
    %cst_213 = arith.constant 5.000000e-01 : f32
    %748 = vector.broadcast %cst_213 : f32 to vector<1x32xf32>
    %749 = arith.mulf %748, %747 : vector<1x32xf32>
    %750 = arith.mulf %743, %702 : vector<1x32xf32>
    %751 = arith.mulf %738, %744 : vector<1x32xf32>
    %752 = arith.addf %750, %751 : vector<1x32xf32>
    %753 = math.tanh %752 : vector<1x32xf32>
    %754 = arith.mulf %749, %753 : vector<1x32xf32>
    %755 = vector.extract_strided_slice %733 {offsets = [0, 128], sizes = [1, 32], strides = [1, 1]} : vector<1x256xf32> to vector<1x32xf32>
    %cst_214 = arith.constant 1.000000e+00 : f32
    %756 = vector.broadcast %cst_214 : f32 to vector<1x32xf32>
    %757 = arith.addf %755, %756 : vector<1x32xf32>
    %cst_215 = arith.constant 5.000000e-01 : f32
    %758 = vector.broadcast %cst_215 : f32 to vector<1x32xf32>
    %759 = arith.mulf %758, %757 : vector<1x32xf32>
    %760 = vector.extract_strided_slice %733 {offsets = [0, 160], sizes = [1, 32], strides = [1, 1]} : vector<1x256xf32> to vector<1x32xf32>
    %cst_216 = arith.constant 1.000000e+00 : f32
    %761 = vector.broadcast %cst_216 : f32 to vector<1x32xf32>
    %762 = arith.addf %760, %761 : vector<1x32xf32>
    %cst_217 = arith.constant 5.000000e-01 : f32
    %763 = vector.broadcast %cst_217 : f32 to vector<1x32xf32>
    %764 = arith.mulf %763, %762 : vector<1x32xf32>
    %765 = vector.extract_strided_slice %733 {offsets = [0, 192], sizes = [1, 32], strides = [1, 1]} : vector<1x256xf32> to vector<1x32xf32>
    %766 = vector.extract_strided_slice %733 {offsets = [0, 224], sizes = [1, 32], strides = [1, 1]} : vector<1x256xf32> to vector<1x32xf32>
    %cst_218 = arith.constant 1.000000e+00 : f32
    %767 = vector.broadcast %cst_218 : f32 to vector<1x32xf32>
    %768 = arith.addf %766, %767 : vector<1x32xf32>
    %cst_219 = arith.constant 5.000000e-01 : f32
    %769 = vector.broadcast %cst_219 : f32 to vector<1x32xf32>
    %770 = arith.mulf %769, %768 : vector<1x32xf32>
    %771 = arith.mulf %764, %723 : vector<1x32xf32>
    %772 = arith.mulf %759, %765 : vector<1x32xf32>
    %773 = arith.addf %771, %772 : vector<1x32xf32>
    %774 = math.tanh %773 : vector<1x32xf32>
    %775 = arith.mulf %770, %774 : vector<1x32xf32>
    %776 = tpu.concatenate %754, %775 in 1 : vector<1x32xf32>, vector<1x32xf32> -> vector<1x64xf32>
    %777 = arith.truncf %776 : vector<1x64xf32> to vector<1x64xbf16>
    %cst_220 = arith.constant dense<0.000000e+00> : vector<1x256xf32>
    %778 = tpu.matmul %777, %419, %cst_220 {dimension_numbers = #tpu.dot_dimension_numbers<[1], [0], [0], [1], [0, 0, 1, 1], [], []>} : vector<1x64xbf16>, vector<64x256xbf16>, vector<1x256xf32> -> vector<1x256xf32>
    %779 = vector.extract_strided_slice %424 {offsets = [7, 0], sizes = [1, 128], strides = [1, 1]} : vector<8x256xf32> to vector<1x128xf32>
    %780 = vector.extract_strided_slice %424 {offsets = [0, 128], sizes = [1, 128], strides = [1, 1]} : vector<8x256xf32> to vector<1x128xf32>
    %781 = tpu.concatenate %779, %780 in 1 : vector<1x128xf32>, vector<1x128xf32> -> vector<1x256xf32>
    %782 = arith.addf %778, %781 : vector<1x256xf32>
    %783 = math.tanh %782 : vector<1x256xf32>
    %784 = vector.extract_strided_slice %783 {offsets = [0, 0], sizes = [1, 32], strides = [1, 1]} : vector<1x256xf32> to vector<1x32xf32>
    %cst_221 = arith.constant 1.000000e+00 : f32
    %785 = vector.broadcast %cst_221 : f32 to vector<1x32xf32>
    %786 = arith.addf %784, %785 : vector<1x32xf32>
    %cst_222 = arith.constant 5.000000e-01 : f32
    %787 = vector.broadcast %cst_222 : f32 to vector<1x32xf32>
    %788 = arith.mulf %787, %786 : vector<1x32xf32>
    %789 = vector.extract_strided_slice %783 {offsets = [0, 32], sizes = [1, 32], strides = [1, 1]} : vector<1x256xf32> to vector<1x32xf32>
    %cst_223 = arith.constant 1.000000e+00 : f32
    %790 = vector.broadcast %cst_223 : f32 to vector<1x32xf32>
    %791 = arith.addf %789, %790 : vector<1x32xf32>
    %cst_224 = arith.constant 5.000000e-01 : f32
    %792 = vector.broadcast %cst_224 : f32 to vector<1x32xf32>
    %793 = arith.mulf %792, %791 : vector<1x32xf32>
    %794 = vector.extract_strided_slice %783 {offsets = [0, 64], sizes = [1, 32], strides = [1, 1]} : vector<1x256xf32> to vector<1x32xf32>
    %795 = vector.extract_strided_slice %783 {offsets = [0, 96], sizes = [1, 32], strides = [1, 1]} : vector<1x256xf32> to vector<1x32xf32>
    %cst_225 = arith.constant 1.000000e+00 : f32
    %796 = vector.broadcast %cst_225 : f32 to vector<1x32xf32>
    %797 = arith.addf %795, %796 : vector<1x32xf32>
    %cst_226 = arith.constant 5.000000e-01 : f32
    %798 = vector.broadcast %cst_226 : f32 to vector<1x32xf32>
    %799 = arith.mulf %798, %797 : vector<1x32xf32>
    %800 = arith.mulf %793, %752 : vector<1x32xf32>
    %801 = arith.mulf %788, %794 : vector<1x32xf32>
    %802 = arith.addf %800, %801 : vector<1x32xf32>
    %803 = math.tanh %802 : vector<1x32xf32>
    %804 = arith.mulf %799, %803 : vector<1x32xf32>
    %805 = vector.extract_strided_slice %783 {offsets = [0, 128], sizes = [1, 32], strides = [1, 1]} : vector<1x256xf32> to vector<1x32xf32>
    %cst_227 = arith.constant 1.000000e+00 : f32
    %806 = vector.broadcast %cst_227 : f32 to vector<1x32xf32>
    %807 = arith.addf %805, %806 : vector<1x32xf32>
    %cst_228 = arith.constant 5.000000e-01 : f32
    %808 = vector.broadcast %cst_228 : f32 to vector<1x32xf32>
    %809 = arith.mulf %808, %807 : vector<1x32xf32>
    %810 = vector.extract_strided_slice %783 {offsets = [0, 160], sizes = [1, 32], strides = [1, 1]} : vector<1x256xf32> to vector<1x32xf32>
    %cst_229 = arith.constant 1.000000e+00 : f32
    %811 = vector.broadcast %cst_229 : f32 to vector<1x32xf32>
    %812 = arith.addf %810, %811 : vector<1x32xf32>
    %cst_230 = arith.constant 5.000000e-01 : f32
    %813 = vector.broadcast %cst_230 : f32 to vector<1x32xf32>
    %814 = arith.mulf %813, %812 : vector<1x32xf32>
    %815 = vector.extract_strided_slice %783 {offsets = [0, 192], sizes = [1, 32], strides = [1, 1]} : vector<1x256xf32> to vector<1x32xf32>
    %816 = vector.extract_strided_slice %783 {offsets = [0, 224], sizes = [1, 32], strides = [1, 1]} : vector<1x256xf32> to vector<1x32xf32>
    %cst_231 = arith.constant 1.000000e+00 : f32
    %817 = vector.broadcast %cst_231 : f32 to vector<1x32xf32>
    %818 = arith.addf %816, %817 : vector<1x32xf32>
    %cst_232 = arith.constant 5.000000e-01 : f32
    %819 = vector.broadcast %cst_232 : f32 to vector<1x32xf32>
    %820 = arith.mulf %819, %818 : vector<1x32xf32>
    %821 = arith.mulf %814, %773 : vector<1x32xf32>
    %822 = arith.mulf %809, %815 : vector<1x32xf32>
    %823 = arith.addf %821, %822 : vector<1x32xf32>
    %824 = math.tanh %823 : vector<1x32xf32>
    %825 = arith.mulf %820, %824 : vector<1x32xf32>
    %826 = tpu.concatenate %454, %504, %554, %604, %654, %704, %754, %804 in 0 : vector<1x32xf32>, vector<1x32xf32>, vector<1x32xf32>, vector<1x32xf32>, vector<1x32xf32>, vector<1x32xf32>, vector<1x32xf32>, vector<1x32xf32> -> vector<8x32xf32>
    %827 = tpu.concatenate %825, %775, %725, %675, %625, %575, %525, %475 in 0 : vector<1x32xf32>, vector<1x32xf32>, vector<1x32xf32>, vector<1x32xf32>, vector<1x32xf32>, vector<1x32xf32>, vector<1x32xf32>, vector<1x32xf32> -> vector<8x32xf32>
    %828 = tpu.concatenate %826, %827 in 1 : vector<8x32xf32>, vector<8x32xf32> -> vector<8x64xf32>
    %c2 = arith.constant 2 : index
    %c0_233 = arith.constant 0 : index
    %c0_234 = arith.constant 0 : index
    %829 = vector.load %arg3[%c2, %c0_233, %c0_234] : memref<3x1x256xf32, #tpu.memory_space<vmem>>, vector<1x1x256xf32>
    %830 = vector.shape_cast %829 : vector<1x1x256xf32> to vector<1x256xf32>
    %831 = vector.extract_strided_slice %830 {offsets = [0, 0], sizes = [1, 64], strides = [1, 1]} : vector<1x256xf32> to vector<1x64xf32>
    %832 = vector.extract_strided_slice %830 {offsets = [0, 64], sizes = [1, 1], strides = [1, 1]} : vector<1x256xf32> to vector<1x1xf32>
    %833 = vector.broadcast %831 : vector<1x64xf32> to vector<8x64xf32>
    %834 = arith.mulf %828, %833 : vector<8x64xf32>
    %cst_235 = arith.constant dense<0.000000e+00> : vector<8xf32>
    %835 = vector.multi_reduction <add>, %834, %cst_235 [1] : vector<8x64xf32> to vector<8xf32>
    %836 = vector.shape_cast %835 : vector<8xf32> to vector<8x1xf32>
    %837 = vector.broadcast %832 : vector<1x1xf32> to vector<8x1xf32>
    %838 = arith.addf %836, %837 : vector<8x1xf32>
    %cst_236 = arith.constant 5.000000e-01 : f32
    %839 = vector.broadcast %cst_236 : f32 to vector<8x1xf32>
    %840 = arith.mulf %839, %838 : vector<8x1xf32>
    %841 = math.tanh %840 : vector<8x1xf32>
    %cst_237 = arith.constant 1.000000e+00 : f32
    %842 = vector.broadcast %cst_237 : f32 to vector<8x1xf32>
    %843 = arith.addf %841, %842 : vector<8x1xf32>
    %cst_238 = arith.constant 5.000000e-01 : f32
    %844 = vector.broadcast %cst_238 : f32 to vector<8x1xf32>
    %845 = arith.mulf %844, %843 : vector<8x1xf32>
    %c0_239 = arith.constant 0 : index
    %c0_240 = arith.constant 0 : index
    %846 = vector.load %arg4[%c0_239, %c0_240] : memref<8x1xf32, #tpu.memory_space<vmem>>, vector<8x1xf32>
    tpu.vector_store %arg4[%c0_239, %c0_240], %845 {strides = array<i32>} : memref<8x1xf32, #tpu.memory_space<vmem>>, vector<8x1xf32>,
    return
  }
}

</mosaic_0001>

<bundles_post_ra>
// kernel: lstm_tagger_forward.1
= control target key start
LH: loop header
LB: loop body
LE: loop exit
PB: predicated region body
PF: predicated region fallthrough
CT: control target
= control target key end

     0   :  { %9 = vsyncpa [#allocation3], 0  ;;  %s2248_s15 = smov [#allocation2]   ;;  %s2844_s0 = inlined_call_operand.vmem [shape: f32[8,16], index: 0, kind: input, shape index: {}]   ;;  %s2845_s1 = inlined_call_operand.vmem [shape: bf16[2,64,256], index: 1, kind: input, shape index: {}]   ;;  %s2846_s2 = inlined_call_operand.hbm [shape: bf16[2,64,256], index: 2, kind: input, shape index: {}]   ;;  %s2847_s3 = inlined_call_operand.vmem [shape: f32[3,1,256], index: 3, kind: input, shape index: {}]   ;;  %s2848_s4 = inlined_call_operand.vmem [shape: f32[8,1], index: 4, kind: output, shape index: {}]  }
   0x1   :  { %s19_s16 = sshll.u32 %s2248_s15, 4  ;;  %s20_s16 = int_to_ptr.vmem [resolvable:$true] %s19_s16 }
   0x2   :  { %s2234_s17 = scalar_lea.vmem %s20_s16, 2048  ;;  %p2239_p1 = scmp.lt.s32.totalorder %s20_s16, %s20_s16 }
   0x3   :  { %p2235_p0 = scmp.ne.s32.totalorder %s20_s16, %s2234_s17  ;;  %p2240_p2 = scmp.lt.s32.totalorder %s2234_s17, %s2234_s17 }
   0x5   :  { %p2241_p3 = por %p2240_p2, %p2239_p1 }
   0x7   :  { %p2242_p4 = pnand %p2241_p3, %p2235_p0 }
   0x9   :  { %2245 = shalt.err (!%p2242_p4)
}
   0xa   :  { %s2249_s18 = smov 128   ;;  %s2250_s19 = smov 8  }
   0xb   :  { %25 = dma.hbm_to_vmem [thread:$0]  %s2846_s2, 2048, %s20_s16, [#allocation3], %s2249_s18, %s2249_s18, %s2250_s19  }
   0xc   :  { %2246 = dma.done.wait [#allocation3], 2048  }
   0xd   :  { %2247 = vsyncadd [#allocation3], 4294965248  ;;  %v2251_v0 = vmov 0   ;;  %v2284_v1 = vld [vmem:[#allocation2 + $0x34] ss:$8 sps:$4 sm:$0xff]   ;;  %v32_v7 = vld [vmem:[%s2844_s0] sm:$0xff]  ;;  %v46_v13 = vlaneseq }
   0xe   :  { %102 = vmatprep.mubr.bf16.mxu0 %v2251_v0  ;;  %190 = vmatprep.mubr.bf16.mxu1 %v2251_v0  ;;  %v2286_v2 = vld [vmem:[#allocation2 + $0x30] ss:$8 sps:$4 sm:$0xff]   ;;  %v2060_v3 = vld [vmem:[%s2845_s1 + $0x4] ss:$8 sps:$4 sm:$0xff]   ;;  %v2064_v5 = vld [vmem:[%s2845_s1] ss:$8 sps:$4 sm:$0xff]   ;;  %v33_v8 = vpack.c.bf16 %v32_v7, %v32_v7 }
   0xf   :  { %166 = vmatprep.subr.bf16.mxu1 %v2284_v1  ;;  %v2293_v4 = vld [vmem:[#allocation2 + $0x24] ss:$8 sps:$4 sm:$0xff]   ;;  %v2298_v6 = vld [vmem:[#allocation2 + $0x20] ss:$8 sps:$4 sm:$0xff]   ;;  %84 = vmatprep.subr.bf16.mxu0 %v2060_v3  ;;  %vm66_vm0 = vcmask 130048   ;;  %v2338_v14 = vshrl.u32 %v46_v13, 7 }
  0x10   :  { %167 = vmatpush1.bf16.msra.mxu1 %v2286_v2  ;;  %85 = vmatpush1.bf16.msra.mxu0 %v2064_v5  ;;  %v2304_v9 = vld [vmem:[#allocation2 + $0x14] ss:$8 sps:$4 sm:$0xff]   ;;  %v2306_v10 = vld [vmem:[#allocation2 + $0x10] ss:$8 sps:$4 sm:$0xff]   ;;  %v2310_v11 = vld [vmem:[#allocation2 + $0x4] ss:$8 sps:$4 sm:$0xff]  }
  0x11   :  { %168 = vmatprep.subr.bf16.mxu1 %v2293_v4  ;;  %267 = vmatprep.subr.bf16.mxu0 %v2284_v1  ;;  %v2313_v12 = vld [vmem:[#allocation2] ss:$8 sps:$4 sm:$0xff]   ;;  %v52_v15 = vsub.s32 1, %v2338_v14  ;;  %v2345_v17 = vsub.s32 0, %v2338_v14  ;;  %s2252_s28 = smov 64   ;;  %s2253_s29 = smov 32  }
  0x12   :  { %v44_v16 = vld [vmem:[%s2847_s3] sm:$0x3]  ;;  %vm247_vm1 = vcmask 261120   ;;  %vm154_vm2 = vcmask 523264   ;;  %vm945_vm3 = vcmask 1040384   ;;  %vm947_vm4 = vcmask 1041408  }
  0x13   :  { %2001 = vmatmul.mubr.msk.bf16.vlgmr.msra.gmra.mxu0 %vm66_vm0, %v33_v8  ;;  %v53_v19 = vrot.slane %v44_v16, %v52_v15  ;;  %v49_v21 = vrot.slane %v44_v16, %v2345_v17  ;;  %vm949_vm5 = vcmask 1042432   ;;  %vm951_vm6 = vcmask 1043456  }
  0x14   :  { %169 = vmatpush1.bf16.msra.mxu1 %v2298_v6  ;;  %268 = vmatpush1.bf16.msra.mxu0 %v2286_v2  ;;  %vm953_vm7 = vcmask 1044480   ;;  %vm955_vm8 = vcmask 1045504   ;;  %vm957_vm9 = vcmask 1046528   ;;  %vm1992_vm10 = vcmask 7168  }
  0x15   :  { %170 = vmatprep.subr.bf16.mxu1 %v2304_v9  ;;  %291 = vmatprep.mubr.bf16.mxu0 %v2251_v0 }
  0x16   :  { %269 = vmatprep.subr.bf16.mxu0 %v2293_v4 }
  0x18   :  { %171 = vmatpush1.bf16.msra.mxu1 %v2306_v10  ;;  %270 = vmatpush1.bf16.msra.mxu0 %v2298_v6 }
  0x19   :  { %172 = vmatprep.subr.bf16.mxu1 %v2310_v11  ;;  %271 = vmatprep.subr.bf16.mxu0 %v2304_v9 }
  0x1c   :  { %173 = vmatpush1.bf16.msra.mxu1 %v2313_v12  ;;  %272 = vmatpush1.bf16.msra.mxu0 %v2306_v10 }
  0x1d   :  { %366 = vmatprep.subr.bf16.mxu1 %v2284_v1  ;;  %273 = vmatprep.subr.bf16.mxu0 %v2310_v11 }
  0x1f   :  { %191 = vmatmul.mubr.bf16.vlgmr.msra.gmra.mxu1 %v2251_v0 }
  0x20   :  { %367 = vmatpush1.bf16.msra.mxu1 %v2286_v2  ;;  %390 = vmatprep.mubr.bf16.mxu1 %v2251_v0 }
  0x21   :  { %368 = vmatprep.subr.bf16.mxu1 %v2293_v4  ;;  %274 = vmatpush1.bf16.msra.mxu0 %v2313_v12 }
  0x22   :  { %465 = vmatprep.subr.bf16.mxu0 %v2284_v1 }
  0x24   :  { %369 = vmatpush1.bf16.msra.mxu1 %v2298_v6 }
  0x25   :  { %370 = vmatprep.subr.bf16.mxu1 %v2304_v9 }
  0x28   :  { %371 = vmatpush1.bf16.msra.mxu1 %v2306_v10 }
  0x29   :  { %372 = vmatprep.subr.bf16.mxu1 %v2310_v11 }
  0x2c   :  { %373 = vmatpush1.bf16.msra.mxu1 %v2313_v12 }
  0x2d   :  { %563 = vmatprep.subr.bf16.mxu1 %v2284_v1 }
  0xd3   :  { %v104_v18 = vpop.f32.mrf.mxu0 }
  0xd4   :  { %v2352_v25 = vadd.f32 %v104_v18, %v49_v21 }
  0xd5   :  { %v106_v20 = vpop.f32.mrf.mxu0 }
  0xd6   :  { %v2350_v23 = vadd.f32 %v106_v20, %v53_v19  ;;  %v252_v60 = vrot.slane %v2352_v25, 1 }
  0xd7   :  { %v108_v22 = vpop.f32.mrf.mxu0 }
  0xd8   :  { %v112_v26 = vrot.slane %v2350_v23, 7  ;;  %v250_v59 = vrot.slane %v2350_v23, 5 }
  0xd9   :  { %v109_v24 = vpop.f32.mrf.mxu0 }
  0xda   :  { %v253_v63 = vrot.slane %v250_v59, 1 }
  0xdf   :  { %v192_v27 = vpop.f32.mrf.mxu1 }
  0xe0   :  { %v193_v28 = vadd.f32 %v192_v27, %v2352_v25 }
  0xe1   :  { %v194_v29 = vpop.f32.mrf.mxu1 }
  0xe2   :  { %2096 = vtanh.f32 %v193_v28  ;;  %v195_v30 = vadd.f32 %v194_v29, %v112_v26 }
  0xe3   :  { %v196_v31 = vpop.f32.mrf.mxu1 }
  0xe4   :  { %2098 = vtanh.f32 %v195_v30 }
  0xe5   :  { %v197_v32 = vpop.f32.mrf.mxu1 }
  0xef   :  { %v2097_v33 = vpop.eup %2096 }
  0xf0   :  { %205 = vrot.lane.b32.xlu0 %v2097_v33, %s2252_s28  ;;  %v201_v35 = vadd.f32 1.0, %v2097_v33 }
  0xf1   :  { %v2099_v34 = vpop.eup %2098 }
  0xf2   :  { %v202_v36 = vmul.f32 0.5, %v201_v35  ;;  %v220_v37 = vadd.f32 1.0, %v2099_v34 }
  0xf4   :  { %224 = vrot.lane.b32.xlu0 %v2099_v34, %s2252_s28  ;;  %v221_v40 = vmul.f32 0.5, %v220_v37  ;;  %v203_v43 = vmul.f32 0.0, %v202_v36 }
  0xf6   :  { %v222_v46 = vmul.f32 0.0, %v221_v40 }
 0x162   :  { %v206_v38 = vpop.permute.xlu0 %205 }
 0x163   :  { %v208_v39 = vmul.f32 %v206_v38, %v202_v36 }
 0x165   :  { %210 = vrot.lane.b32.xlu1 %v208_v39, %s2253_s29 }
 0x166   :  { %v225_v41 = vpop.permute.xlu0 %224 }
 0x167   :  { %v227_v42 = vmul.f32 %v225_v41, %v221_v40 }
 0x169   :  { %229 = vrot.lane.b32.xlu1 %v227_v42, %s2253_s29 }
 0x1d7   :  { %v211_v44 = vpop.permute.xlu1 %210 }
 0x1d8   :  { %v213_v45 = vadd.f32 %v211_v44, %v203_v43 }
 0x1da   :  { %2100 = vtanh.f32 %v213_v45 }
 0x1db   :  { %v230_v47 = vpop.permute.xlu1 %229 }
 0x1dc   :  { %v232_v48 = vadd.f32 %v230_v47, %v222_v46  ;;  %v351_v46 = vrot.slane %v2352_v25, 2 }
 0x1de   :  { %2102 = vtanh.f32 %v232_v48 }
 0x1e7   :  { %v2101_v49 = vpop.eup %2100 }
 0x1e8   :  { %216 = vrot.lane.b32.xlu0 %v2101_v49, %s2252_s28 }
 0x1eb   :  { %v2103_v50 = vpop.eup %2102 }
 0x1ec   :  { %235 = vrot.lane.b32.xlu1 %v2103_v50, %s2252_s28 }
 0x25a   :  { %v217_v51 = vpop.permute.xlu0 %216 }
 0x25b   :  { %v2364_v52 = vmul.f32 %v217_v51, %v202_v36 }
 0x25d   :  { %240 = vrot.lane.b32.xlu0 %v2364_v52, %s2253_s29 }
 0x25e   :  { %v236_v53 = vpop.permute.xlu1 %235 }
 0x25f   :  { %v2368_v54 = vmul.f32 %v236_v53, %v221_v40 }
 0x261   :  { %244 = vrot.lane.b32.xlu1 %v2368_v54, %s2252_s28 }
 0x2cf   :  { %v241_v55 = vpop.permute.xlu0 %240 }
 0x2d3   :  { %v245_v56 = vpop.permute.xlu1 %244 }
 0x2d4   :  { %v248_v57 = vsel %vm247_vm1, %v241_v55, %v245_v56 }
 0x2d5   :  { %v249_v58 = vpack.c.bf16 %v248_v57, %v248_v57 }
 0x2d7   :  { %2010 = vmatmul.mubr.msk.bf16.vlgmr.msra.gmra.mxu0 %vm154_vm2, %v249_v58 }
 0x2d8   :  { %466 = vmatpush1.bf16.msra.mxu0 %v2286_v2  ;;  %489 = vmatprep.mubr.bf16.mxu0 %v2251_v0 }
 0x2d9   :  { %467 = vmatprep.subr.bf16.mxu0 %v2293_v4 }
 0x2dc   :  { %468 = vmatpush1.bf16.msra.mxu0 %v2298_v6 }
 0x2dd   :  { %469 = vmatprep.subr.bf16.mxu0 %v2304_v9 }
 0x2e0   :  { %470 = vmatpush1.bf16.msra.mxu0 %v2306_v10 }
 0x2e1   :  { %471 = vmatprep.subr.bf16.mxu0 %v2310_v11 }
 0x2e4   :  { %472 = vmatpush1.bf16.msra.mxu0 %v2313_v12 }
 0x2e5   :  { %661 = vmatprep.subr.bf16.mxu0 %v2284_v1 }
 0x397   :  { %v293_v61 = vpop.f32.mrf.mxu0 }
 0x398   :  { %v294_v62 = vadd.f32 %v293_v61, %v252_v60 }
 0x399   :  { %v295_v3 = vpop.f32.mrf.mxu0 }
 0x39a   :  { %2104 = vtanh.f32 %v294_v62  ;;  %v296_v5 = vadd.f32 %v295_v3, %v253_v63 }
 0x39b   :  { %v297_v7 = vpop.f32.mrf.mxu0 }
 0x39c   :  { %2106 = vtanh.f32 %v296_v5 }
 0x39d   :  { %v298_v8 = vpop.f32.mrf.mxu0 }
 0x3a7   :  { %v2105_v13 = vpop.eup %2104 }
 0x3a8   :  { %306 = vrot.lane.b32.xlu0 %v2105_v13, %s2252_s28  ;;  %v302_v18 = vadd.f32 1.0, %v2105_v13 }
 0x3a9   :  { %v2107_v16 = vpop.eup %2106 }
 0x3aa   :  { %325 = vrot.lane.b32.xlu1 %v2107_v16, %s2252_s28  ;;  %v321_v19 = vadd.f32 1.0, %v2107_v16  ;;  %v303_v20 = vmul.f32 0.5, %v302_v18 }
 0x3ac   :  { %v322_v24 = vmul.f32 0.5, %v321_v19  ;;  %v304_v29 = vmul.f32 %v303_v20, %v213_v45  ;;  %v350_v45 = vrot.slane %v2350_v23, 3 }
 0x3ae   :  { %v323_v32 = vmul.f32 %v322_v24, %v232_v48  ;;  %v352_v49 = vrot.slane %v350_v45, 2 }
 0x41a   :  { %v307_v21 = vpop.permute.xlu0 %306 }
 0x41b   :  { %v309_v22 = vmul.f32 %v307_v21, %v303_v20 }
 0x41c   :  { %v326_v27 = vpop.permute.xlu1 %325 }
 0x41d   :  { %v328_v28 = vmul.f32 %v326_v27, %v322_v24  ;;  %311 = vrot.lane.b32.xlu0 %v309_v22, %s2253_s29 }
 0x41f   :  { %330 = vrot.lane.b32.xlu1 %v328_v28, %s2253_s29 }
 0x48f   :  { %v312_v30 = vpop.permute.xlu0 %311 }
 0x490   :  { %v314_v31 = vadd.f32 %v312_v30, %v304_v29 }
 0x491   :  { %v331_v33 = vpop.permute.xlu1 %330 }
 0x492   :  { %2108 = vtanh.f32 %v314_v31  ;;  %v333_v34 = vadd.f32 %v331_v33, %v323_v32 }
 0x494   :  { %2110 = vtanh.f32 %v333_v34 }
 0x49f   :  { %v2109_v35 = vpop.eup %2108 }
 0x4a0   :  { %317 = vrot.lane.b32.xlu0 %v2109_v35, %s2252_s28 }
 0x4a1   :  { %v2111_v36 = vpop.eup %2110 }
 0x4a2   :  { %336 = vrot.lane.b32.xlu1 %v2111_v36, %s2252_s28 }
 0x512   :  { %v318_v37 = vpop.permute.xlu0 %317 }
 0x513   :  { %v2393_v38 = vmul.f32 %v318_v37, %v303_v20 }
 0x514   :  { %v337_v39 = vpop.permute.xlu1 %336 }
 0x515   :  { %v2395_v40 = vmul.f32 %v337_v39, %v322_v24  ;;  %341 = vrot.lane.b32.xlu0 %v2393_v38, %s2253_s29  ;;  %v930_v24 = vrot.slane %v2393_v38, 7  ;;  %v450_v38 = vrot.slane %v2352_v25, 3 }
 0x517   :  { %345 = vrot.lane.b32.xlu1 %v2395_v40, %s2252_s28  ;;  %v946_v32 = vsel %vm945_vm3, %v2364_v52, %v930_v24  ;;  %v449_v52 = vrot.slane %v2350_v23, 1 }
 0x587   :  { %v342_v41 = vpop.permute.xlu0 %341 }
 0x589   :  { %v346_v42 = vpop.permute.xlu1 %345 }
 0x58a   :  { %v348_v43 = vsel %vm247_vm1, %v342_v41, %v346_v42  ;;  %v451_v42 = vrot.slane %v449_v52, 3 }
 0x58b   :  { %v349_v44 = vpack.c.bf16 %v348_v43, %v348_v43 }
 0x58d   :  { %2011 = vmatmul.mubr.msk.bf16.vlgmr.msra.gmra.mxu1 %vm154_vm2, %v349_v44 }
 0x58e   :  { %564 = vmatpush1.bf16.msra.mxu1 %v2286_v2  ;;  %587 = vmatprep.mubr.bf16.mxu1 %v2251_v0 }
 0x58f   :  { %565 = vmatprep.subr.bf16.mxu1 %v2293_v4 }
 0x592   :  { %566 = vmatpush1.bf16.msra.mxu1 %v2298_v6 }
 0x593   :  { %567 = vmatprep.subr.bf16.mxu1 %v2304_v9 }
 0x596   :  { %568 = vmatpush1.bf16.msra.mxu1 %v2306_v10 }
 0x597   :  { %569 = vmatprep.subr.bf16.mxu1 %v2310_v11 }
 0x59a   :  { %570 = vmatpush1.bf16.msra.mxu1 %v2313_v12 }
 0x59b   :  { %759 = vmatprep.subr.bf16.mxu1 %v2284_v1 }
 0x64d   :  { %v392_v47 = vpop.f32.mrf.mxu1 }
 0x64e   :  { %v393_v48 = vadd.f32 %v392_v47, %v351_v46 }
 0x64f   :  { %v394_v50 = vpop.f32.mrf.mxu1 }
 0x650   :  { %2112 = vtanh.f32 %v393_v48  ;;  %v395_v51 = vadd.f32 %v394_v50, %v352_v49 }
 0x651   :  { %v396_v53 = vpop.f32.mrf.mxu1 }
 0x652   :  { %2114 = vtanh.f32 %v395_v51 }
 0x653   :  { %v397_v55 = vpop.f32.mrf.mxu1 }
 0x65d   :  { %v2113_v56 = vpop.eup %2112 }
 0x65e   :  { %405 = vrot.lane.b32.xlu0 %v2113_v56, %s2252_s28  ;;  %v401_v58 = vadd.f32 1.0, %v2113_v56 }
 0x65f   :  { %v2115_v57 = vpop.eup %2114 }
 0x660   :  { %424 = vrot.lane.b32.xlu1 %v2115_v57, %s2252_s28  ;;  %v420_v60 = vadd.f32 1.0, %v2115_v57  ;;  %v402_v61 = vmul.f32 0.5, %v401_v58 }
 0x662   :  { %v421_v3 = vmul.f32 0.5, %v420_v60  ;;  %v403_v8 = vmul.f32 %v402_v61, %v314_v31 }
 0x664   :  { %v422_v18 = vmul.f32 %v421_v3, %v333_v34 }
 0x6d0   :  { %v406_v62 = vpop.permute.xlu0 %405 }
 0x6d1   :  { %v408_v63 = vmul.f32 %v406_v62, %v402_v61 }
 0x6d2   :  { %v425_v5 = vpop.permute.xlu1 %424 }
 0x6d3   :  { %v427_v7 = vmul.f32 %v425_v5, %v421_v3  ;;  %410 = vrot.lane.b32.xlu0 %v408_v63, %s2253_s29 }
 0x6d5   :  { %429 = vrot.lane.b32.xlu1 %v427_v7, %s2253_s29 }
 0x745   :  { %v411_v13 = vpop.permute.xlu0 %410 }
 0x746   :  { %v413_v16 = vadd.f32 %v411_v13, %v403_v8 }
 0x747   :  { %v430_v19 = vpop.permute.xlu1 %429 }
 0x748   :  { %2116 = vtanh.f32 %v413_v16  ;;  %v432_v20 = vadd.f32 %v430_v19, %v422_v18 }
 0x74a   :  { %2118 = vtanh.f32 %v432_v20 }
 0x755   :  { %v2117_v21 = vpop.eup %2116 }
 0x756   :  { %416 = vrot.lane.b32.xlu0 %v2117_v21, %s2252_s28 }
 0x757   :  { %v2119_v22 = vpop.eup %2118 }
 0x758   :  { %435 = vrot.lane.b32.xlu1 %v2119_v22, %s2252_s28 }
 0x7c8   :  { %v417_v27 = vpop.permute.xlu0 %416 }
 0x7c9   :  { %v419_v28 = vmul.f32 %v417_v27, %v402_v61 }
 0x7ca   :  { %v436_v29 = vpop.permute.xlu1 %435 }
 0x7cb   :  { %v932_v30 = vrot.slane %v419_v28, 6  ;;  %v2423_v31 = vmul.f32 %v436_v29, %v421_v3  ;;  %440 = vrot.lane.b32.xlu0 %v419_v28, %s2253_s29  ;;  %v548_v29 = vrot.slane %v2352_v25, 4 }
 0x7cd   :  { %v948_v33 = vsel %vm947_vm4, %v946_v32, %v932_v30  ;;  %444 = vrot.lane.b32.xlu1 %v2423_v31, %s2252_s28 }
 0x83d   :  { %v441_v34 = vpop.permute.xlu0 %440 }
 0x83f   :  { %v445_v35 = vpop.permute.xlu1 %444 }
 0x840   :  { %v447_v36 = vsel %vm247_vm1, %v441_v34, %v445_v35 }
 0x841   :  { %v448_v37 = vpack.c.bf16 %v447_v36, %v447_v36 }
 0x843   :  { %2012 = vmatmul.mubr.msk.bf16.vlgmr.msra.gmra.mxu0 %vm154_vm2, %v448_v37 }
 0x844   :  { %662 = vmatpush1.bf16.msra.mxu0 %v2286_v2  ;;  %685 = vmatprep.mubr.bf16.mxu0 %v2251_v0 }
 0x845   :  { %663 = vmatprep.subr.bf16.mxu0 %v2293_v4 }
 0x848   :  { %664 = vmatpush1.bf16.msra.mxu0 %v2298_v6 }
 0x849   :  { %665 = vmatprep.subr.bf16.mxu0 %v2304_v9 }
 0x84c   :  { %666 = vmatpush1.bf16.msra.mxu0 %v2306_v10 }
 0x84d   :  { %667 = vmatprep.subr.bf16.mxu0 %v2310_v11 }
 0x850   :  { %668 = vmatpush1.bf16.msra.mxu0 %v2313_v12 }
 0x851   :  { %857 = vmatprep.subr.bf16.mxu0 %v2284_v1 }
 0x903   :  { %v491_v39 = vpop.f32.mrf.mxu0 }
 0x904   :  { %v492_v41 = vadd.f32 %v491_v39, %v450_v38 }
 0x905   :  { %v493_v43 = vpop.f32.mrf.mxu0 }
 0x906   :  { %2120 = vtanh.f32 %v492_v41  ;;  %v494_v44 = vadd.f32 %v493_v43, %v451_v42 }
 0x907   :  { %v495_v46 = vpop.f32.mrf.mxu0 }
 0x908   :  { %2122 = vtanh.f32 %v494_v44 }
 0x909   :  { %v496_v47 = vpop.f32.mrf.mxu0 }
 0x913   :  { %v2121_v48 = vpop.eup %2120 }
 0x914   :  { %504 = vrot.lane.b32.xlu0 %v2121_v48, %s2252_s28  ;;  %v500_v1 = vadd.f32 1.0, %v2121_v48 }
 0x915   :  { %v2123_v49 = vpop.eup %2122 }
 0x916   :  { %523 = vrot.lane.b32.xlu1 %v2123_v49, %s2252_s28  ;;  %v519_v50 = vadd.f32 1.0, %v2123_v49  ;;  %v501_v51 = vmul.f32 0.5, %v500_v1 }
 0x918   :  { %v520_v56 = vmul.f32 0.5, %v519_v50  ;;  %v502_v60 = vmul.f32 %v501_v51, %v413_v16 }
 0x91a   :  { %v521_v63 = vmul.f32 %v520_v56, %v432_v20 }
 0x986   :  { %v505_v53 = vpop.permute.xlu0 %504 }
 0x987   :  { %v507_v55 = vmul.f32 %v505_v53, %v501_v51 }
 0x988   :  { %v524_v57 = vpop.permute.xlu1 %523 }
 0x989   :  { %v526_v58 = vmul.f32 %v524_v57, %v520_v56  ;;  %509 = vrot.lane.b32.xlu0 %v507_v55, %s2253_s29 }
 0x98b   :  { %528 = vrot.lane.b32.xlu1 %v526_v58, %s2253_s29 }
 0x9fb   :  { %v510_v61 = vpop.permute.xlu0 %509 }
 0x9fc   :  { %v512_v62 = vadd.f32 %v510_v61, %v502_v60 }
 0x9fd   :  { %v529_v3 = vpop.permute.xlu1 %528 }
 0x9fe   :  { %2124 = vtanh.f32 %v512_v62  ;;  %v531_v5 = vadd.f32 %v529_v3, %v521_v63 }
 0xa00   :  { %2126 = vtanh.f32 %v531_v5 }
 0xa0b   :  { %v2125_v7 = vpop.eup %2124 }
 0xa0c   :  { %515 = vrot.lane.b32.xlu0 %v2125_v7, %s2252_s28 }
 0xa0d   :  { %v2127_v8 = vpop.eup %2126 }
 0xa0e   :  { %534 = vrot.lane.b32.xlu1 %v2127_v8, %s2252_s28 }
 0xa7e   :  { %v516_v13 = vpop.permute.xlu0 %515 }
 0xa7f   :  { %v518_v18 = vmul.f32 %v516_v13, %v501_v51 }
 0xa80   :  { %v535_v19 = vpop.permute.xlu1 %534 }
 0xa81   :  { %v934_v21 = vrot.slane %v518_v18, 5  ;;  %v2452_v22 = vmul.f32 %v535_v19, %v520_v56  ;;  %539 = vrot.lane.b32.xlu0 %v518_v18, %s2253_s29  ;;  %v646_v18 = vrot.slane %v2352_v25, 5 }
 0xa83   :  { %v950_v16 = vsel %vm949_vm5, %v948_v33, %v934_v21  ;;  %543 = vrot.lane.b32.xlu1 %v2452_v22, %s2252_s28  ;;  %v549_v33 = vrot.slane %v112_v26, 4 }
 0xaf3   :  { %v540_v20 = vpop.permute.xlu0 %539 }
 0xaf5   :  { %v544_v24 = vpop.permute.xlu1 %543 }
 0xaf6   :  { %v546_v27 = vsel %vm247_vm1, %v540_v20, %v544_v24 }
 0xaf7   :  { %v547_v28 = vpack.c.bf16 %v546_v27, %v546_v27 }
 0xaf9   :  { %2013 = vmatmul.mubr.msk.bf16.vlgmr.msra.gmra.mxu1 %vm154_vm2, %v547_v28 }
 0xafa   :  { %760 = vmatpush1.bf16.msra.mxu1 %v2286_v2  ;;  %783 = vmatprep.mubr.bf16.mxu1 %v2251_v0 }
 0xafb   :  { %761 = vmatprep.subr.bf16.mxu1 %v2293_v4 }
 0xafe   :  { %762 = vmatpush1.bf16.msra.mxu1 %v2298_v6 }
 0xaff   :  { %763 = vmatprep.subr.bf16.mxu1 %v2304_v9 }
 0xb02   :  { %764 = vmatpush1.bf16.msra.mxu1 %v2306_v10 }
 0xb03   :  { %765 = vmatprep.subr.bf16.mxu1 %v2310_v11 }
 0xb06   :  { %766 = vmatpush1.bf16.msra.mxu1 %v2313_v12 }
 0xbb9   :  { %v589_v30 = vpop.f32.mrf.mxu1 }
 0xbba   :  { %v590_v32 = vadd.f32 %v589_v30, %v548_v29 }
 0xbbb   :  { %v591_v34 = vpop.f32.mrf.mxu1 }
 0xbbc   :  { %2128 = vtanh.f32 %v590_v32  ;;  %v592_v35 = vadd.f32 %v591_v34, %v549_v33 }
 0xbbd   :  { %v593_v36 = vpop.f32.mrf.mxu1 }
 0xbbe   :  { %2130 = vtanh.f32 %v592_v35 }
 0xbbf   :  { %v594_v37 = vpop.f32.mrf.mxu1 }
 0xbc9   :  { %v2129_v38 = vpop.eup %2128 }
 0xbca   :  { %602 = vrot.lane.b32.xlu0 %v2129_v38, %s2252_s28  ;;  %v598_v41 = vadd.f32 1.0, %v2129_v38 }
 0xbcb   :  { %v2131_v39 = vpop.eup %2130 }
 0xbcc   :  { %621 = vrot.lane.b32.xlu1 %v2131_v39, %s2252_s28  ;;  %v617_v42 = vadd.f32 1.0, %v2131_v39  ;;  %v599_v43 = vmul.f32 0.5, %v598_v41 }
 0xbce   :  { %v618_v47 = vmul.f32 0.5, %v617_v42  ;;  %v600_v49 = vmul.f32 %v599_v43, %v512_v62 }
 0xbd0   :  { %v619_v51 = vmul.f32 %v618_v47, %v531_v5 }
 0xc3c   :  { %v603_v44 = vpop.permute.xlu0 %602 }
 0xc3d   :  { %v605_v46 = vmul.f32 %v603_v44, %v599_v43 }
 0xc3e   :  { %v622_v48 = vpop.permute.xlu1 %621 }
 0xc3f   :  { %v624_v26 = vmul.f32 %v622_v48, %v618_v47  ;;  %607 = vrot.lane.b32.xlu0 %v605_v46, %s2253_s29 }
 0xc41   :  { %626 = vrot.lane.b32.xlu1 %v624_v26, %s2253_s29 }
 0xcb1   :  { %v608_v1 = vpop.permute.xlu0 %607 }
 0xcb2   :  { %v610_v50 = vadd.f32 %v608_v1, %v600_v49 }
 0xcb3   :  { %v627_v53 = vpop.permute.xlu1 %626 }
 0xcb4   :  { %2132 = vtanh.f32 %v610_v50  ;;  %v629_v55 = vadd.f32 %v627_v53, %v619_v51 }
 0xcb6   :  { %2134 = vtanh.f32 %v629_v55 }
 0xcc1   :  { %v2133_v56 = vpop.eup %2132 }
 0xcc2   :  { %613 = vrot.lane.b32.xlu0 %v2133_v56, %s2252_s28 }
 0xcc3   :  { %v2135_v57 = vpop.eup %2134 }
 0xcc4   :  { %632 = vrot.lane.b32.xlu1 %v2135_v57, %s2252_s28 }
 0xd34   :  { %v614_v58 = vpop.permute.xlu0 %613 }
 0xd35   :  { %v616_v60 = vmul.f32 %v614_v58, %v599_v43 }
 0xd36   :  { %v633_v61 = vpop.permute.xlu1 %632 }
 0xd37   :  { %v936_v63 = vrot.slane %v616_v60, 4  ;;  %v2477_v3 = vmul.f32 %v633_v61, %v618_v47  ;;  %637 = vrot.lane.b32.xlu0 %v616_v60, %s2253_s29 }
 0xd39   :  { %v952_v62 = vsel %vm951_vm6, %v950_v16, %v936_v63  ;;  %641 = vrot.lane.b32.xlu1 %v2477_v3, %s2252_s28 }
 0xda9   :  { %v638_v5 = vpop.permute.xlu0 %637 }
 0xdab   :  { %v642_v7 = vpop.permute.xlu1 %641 }
 0xdac   :  { %v644_v8 = vsel %vm247_vm1, %v638_v5, %v642_v7 }
 0xdad   :  { %v645_v13 = vpack.c.bf16 %v644_v8, %v644_v8 }
 0xdaf   :  { %2014 = vmatmul.mubr.msk.bf16.vlgmr.msra.gmra.mxu0 %vm154_vm2, %v645_v13 }
 0xdb0   :  { %858 = vmatpush1.bf16.msra.mxu0 %v2286_v2  ;;  %881 = vmatprep.mubr.bf16.mxu0 %v2251_v0  ;;  %v647_v2 = vrot.slane %v250_v59, 5 }
 0xdb1   :  { %859 = vmatprep.subr.bf16.mxu0 %v2293_v4 }
 0xdb4   :  { %860 = vmatpush1.bf16.msra.mxu0 %v2298_v6 }
 0xdb5   :  { %861 = vmatprep.subr.bf16.mxu0 %v2304_v9 }
 0xdb8   :  { %862 = vmatpush1.bf16.msra.mxu0 %v2306_v10 }
 0xdb9   :  { %863 = vmatprep.subr.bf16.mxu0 %v2310_v11 }
 0xdbc   :  { %864 = vmatpush1.bf16.msra.mxu0 %v2313_v12 }
 0xe6f   :  { %v687_v19 = vpop.f32.mrf.mxu0 }
 0xe70   :  { %v688_v21 = vadd.f32 %v687_v19, %v646_v18 }
 0xe71   :  { %v689_v16 = vpop.f32.mrf.mxu0 }
 0xe72   :  { %2136 = vtanh.f32 %v688_v21  ;;  %v690_v4 = vadd.f32 %v689_v16, %v647_v2 }
 0xe73   :  { %v691_v20 = vpop.f32.mrf.mxu0 }
 0xe74   :  { %2138 = vtanh.f32 %v690_v4 }
 0xe75   :  { %v692_v6 = vpop.f32.mrf.mxu0 }
 0xe7f   :  { %v2137_v9 = vpop.eup %2136 }
 0xe80   :  { %700 = vrot.lane.b32.xlu0 %v2137_v9, %s2252_s28  ;;  %v696_v11 = vadd.f32 1.0, %v2137_v9 }
 0xe81   :  { %v2139_v10 = vpop.eup %2138 }
 0xe82   :  { %719 = vrot.lane.b32.xlu1 %v2139_v10, %s2252_s28  ;;  %v715_v12 = vadd.f32 1.0, %v2139_v10  ;;  %v697_v24 = vmul.f32 0.5, %v696_v11 }
 0xe84   :  { %v716_v29 = vmul.f32 0.5, %v715_v12  ;;  %v698_v32 = vmul.f32 %v697_v24, %v610_v50  ;;  %v744_v50 = vrot.slane %v2352_v25, 6 }
 0xe86   :  { %v717_v35 = vmul.f32 %v716_v29, %v629_v55  ;;  %v745_v55 = vrot.slane %v350_v45, 6 }
 0xef2   :  { %v701_v27 = vpop.permute.xlu0 %700 }
 0xef3   :  { %v703_v28 = vmul.f32 %v701_v27, %v697_v24 }
 0xef4   :  { %v720_v30 = vpop.permute.xlu1 %719 }
 0xef5   :  { %v722_v59 = vmul.f32 %v720_v30, %v716_v29  ;;  %705 = vrot.lane.b32.xlu0 %v703_v28, %s2253_s29 }
 0xef7   :  { %724 = vrot.lane.b32.xlu1 %v722_v59, %s2253_s29 }
 0xf67   :  { %v706_v33 = vpop.permute.xlu0 %705 }
 0xf68   :  { %v708_v34 = vadd.f32 %v706_v33, %v698_v32 }
 0xf69   :  { %v725_v36 = vpop.permute.xlu1 %724 }
 0xf6a   :  { %2140 = vtanh.f32 %v708_v34  ;;  %v727_v37 = vadd.f32 %v725_v36, %v717_v35 }
 0xf6c   :  { %2142 = vtanh.f32 %v727_v37 }
 0xf77   :  { %v2141_v38 = vpop.eup %2140 }
 0xf78   :  { %711 = vrot.lane.b32.xlu0 %v2141_v38, %s2252_s28 }
 0xf79   :  { %v2143_v39 = vpop.eup %2142 }
 0xf7a   :  { %730 = vrot.lane.b32.xlu1 %v2143_v39, %s2252_s28 }
 0xfea   :  { %v712_v41 = vpop.permute.xlu0 %711 }
 0xfeb   :  { %v714_v42 = vmul.f32 %v712_v41, %v697_v24 }
 0xfec   :  { %v731_v43 = vpop.permute.xlu1 %730 }
 0xfed   :  { %v938_v44 = vrot.slane %v714_v42, 3  ;;  %v2502_v46 = vmul.f32 %v731_v43, %v716_v29  ;;  %735 = vrot.lane.b32.xlu0 %v714_v42, %s2253_s29 }
 0xfef   :  { %739 = vrot.lane.b32.xlu1 %v2502_v46, %s2252_s28  ;;  %v954_v47 = vsel %vm953_vm7, %v952_v62, %v938_v44 }
0x105f   :  { %v736_v48 = vpop.permute.xlu0 %735 }
0x1061   :  { %v740_v26 = vpop.permute.xlu1 %739 }
0x1062   :  { %v742_v49 = vsel %vm247_vm1, %v736_v48, %v740_v26 }
0x1063   :  { %v743_v1 = vpack.c.bf16 %v742_v49, %v742_v49 }
0x1065   :  { %2015 = vmatmul.mubr.msk.bf16.vlgmr.msra.gmra.mxu1 %vm154_vm2, %v743_v1 }
0x1066   :  { %1096 = vmatprep.mubr.bf16.mxu1 %v2251_v0 }
0x1125   :  { %v785_v51 = vpop.f32.mrf.mxu1 }
0x1126   :  { %v786_v53 = vadd.f32 %v785_v51, %v744_v50 }
0x1127   :  { %v787_v56 = vpop.f32.mrf.mxu1 }
0x1128   :  { %2144 = vtanh.f32 %v786_v53  ;;  %v788_v57 = vadd.f32 %v787_v56, %v745_v55 }
0x1129   :  { %v789_v58 = vpop.f32.mrf.mxu1 }
0x112a   :  { %2146 = vtanh.f32 %v788_v57  ;;  %v2538_v58 = vld [vmem:[#allocation2 + $0x74] ss:$8 sps:$4 sm:$0xff]  }
0x112b   :  { %v790_v60 = vpop.f32.mrf.mxu1  ;;  %1156 = vmatprep.subr.bf16.mxu0 %v2538_v58 }
0x112c   :  { %v2540_v60 = vld [vmem:[#allocation2 + $0x70] ss:$8 sps:$4 sm:$0xff]  }
0x1135   :  { %v2145_v61 = vpop.eup %2144 }
0x1136   :  { %798 = vrot.lane.b32.xlu0 %v2145_v61, %s2252_s28  ;;  %v794_v62 = vadd.f32 1.0, %v2145_v61  ;;  %v2075_v61 = vld [vmem:[%s2845_s1 + $0x70] ss:$8 sps:$4 sm:$0xff]  }
0x1137   :  { %v2147_v63 = vpop.eup %2146 }
0x1138   :  { %817 = vrot.lane.b32.xlu1 %v2147_v63, %s2252_s28  ;;  %v813_v5 = vadd.f32 1.0, %v2147_v63  ;;  %v795_v7 = vmul.f32 0.5, %v794_v62  ;;  %v2077_v62 = vld [vmem:[%s2845_s1 + $0x74] ss:$8 sps:$4 sm:$0xff]  }
0x1139   :  { %1072 = vmatprep.subr.bf16.mxu1 %v2077_v62 }
0x113a   :  { %v814_v18 = vmul.f32 0.5, %v813_v5  ;;  %v796_v21 = vmul.f32 %v795_v7, %v708_v34  ;;  %v842_v34 = vrot.slane %v2352_v25, 7  ;;  %v2548_v5 = vld [vmem:[#allocation2 + $0x64] ss:$8 sps:$4 sm:$0xff]   ;;  %1073 = vmatpush1.bf16.msra.mxu1 %v2075_v61 }
0x113c   :  { %v815_v4 = vmul.f32 %v814_v18, %v727_v37  ;;  %v843_v37 = vrot.slane %v449_v52, 7 }
0x11a8   :  { %v799_v8 = vpop.permute.xlu0 %798 }
0x11a9   :  { %v801_v13 = vmul.f32 %v799_v8, %v795_v7 }
0x11aa   :  { %v818_v19 = vpop.permute.xlu1 %817 }
0x11ab   :  { %v820_v45 = vmul.f32 %v818_v19, %v814_v18  ;;  %803 = vrot.lane.b32.xlu0 %v801_v13, %s2253_s29  ;;  %v2556_v13 = vld [vmem:[#allocation2 + $0x60] ss:$8 sps:$4 sm:$0xff]   ;;  %v2562_v19 = vld [vmem:[#allocation2 + $0x54] ss:$8 sps:$4 sm:$0xff]  }
0x11ad   :  { %822 = vrot.lane.b32.xlu1 %v820_v45, %s2253_s29  ;;  %v2567_v45 = vld [vmem:[#allocation2 + $0x50] ss:$8 sps:$4 sm:$0xff]  }
0x121d   :  { %v804_v2 = vpop.permute.xlu0 %803 }
0x121e   :  { %v806_v16 = vadd.f32 %v804_v2, %v796_v21  ;;  %v2087_v21 = vld [vmem:[%s2845_s1 + $0x50] ss:$8 sps:$4 sm:$0xff]   ;;  %v2089_v2 = vld [vmem:[%s2845_s1 + $0x54] ss:$8 sps:$4 sm:$0xff]  }
0x121f   :  { %v823_v20 = vpop.permute.xlu1 %822 }
0x1220   :  { %2148 = vtanh.f32 %v806_v16  ;;  %v825_v6 = vadd.f32 %v823_v20, %v815_v4  ;;  %v2578_v4 = vld [vmem:[#allocation2 + $0x40] ss:$8 sps:$4 sm:$0xff]   ;;  %v2095_v20 = vld [vmem:[%s2845_s1 + $0x44] ss:$8 sps:$4 sm:$0xff]  }
0x1222   :  { %2150 = vtanh.f32 %v825_v6 }
0x122d   :  { %v2149_v9 = vpop.eup %2148 }
0x122e   :  { %809 = vrot.lane.b32.xlu0 %v2149_v9, %s2252_s28 }
0x122f   :  { %v2151_v10 = vpop.eup %2150 }
0x1230   :  { %828 = vrot.lane.b32.xlu1 %v2151_v10, %s2252_s28 }
0x12a0   :  { %v810_v11 = vpop.permute.xlu0 %809 }
0x12a1   :  { %v812_v12 = vmul.f32 %v810_v11, %v795_v7  ;;  %v2083_v7 = vld [vmem:[%s2845_s1 + $0x64] ss:$8 sps:$4 sm:$0xff]  }
0x12a2   :  { %v829_v24 = vpop.permute.xlu1 %828  ;;  %1074 = vmatprep.subr.bf16.mxu1 %v2083_v7 }
0x12a3   :  { %v940_v27 = vrot.slane %v812_v12, 2  ;;  %v2520_v28 = vmul.f32 %v829_v24, %v814_v18  ;;  %833 = vrot.lane.b32.xlu0 %v812_v12, %s2253_s29  ;;  %v2081_v18 = vld [vmem:[%s2845_s1 + $0x60] ss:$8 sps:$4 sm:$0xff]  }
0x12a4   :  { %1075 = vmatpush1.bf16.msra.mxu1 %v2081_v18 }
0x12a5   :  { %837 = vrot.lane.b32.xlu1 %v2520_v28, %s2252_s28  ;;  %v2526_v29 = vsel %vm955_vm8, %v954_v47, %v940_v27  ;;  %1076 = vmatprep.subr.bf16.mxu1 %v2089_v2  ;;  %v959_v12 = vrot.slane %v2520_v28, 7  ;;  %v967_v28 = vrot.slane %v2423_v31, 3 }
0x12a8   :  { %1077 = vmatpush1.bf16.msra.mxu1 %v2087_v21 }
0x12a9   :  { %1078 = vmatprep.subr.bf16.mxu1 %v2095_v20 }
0x1315   :  { %v834_v30 = vpop.permute.xlu0 %833 }
0x1317   :  { %v838_v59 = vpop.permute.xlu1 %837 }
0x1318   :  { %v840_v32 = vsel %vm247_vm1, %v834_v30, %v838_v59  ;;  %v961_v30 = vrot.slane %v2502_v46, 6  ;;  %v963_v59 = vrot.slane %v2477_v3, 5  ;;  %v969_v3 = vrot.slane %v2395_v40, 2 }
0x1319   :  { %v841_v33 = vpack.c.bf16 %v840_v32, %v840_v32 }
0x131b   :  { %2016 = vmatmul.mubr.msk.bf16.vlgmr.msra.gmra.mxu0 %vm154_vm2, %v841_v33 }
0x131c   :  { %1180 = vmatprep.mubr.bf16.mxu0 %v2251_v0  ;;  %1157 = vmatpush1.bf16.msra.mxu0 %v2540_v60 }
0x131d   :  { %1158 = vmatprep.subr.bf16.mxu0 %v2548_v5 }
0x1320   :  { %1159 = vmatpush1.bf16.msra.mxu0 %v2556_v13 }
0x1321   :  { %1160 = vmatprep.subr.bf16.mxu0 %v2562_v19 }
0x1324   :  { %1161 = vmatpush1.bf16.msra.mxu0 %v2567_v45 }
0x13db   :  { %v883_v35 = vpop.f32.mrf.mxu0 }
0x13dc   :  { %v884_v36 = vadd.f32 %v883_v35, %v842_v34  ;;  %v965_v34 = vrot.slane %v2452_v22, 4 }
0x13dd   :  { %v885_v38 = vpop.f32.mrf.mxu0 }
0x13de   :  { %2152 = vtanh.f32 %v884_v36  ;;  %v886_v39 = vadd.f32 %v885_v38, %v843_v37 }
0x13df   :  { %v887_v41 = vpop.f32.mrf.mxu0 }
0x13e0   :  { %2154 = vtanh.f32 %v886_v39 }
0x13e1   :  { %v888_v42 = vpop.f32.mrf.mxu0 }
0x13eb   :  { %v2153_v43 = vpop.eup %2152 }
0x13ec   :  { %896 = vrot.lane.b32.xlu1 %v2153_v43, %s2252_s28  ;;  %v892_v47 = vadd.f32 1.0, %v2153_v43 }
0x13ed   :  { %v2155_v44 = vpop.eup %2154 }
0x13ee   :  { %915 = vrot.lane.b32.xlu0 %v2155_v44, %s2252_s28  ;;  %v911_v48 = vadd.f32 1.0, %v2155_v44  ;;  %v893_v25 = vmul.f32 0.5, %v892_v47  ;;  %v2025_v47 = vld [vmem:[%s2847_s3 + $0x2] sm:$0x3] }
0x13f0   :  { %v912_v1 = vmul.f32 0.5, %v911_v48  ;;  %v894_v50 = vmul.f32 %v893_v25, %v806_v16  ;;  %v2575_v16 = vld [vmem:[#allocation2 + $0x44] ss:$8 sps:$4 sm:$0xff]   ;;  %v1014_v48 = vrot.slane %v2025_v47, %v2345_v17 }
0x13f1   :  { %1162 = vmatprep.subr.bf16.mxu0 %v2575_v16 }
0x13f2   :  { %v913_v55 = vmul.f32 %v912_v1, %v825_v6  ;;  %v2093_v6 = vld [vmem:[%s2845_s1 + $0x40] ss:$8 sps:$4 sm:$0xff]   ;;  %1163 = vmatpush1.bf16.msra.mxu0 %v2578_v4 }
0x13f3   :  { %1355 = vmatprep.subr.bf16.mxu0 %v2538_v58  ;;  %1079 = vmatpush1.bf16.msra.mxu1 %v2093_v6 }
0x13f4   :  { %1256 = vmatprep.subr.bf16.mxu1 %v2538_v58 }
0x13f5   :  { %1181 = vmatmul.mubr.bf16.vlgmr.msra.gmra.mxu0 %v2251_v0 }
0x13f6   :  { %1356 = vmatpush1.bf16.msra.mxu0 %v2540_v60  ;;  %1379 = vmatprep.mubr.bf16.mxu0 %v2251_v0 }
0x13f7   :  { %1357 = vmatprep.subr.bf16.mxu0 %v2548_v5 }
0x13fa   :  { %1358 = vmatpush1.bf16.msra.mxu0 %v2556_v13 }
0x13fb   :  { %1359 = vmatprep.subr.bf16.mxu0 %v2562_v19 }
0x13fe   :  { %1360 = vmatpush1.bf16.msra.mxu0 %v2567_v45 }
0x13ff   :  { %1361 = vmatprep.subr.bf16.mxu0 %v2575_v16 }
0x1402   :  { %1362 = vmatpush1.bf16.msra.mxu0 %v2578_v4 }
0x1403   :  { %1552 = vmatprep.subr.bf16.mxu0 %v2538_v58 }
0x145e   :  { %v897_v26 = vpop.permute.xlu1 %896 }
0x145f   :  { %v899_v49 = vmul.f32 %v897_v26, %v893_v25 }
0x1460   :  { %v916_v23 = vpop.permute.xlu0 %915 }
0x1461   :  { %v918_v52 = vmul.f32 %v916_v23, %v912_v1  ;;  %901 = vrot.lane.b32.xlu1 %v899_v49, %s2253_s29 }
0x1463   :  { %920 = vrot.lane.b32.xlu0 %v918_v52, %s2253_s29 }
0x14b5   :  { %v1182_v41 = vpop.f32.mrf.mxu0 }
0x14b7   :  { %v1184_v42 = vpop.f32.mrf.mxu0 }
0x14b9   :  { %v1186_v43 = vpop.f32.mrf.mxu0 }
0x14bb   :  { %v1187_v44 = vpop.f32.mrf.mxu0 }
0x14d3   :  { %v902_v51 = vpop.permute.xlu1 %901 }
0x14d4   :  { %v904_v53 = vadd.f32 %v902_v51, %v894_v50 }
0x14d5   :  { %v921_v56 = vpop.permute.xlu0 %920 }
0x14d6   :  { %2156 = vtanh.f32 %v904_v53  ;;  %v923_v57 = vadd.f32 %v921_v56, %v913_v55 }
0x14d8   :  { %2158 = vtanh.f32 %v923_v57 }
0x14e3   :  { %v2157_v63 = vpop.eup %2156 }
0x14e4   :  { %907 = vrot.lane.b32.xlu1 %v2157_v63, %s2252_s28 }
0x14e5   :  { %v2159_v8 = vpop.eup %2158 }
0x14e6   :  { %926 = vrot.lane.b32.xlu0 %v2159_v8, %s2252_s28 }
0x1556   :  { %v908_v9 = vpop.permute.xlu1 %907 }
0x1557   :  { %v910_v10 = vmul.f32 %v908_v9, %v893_v25  ;;  %v1018_v25 = vrot.slane %v2025_v47, %v52_v15 }
0x1558   :  { %v927_v11 = vpop.permute.xlu0 %926 }
0x1559   :  { %v943_v24 = vrot.slane %v910_v10, 1  ;;  %v929_v27 = vmul.f32 %v927_v11, %v912_v1 }
0x155b   :  { %v973_v32 = vsel %vm945_vm3, %v929_v27, %v959_v12  ;;  %v958_v33 = vsel %vm957_vm9, %v2526_v29, %v943_v24  ;;  %v971_v29 = vrot.slane %v2368_v54, 1 }
0x155c   :  { %v974_v35 = vsel %vm947_vm4, %v973_v32, %v961_v30  ;;  %981 = vrot.lane.b32.xlu0 %v958_v33, %s2253_s29 }
0x155d   :  { %v975_v46 = vsel %vm949_vm5, %v974_v35, %v963_v59 }
0x155e   :  { %v976_v36 = vsel %vm951_vm6, %v975_v46, %v965_v34 }
0x155f   :  { %v977_v37 = vsel %vm953_vm7, %v976_v36, %v967_v28 }
0x1560   :  { %v978_v22 = vsel %vm955_vm8, %v977_v37, %v969_v3 }
0x1561   :  { %v979_v38 = vsel %vm957_vm9, %v978_v22, %v971_v29 }
0x1562   :  { %985 = vrot.lane.b32.xlu1 %v979_v38, %s2252_s28 }
0x15ce   :  { %v982_v40 = vpop.permute.xlu0 %981 }
0x15d4   :  { %v986_v31 = vpop.permute.xlu1 %985 }
0x15d5   :  { %v988_v54 = vsel %vm247_vm1, %v982_v40, %v986_v31 }
0x15d6   :  { %v989_v39 = vpack.c.bf16 %v988_v54, %v988_v54 }
0x15d8   :  { %2034 = vmatmul.mubr.msk.bf16.vlgmr.msra.gmra.mxu1 %vm154_vm2, %v989_v39 }
0x15d9   :  { %1257 = vmatpush1.bf16.msra.mxu1 %v2540_v60  ;;  %1280 = vmatprep.mubr.bf16.mxu1 %v2251_v0 }
0x15da   :  { %1258 = vmatprep.subr.bf16.mxu1 %v2548_v5 }
0x15dd   :  { %1259 = vmatpush1.bf16.msra.mxu1 %v2556_v13 }
0x15de   :  { %1260 = vmatprep.subr.bf16.mxu1 %v2562_v19 }
0x15e1   :  { %1261 = vmatpush1.bf16.msra.mxu1 %v2567_v45 }
0x15e2   :  { %1262 = vmatprep.subr.bf16.mxu1 %v2575_v16 }
0x15e5   :  { %1263 = vmatpush1.bf16.msra.mxu1 %v2578_v4 }
0x15e6   :  { %1454 = vmatprep.subr.bf16.mxu1 %v2538_v58 }
0x1698   :  { %v1098_v26 = vpop.f32.mrf.mxu1 }
0x1699   :  { %v2635_v49 = vadd.f32 %v1098_v26, %v1014_v48 }
0x169a   :  { %v1100_v1 = vpop.f32.mrf.mxu1 }
0x169b   :  { %v2637_v23 = vadd.f32 %v1100_v1, %v1018_v25  ;;  %v1183_v52 = vadd.f32 %v1182_v41, %v2635_v49  ;;  %v1241_v46 = vrot.slane %v2635_v49, 1 }
0x169c   :  { %v1102_v50 = vpop.f32.mrf.mxu1 }
0x169d   :  { %v1106_v51 = vrot.slane %v2637_v23, 7  ;;  %2160 = vtanh.f32 %v1183_v52  ;;  %v1239_v28 = vrot.slane %v2637_v23, 5 }
0x169e   :  { %v1103_v53 = vpop.f32.mrf.mxu1 }
0x169f   :  { %v1185_v55 = vadd.f32 %v1184_v42, %v1106_v51  ;;  %v1242_v29 = vrot.slane %v1239_v28, 1 }
0x16a1   :  { %2162 = vtanh.f32 %v1185_v55 }
0x16aa   :  { %v2161_v56 = vpop.eup %2160 }
0x16ab   :  { %1195 = vrot.lane.b32.xlu0 %v2161_v56, %s2252_s28  ;;  %v1191_v15 = vadd.f32 1.0, %v2161_v56 }
0x16ad   :  { %v1192_v57 = vmul.f32 0.5, %v1191_v15 }
0x16ae   :  { %v2163_v14 = vpop.eup %2162 }
0x16af   :  { %1214 = vrot.lane.b32.xlu1 %v2163_v14, %s2252_s28  ;;  %v1210_v61 = vadd.f32 1.0, %v2163_v14  ;;  %v1193_v21 = vmul.f32 0.0, %v1192_v57 }
0x16b1   :  { %v1211_v7 = vmul.f32 0.5, %v1210_v61 }
0x16b3   :  { %v1212_v6 = vmul.f32 0.0, %v1211_v7 }
0x171d   :  { %v1196_v63 = vpop.permute.xlu0 %1195 }
0x171e   :  { %v1198_v62 = vmul.f32 %v1196_v63, %v1192_v57 }
0x1720   :  { %1200 = vrot.lane.b32.xlu0 %v1198_v62, %s2253_s29 }
0x1721   :  { %v1215_v8 = vpop.permute.xlu1 %1214 }
0x1722   :  { %v1217_v18 = vmul.f32 %v1215_v8, %v1211_v7 }
0x1724   :  { %1219 = vrot.lane.b32.xlu1 %v1217_v18, %s2253_s29 }
0x1792   :  { %v1201_v2 = vpop.permute.xlu0 %1200 }
0x1793   :  { %v1203_v20 = vadd.f32 %v1201_v2, %v1193_v21  ;;  %v1339_v21 = vrot.slane %v2637_v23, 3  ;;  %v1340_v2 = vrot.slane %v2635_v49, 2 }
0x1795   :  { %2164 = vtanh.f32 %v1203_v20 }
0x1796   :  { %v1220_v9 = vpop.permute.xlu1 %1219 }
0x1797   :  { %v1222_v10 = vadd.f32 %v1220_v9, %v1212_v6  ;;  %v1341_v9 = vrot.slane %v1339_v21, 2 }
0x1799   :  { %2166 = vtanh.f32 %v1222_v10 }
0x17a2   :  { %v2165_v11 = vpop.eup %2164 }
0x17a3   :  { %1206 = vrot.lane.b32.xlu0 %v2165_v11, %s2252_s28 }
0x17a6   :  { %v2167_v12 = vpop.eup %2166 }
0x17a7   :  { %1225 = vrot.lane.b32.xlu1 %v2167_v12, %s2252_s28 }
0x1815   :  { %v1207_v24 = vpop.permute.xlu0 %1206 }
0x1816   :  { %v2649_v27 = vmul.f32 %v1207_v24, %v1192_v57 }
0x1818   :  { %1230 = vrot.lane.b32.xlu0 %v2649_v27, %s2253_s29 }
0x1819   :  { %v1226_v30 = vpop.permute.xlu1 %1225 }
0x181a   :  { %v2653_v59 = vmul.f32 %v1226_v30, %v1211_v7 }
0x181c   :  { %1234 = vrot.lane.b32.xlu1 %v2653_v59, %s2252_s28 }
0x188a   :  { %v1231_v32 = vpop.permute.xlu0 %1230 }
0x188e   :  { %v1235_v33 = vpop.permute.xlu1 %1234 }
0x188f   :  { %v1237_v34 = vsel %vm247_vm1, %v1231_v32, %v1235_v33 }
0x1890   :  { %v1238_v35 = vpack.c.bf16 %v1237_v34, %v1237_v34 }
0x1892   :  { %2043 = vmatmul.mubr.msk.bf16.vlgmr.msra.gmra.mxu1 %vm154_vm2, %v1238_v35 }
0x1893   :  { %1455 = vmatpush1.bf16.msra.mxu1 %v2540_v60  ;;  %1478 = vmatprep.mubr.bf16.mxu1 %v2251_v0 }
0x1894   :  { %1456 = vmatprep.subr.bf16.mxu1 %v2548_v5 }
0x1897   :  { %1457 = vmatpush1.bf16.msra.mxu1 %v2556_v13 }
0x1898   :  { %1458 = vmatprep.subr.bf16.mxu1 %v2562_v19 }
0x189b   :  { %1459 = vmatpush1.bf16.msra.mxu1 %v2567_v45 }
0x189c   :  { %1460 = vmatprep.subr.bf16.mxu1 %v2575_v16 }
0x189f   :  { %1461 = vmatpush1.bf16.msra.mxu1 %v2578_v4 }
0x18a0   :  { %1650 = vmatprep.subr.bf16.mxu1 %v2538_v58 }
0x1952   :  { %v1282_v3 = vpop.f32.mrf.mxu1 }
0x1953   :  { %v1283_v36 = vadd.f32 %v1282_v3, %v1241_v46 }
0x1954   :  { %v1284_v37 = vpop.f32.mrf.mxu1 }
0x1955   :  { %2168 = vtanh.f32 %v1283_v36  ;;  %v1285_v22 = vadd.f32 %v1284_v37, %v1242_v29 }
0x1956   :  { %v1286_v38 = vpop.f32.mrf.mxu1 }
0x1957   :  { %2170 = vtanh.f32 %v1285_v22 }
0x1958   :  { %v1287_v40 = vpop.f32.mrf.mxu1 }
0x1962   :  { %v2169_v31 = vpop.eup %2168 }
0x1963   :  { %1295 = vrot.lane.b32.xlu0 %v2169_v31, %s2252_s28  ;;  %v1291_v39 = vadd.f32 1.0, %v2169_v31 }
0x1964   :  { %v2171_v54 = vpop.eup %2170 }
0x1965   :  { %1314 = vrot.lane.b32.xlu1 %v2171_v54, %s2252_s28  ;;  %v1310_v41 = vadd.f32 1.0, %v2171_v54  ;;  %v1292_v42 = vmul.f32 0.5, %v1291_v39 }
0x1967   :  { %v1311_v47 = vmul.f32 0.5, %v1310_v41  ;;  %v1293_v26 = vmul.f32 %v1292_v42, %v1203_v20 }
0x1969   :  { %v1312_v50 = vmul.f32 %v1311_v47, %v1222_v10 }
0x19d5   :  { %v1296_v43 = vpop.permute.xlu0 %1295 }
0x19d6   :  { %v1298_v44 = vmul.f32 %v1296_v43, %v1292_v42 }
0x19d7   :  { %v1315_v48 = vpop.permute.xlu1 %1314 }
0x19d8   :  { %v1317_v25 = vmul.f32 %v1315_v48, %v1311_v47  ;;  %1300 = vrot.lane.b32.xlu0 %v1298_v44, %s2253_s29 }
0x19da   :  { %1319 = vrot.lane.b32.xlu1 %v1317_v25, %s2253_s29 }
0x1a4a   :  { %v1301_v1 = vpop.permute.xlu0 %1300 }
0x1a4b   :  { %v1303_v52 = vadd.f32 %v1301_v1, %v1293_v26 }
0x1a4c   :  { %v1320_v53 = vpop.permute.xlu1 %1319 }
0x1a4d   :  { %2172 = vtanh.f32 %v1303_v52  ;;  %v1322_v55 = vadd.f32 %v1320_v53, %v1312_v50 }
0x1a4f   :  { %2174 = vtanh.f32 %v1322_v55 }
0x1a5a   :  { %v2173_v56 = vpop.eup %2172 }
0x1a5b   :  { %1306 = vrot.lane.b32.xlu0 %v2173_v56, %s2252_s28 }
0x1a5c   :  { %v2175_v14 = vpop.eup %2174 }
0x1a5d   :  { %1325 = vrot.lane.b32.xlu1 %v2175_v14, %s2252_s28  ;;  %v1439_v14 = vrot.slane %v2635_v49, 3 }
0x1acd   :  { %v1307_v15 = vpop.permute.xlu0 %1306 }
0x1ace   :  { %v2678_v57 = vmul.f32 %v1307_v15, %v1292_v42 }
0x1acf   :  { %v1326_v61 = vpop.permute.xlu1 %1325 }
0x1ad0   :  { %v2680_v63 = vmul.f32 %v1326_v61, %v1311_v47  ;;  %1330 = vrot.lane.b32.xlu0 %v2678_v57, %s2253_s29  ;;  %v1919_v43 = vrot.slane %v2678_v57, 7 }
0x1ad2   :  { %1334 = vrot.lane.b32.xlu1 %v2680_v63, %s2252_s28  ;;  %v1934_v1 = vsel %vm945_vm3, %v2649_v27, %v1919_v43  ;;  %v1438_v27 = vrot.slane %v2637_v23, 1 }
0x1ad4   :  { %v1440_v61 = vrot.slane %v1438_v27, 3 }
0x1b42   :  { %v1331_v62 = vpop.permute.xlu0 %1330 }
0x1b44   :  { %v1335_v7 = vpop.permute.xlu1 %1334 }
0x1b45   :  { %v1337_v8 = vsel %vm247_vm1, %v1331_v62, %v1335_v7 }
0x1b46   :  { %v1338_v18 = vpack.c.bf16 %v1337_v8, %v1337_v8 }
0x1b48   :  { %2044 = vmatmul.mubr.msk.bf16.vlgmr.msra.gmra.mxu0 %vm154_vm2, %v1338_v18 }
0x1b49   :  { %1553 = vmatpush1.bf16.msra.mxu0 %v2540_v60  ;;  %1576 = vmatprep.mubr.bf16.mxu0 %v2251_v0 }
0x1b4a   :  { %1554 = vmatprep.subr.bf16.mxu0 %v2548_v5 }
0x1b4d   :  { %1555 = vmatpush1.bf16.msra.mxu0 %v2556_v13 }
0x1b4e   :  { %1556 = vmatprep.subr.bf16.mxu0 %v2562_v19 }
0x1b51   :  { %1557 = vmatpush1.bf16.msra.mxu0 %v2567_v45 }
0x1b52   :  { %1558 = vmatprep.subr.bf16.mxu0 %v2575_v16 }
0x1b55   :  { %1559 = vmatpush1.bf16.msra.mxu0 %v2578_v4 }
0x1b56   :  { %1748 = vmatprep.subr.bf16.mxu0 %v2538_v58 }
0x1c08   :  { %v1381_v20 = vpop.f32.mrf.mxu0 }
0x1c09   :  { %v1382_v6 = vadd.f32 %v1381_v20, %v1340_v2 }
0x1c0a   :  { %v1383_v10 = vpop.f32.mrf.mxu0 }
0x1c0b   :  { %2176 = vtanh.f32 %v1382_v6  ;;  %v1384_v11 = vadd.f32 %v1383_v10, %v1341_v9 }
0x1c0c   :  { %v1385_v12 = vpop.f32.mrf.mxu0 }
0x1c0d   :  { %2178 = vtanh.f32 %v1384_v11 }
0x1c0e   :  { %v1386_v24 = vpop.f32.mrf.mxu0 }
0x1c18   :  { %v2177_v30 = vpop.eup %2176 }
0x1c19   :  { %1394 = vrot.lane.b32.xlu0 %v2177_v30, %s2252_s28  ;;  %v1390_v33 = vadd.f32 1.0, %v2177_v30 }
0x1c1a   :  { %v2179_v32 = vpop.eup %2178 }
0x1c1b   :  { %1413 = vrot.lane.b32.xlu1 %v2179_v32, %s2252_s28  ;;  %v1409_v34 = vadd.f32 1.0, %v2179_v32  ;;  %v1391_v35 = vmul.f32 0.5, %v1390_v33 }
0x1c1d   :  { %v1410_v36 = vmul.f32 0.5, %v1409_v34  ;;  %v1392_v22 = vmul.f32 %v1391_v35, %v1303_v52 }
0x1c1f   :  { %v1411_v31 = vmul.f32 %v1410_v36, %v1322_v55 }
0x1c8b   :  { %v1395_v46 = vpop.permute.xlu0 %1394 }
0x1c8c   :  { %v1397_v3 = vmul.f32 %v1395_v46, %v1391_v35 }
0x1c8d   :  { %v1414_v29 = vpop.permute.xlu1 %1413 }
0x1c8e   :  { %v1416_v37 = vmul.f32 %v1414_v29, %v1410_v36  ;;  %1399 = vrot.lane.b32.xlu0 %v1397_v3, %s2253_s29 }
0x1c90   :  { %1418 = vrot.lane.b32.xlu1 %v1416_v37, %s2253_s29 }
0x1d00   :  { %v1400_v38 = vpop.permute.xlu0 %1399 }
0x1d01   :  { %v1402_v40 = vadd.f32 %v1400_v38, %v1392_v22 }
0x1d02   :  { %v1419_v54 = vpop.permute.xlu1 %1418 }
0x1d03   :  { %2180 = vtanh.f32 %v1402_v40  ;;  %v1421_v39 = vadd.f32 %v1419_v54, %v1411_v31 }
0x1d05   :  { %2182 = vtanh.f32 %v1421_v39 }
0x1d10   :  { %v2181_v41 = vpop.eup %2180 }
0x1d11   :  { %1405 = vrot.lane.b32.xlu0 %v2181_v41, %s2252_s28 }
0x1d12   :  { %v2183_v42 = vpop.eup %2182 }
0x1d13   :  { %1424 = vrot.lane.b32.xlu1 %v2183_v42, %s2252_s28 }
0x1d83   :  { %v1406_v44 = vpop.permute.xlu0 %1405 }
0x1d84   :  { %v1408_v47 = vmul.f32 %v1406_v44, %v1391_v35  ;;  %v1537_v44 = vrot.slane %v2635_v49, 4 }
0x1d85   :  { %v1425_v48 = vpop.permute.xlu1 %1424 }
0x1d86   :  { %v1921_v25 = vrot.slane %v1408_v47, 6  ;;  %v2708_v26 = vmul.f32 %v1425_v48, %v1410_v36  ;;  %1429 = vrot.lane.b32.xlu0 %v1408_v47, %s2253_s29 }
0x1d88   :  { %v1935_v52 = vsel %vm947_vm4, %v1934_v1, %v1921_v25  ;;  %1433 = vrot.lane.b32.xlu1 %v2708_v26, %s2252_s28  ;;  %v1538_v25 = vrot.slane %v1106_v51, 4 }
0x1df8   :  { %v1430_v50 = vpop.permute.xlu0 %1429 }
0x1dfa   :  { %v1434_v53 = vpop.permute.xlu1 %1433 }
0x1dfb   :  { %v1436_v55 = vsel %vm247_vm1, %v1430_v50, %v1434_v53 }
0x1dfc   :  { %v1437_v56 = vpack.c.bf16 %v1436_v55, %v1436_v55 }
0x1dfe   :  { %2045 = vmatmul.mubr.msk.bf16.vlgmr.msra.gmra.mxu1 %vm154_vm2, %v1437_v56 }
0x1dff   :  { %1651 = vmatpush1.bf16.msra.mxu1 %v2540_v60  ;;  %1674 = vmatprep.mubr.bf16.mxu1 %v2251_v0 }
0x1e00   :  { %1652 = vmatprep.subr.bf16.mxu1 %v2548_v5 }
0x1e03   :  { %1653 = vmatpush1.bf16.msra.mxu1 %v2556_v13 }
0x1e04   :  { %1654 = vmatprep.subr.bf16.mxu1 %v2562_v19 }
0x1e07   :  { %1655 = vmatpush1.bf16.msra.mxu1 %v2567_v45 }
0x1e08   :  { %1656 = vmatprep.subr.bf16.mxu1 %v2575_v16 }
0x1e0b   :  { %1657 = vmatpush1.bf16.msra.mxu1 %v2578_v4 }
0x1e0c   :  { %1846 = vmatprep.subr.bf16.mxu1 %v2538_v58 }
0x1ebe   :  { %v1480_v15 = vpop.f32.mrf.mxu1 }
0x1ebf   :  { %v1481_v57 = vadd.f32 %v1480_v15, %v1439_v14 }
0x1ec0   :  { %v1482_v62 = vpop.f32.mrf.mxu1 }
0x1ec1   :  { %2184 = vtanh.f32 %v1481_v57  ;;  %v1483_v7 = vadd.f32 %v1482_v62, %v1440_v61 }
0x1ec2   :  { %v1484_v8 = vpop.f32.mrf.mxu1 }
0x1ec3   :  { %2186 = vtanh.f32 %v1483_v7 }
0x1ec4   :  { %v1485_v18 = vpop.f32.mrf.mxu1 }
0x1ece   :  { %v2185_v2 = vpop.eup %2184 }
0x1ecf   :  { %1493 = vrot.lane.b32.xlu0 %v2185_v2, %s2252_s28  ;;  %v1489_v58 = vadd.f32 1.0, %v2185_v2 }
0x1ed0   :  { %v2187_v20 = vpop.eup %2186 }
0x1ed1   :  { %1512 = vrot.lane.b32.xlu1 %v2187_v20, %s2252_s28  ;;  %v1508_v6 = vadd.f32 1.0, %v2187_v20  ;;  %v1490_v9 = vmul.f32 0.5, %v1489_v58 }
0x1ed3   :  { %v1509_v12 = vmul.f32 0.5, %v1508_v6  ;;  %v1491_v32 = vmul.f32 %v1490_v9, %v1402_v40 }
0x1ed5   :  { %v1510_v35 = vmul.f32 %v1509_v12, %v1421_v39 }
0x1f41   :  { %v1494_v10 = vpop.permute.xlu0 %1493 }
0x1f42   :  { %v1496_v11 = vmul.f32 %v1494_v10, %v1490_v9 }
0x1f43   :  { %v1513_v24 = vpop.permute.xlu1 %1512 }
0x1f44   :  { %v1515_v30 = vmul.f32 %v1513_v24, %v1509_v12  ;;  %1498 = vrot.lane.b32.xlu0 %v1496_v11, %s2253_s29 }
0x1f46   :  { %1517 = vrot.lane.b32.xlu1 %v1515_v30, %s2253_s29 }
0x1fb6   :  { %v1499_v33 = vpop.permute.xlu0 %1498 }
0x1fb7   :  { %v1501_v34 = vadd.f32 %v1499_v33, %v1491_v32 }
0x1fb8   :  { %v1518_v46 = vpop.permute.xlu1 %1517 }
0x1fb9   :  { %2188 = vtanh.f32 %v1501_v34  ;;  %v1520_v3 = vadd.f32 %v1518_v46, %v1510_v35 }
0x1fbb   :  { %2190 = vtanh.f32 %v1520_v3 }
0x1fc6   :  { %v2189_v36 = vpop.eup %2188 }
0x1fc7   :  { %1504 = vrot.lane.b32.xlu0 %v2189_v36, %s2252_s28 }
0x1fc8   :  { %v2191_v29 = vpop.eup %2190 }
0x1fc9   :  { %1523 = vrot.lane.b32.xlu1 %v2191_v29, %s2252_s28  ;;  %v1635_v29 = vrot.slane %v2635_v49, 5 }
0x2039   :  { %v1505_v37 = vpop.permute.xlu0 %1504 }
0x203a   :  { %v1507_v22 = vmul.f32 %v1505_v37, %v1490_v9 }
0x203b   :  { %v1524_v38 = vpop.permute.xlu1 %1523 }
0x203c   :  { %v1923_v31 = vrot.slane %v1507_v22, 5  ;;  %v2737_v54 = vmul.f32 %v1524_v38, %v1509_v12  ;;  %1528 = vrot.lane.b32.xlu0 %v1507_v22, %s2253_s29 }
0x203e   :  { %v1936_v40 = vsel %vm949_vm5, %v1935_v52, %v1923_v31  ;;  %1532 = vrot.lane.b32.xlu1 %v2737_v54, %s2252_s28 }
0x20ae   :  { %v1529_v39 = vpop.permute.xlu0 %1528 }
0x20b0   :  { %v1533_v41 = vpop.permute.xlu1 %1532 }
0x20b1   :  { %v1535_v42 = vsel %vm247_vm1, %v1529_v39, %v1533_v41 }
0x20b2   :  { %v1536_v43 = vpack.c.bf16 %v1535_v42, %v1535_v42 }
0x20b4   :  { %2046 = vmatmul.mubr.msk.bf16.vlgmr.msra.gmra.mxu0 %vm154_vm2, %v1536_v43 }
0x20b5   :  { %1749 = vmatpush1.bf16.msra.mxu0 %v2540_v60  ;;  %1772 = vmatprep.mubr.bf16.mxu0 %v2251_v0 }
0x20b6   :  { %1750 = vmatprep.subr.bf16.mxu0 %v2548_v5 }
0x20b9   :  { %1751 = vmatpush1.bf16.msra.mxu0 %v2556_v13 }
0x20ba   :  { %1752 = vmatprep.subr.bf16.mxu0 %v2562_v19 }
0x20bd   :  { %1753 = vmatpush1.bf16.msra.mxu0 %v2567_v45 }
0x20be   :  { %1754 = vmatprep.subr.bf16.mxu0 %v2575_v16 }
0x20c1   :  { %1755 = vmatpush1.bf16.msra.mxu0 %v2578_v4 }
0x2174   :  { %v1578_v47 = vpop.f32.mrf.mxu0 }
0x2175   :  { %v1579_v48 = vadd.f32 %v1578_v47, %v1537_v44 }
0x2176   :  { %v1580_v1 = vpop.f32.mrf.mxu0 }
0x2177   :  { %2192 = vtanh.f32 %v1579_v48  ;;  %v1581_v52 = vadd.f32 %v1580_v1, %v1538_v25 }
0x2178   :  { %v1582_v50 = vpop.f32.mrf.mxu0 }
0x2179   :  { %2194 = vtanh.f32 %v1581_v52 }
0x217a   :  { %v1583_v53 = vpop.f32.mrf.mxu0 }
0x2184   :  { %v2193_v55 = vpop.eup %2192 }
0x2185   :  { %1591 = vrot.lane.b32.xlu0 %v2193_v55, %s2252_s28  ;;  %v1587_v14 = vadd.f32 1.0, %v2193_v55 }
0x2186   :  { %v2195_v56 = vpop.eup %2194 }
0x2187   :  { %1610 = vrot.lane.b32.xlu1 %v2195_v56, %s2252_s28  ;;  %v1606_v15 = vadd.f32 1.0, %v2195_v56  ;;  %v1588_v57 = vmul.f32 0.5, %v1587_v14 }
0x2189   :  { %v1607_v7 = vmul.f32 0.5, %v1606_v15  ;;  %v1589_v18 = vmul.f32 %v1588_v57, %v1501_v34 }
0x218b   :  { %v1608_v58 = vmul.f32 %v1607_v7, %v1520_v3 }
0x21f7   :  { %v1592_v61 = vpop.permute.xlu0 %1591 }
0x21f8   :  { %v1594_v62 = vmul.f32 %v1592_v61, %v1588_v57 }
0x21f9   :  { %v1611_v8 = vpop.permute.xlu1 %1610 }
0x21fa   :  { %v1613_v51 = vmul.f32 %v1611_v8, %v1607_v7  ;;  %1596 = vrot.lane.b32.xlu0 %v1594_v62, %s2253_s29 }
0x21fc   :  { %1615 = vrot.lane.b32.xlu1 %v1613_v51, %s2253_s29  ;;  %v1733_v51 = vrot.slane %v2635_v49, 6 }
0x226c   :  { %v1597_v2 = vpop.permute.xlu0 %1596 }
0x226d   :  { %v1599_v20 = vadd.f32 %v1597_v2, %v1589_v18 }
0x226e   :  { %v1616_v6 = vpop.permute.xlu1 %1615 }
0x226f   :  { %2196 = vtanh.f32 %v1599_v20  ;;  %v1618_v9 = vadd.f32 %v1616_v6, %v1608_v58 }
0x2271   :  { %2198 = vtanh.f32 %v1618_v9 }
0x227c   :  { %v2197_v10 = vpop.eup %2196 }
0x227d   :  { %1602 = vrot.lane.b32.xlu0 %v2197_v10, %s2252_s28 }
0x227e   :  { %v2199_v11 = vpop.eup %2198 }
0x227f   :  { %1621 = vrot.lane.b32.xlu1 %v2199_v11, %s2252_s28 }
0x22ef   :  { %v1603_v12 = vpop.permute.xlu0 %1602 }
0x22f0   :  { %v1605_v24 = vmul.f32 %v1603_v12, %v1588_v57 }
0x22f1   :  { %v1622_v30 = vpop.permute.xlu1 %1621 }
0x22f2   :  { %v1925_v32 = vrot.slane %v1605_v24, 4  ;;  %v2762_v33 = vmul.f32 %v1622_v30, %v1607_v7  ;;  %1626 = vrot.lane.b32.xlu0 %v1605_v24, %s2253_s29 }
0x22f4   :  { %v1937_v34 = vsel %vm951_vm6, %v1936_v40, %v1925_v32  ;;  %1630 = vrot.lane.b32.xlu1 %v2762_v33, %s2252_s28 }
0x2364   :  { %v1627_v35 = vpop.permute.xlu0 %1626 }
0x2366   :  { %v1631_v46 = vpop.permute.xlu1 %1630 }
0x2367   :  { %v1633_v3 = vsel %vm247_vm1, %v1627_v35, %v1631_v46 }
0x2368   :  { %v1634_v36 = vpack.c.bf16 %v1633_v3, %v1633_v3 }
0x236a   :  { %2047 = vmatmul.mubr.msk.bf16.vlgmr.msra.gmra.mxu1 %vm154_vm2, %v1634_v36 }
0x236b   :  { %1847 = vmatpush1.bf16.msra.mxu1 %v2540_v60  ;;  %1870 = vmatprep.mubr.bf16.mxu1 %v2251_v0  ;;  %v1636_v60 = vrot.slane %v1239_v28, 5 }
0x236c   :  { %1848 = vmatprep.subr.bf16.mxu1 %v2548_v5 }
0x236f   :  { %1849 = vmatpush1.bf16.msra.mxu1 %v2556_v13 }
0x2370   :  { %1850 = vmatprep.subr.bf16.mxu1 %v2562_v19 }
0x2373   :  { %1851 = vmatpush1.bf16.msra.mxu1 %v2567_v45 }
0x2374   :  { %1852 = vmatprep.subr.bf16.mxu1 %v2575_v16 }
0x2377   :  { %1853 = vmatpush1.bf16.msra.mxu1 %v2578_v4 }
0x242a   :  { %v1676_v37 = vpop.f32.mrf.mxu1 }
0x242b   :  { %v1677_v22 = vadd.f32 %v1676_v37, %v1635_v29 }
0x242c   :  { %v1678_v0 = vpop.f32.mrf.mxu1 }
0x242d   :  { %2200 = vtanh.f32 %v1677_v22  ;;  %v1679_v5 = vadd.f32 %v1678_v0, %v1636_v60 }
0x242e   :  { %v1680_v38 = vpop.f32.mrf.mxu1 }
0x242f   :  { %2202 = vtanh.f32 %v1679_v5 }
0x2430   :  { %v1681_v13 = vpop.f32.mrf.mxu1 }
0x243a   :  { %v2201_v19 = vpop.eup %2200 }
0x243b   :  { %1689 = vrot.lane.b32.xlu0 %v2201_v19, %s2252_s28  ;;  %v1685_v16 = vadd.f32 1.0, %v2201_v19 }
0x243c   :  { %v2203_v45 = vpop.eup %2202 }
0x243d   :  { %1708 = vrot.lane.b32.xlu1 %v2203_v45, %s2252_s28  ;;  %v1704_v4 = vadd.f32 1.0, %v2203_v45  ;;  %v1686_v31 = vmul.f32 0.5, %v1685_v16 }
0x243f   :  { %v1705_v41 = vmul.f32 0.5, %v1704_v4  ;;  %v1687_v43 = vmul.f32 %v1686_v31, %v1599_v20  ;;  %v1734_v20 = vrot.slane %v1339_v21, 6 }
0x2441   :  { %v1706_v48 = vmul.f32 %v1705_v41, %v1618_v9 }
0x24ad   :  { %v1690_v40 = vpop.permute.xlu0 %1689 }
0x24ae   :  { %v1692_v39 = vmul.f32 %v1690_v40, %v1686_v31 }
0x24af   :  { %v1709_v42 = vpop.permute.xlu1 %1708 }
0x24b0   :  { %v1711_v28 = vmul.f32 %v1709_v42, %v1705_v41  ;;  %1694 = vrot.lane.b32.xlu0 %v1692_v39, %s2253_s29 }
0x24b2   :  { %1713 = vrot.lane.b32.xlu1 %v1711_v28, %s2253_s29  ;;  %v1831_v28 = vrot.slane %v2635_v49, 7 }
0x2522   :  { %v1695_v44 = vpop.permute.xlu0 %1694 }
0x2523   :  { %v1697_v47 = vadd.f32 %v1695_v44, %v1687_v43 }
0x2524   :  { %v1714_v25 = vpop.permute.xlu1 %1713 }
0x2525   :  { %2204 = vtanh.f32 %v1697_v47  ;;  %v1716_v1 = vadd.f32 %v1714_v25, %v1706_v48 }
0x2527   :  { %2206 = vtanh.f32 %v1716_v1 }
0x2532   :  { %v2205_v52 = vpop.eup %2204 }
0x2533   :  { %1700 = vrot.lane.b32.xlu0 %v2205_v52, %s2252_s28 }
0x2534   :  { %v2207_v50 = vpop.eup %2206 }
0x2535   :  { %1719 = vrot.lane.b32.xlu1 %v2207_v50, %s2252_s28 }
0x25a5   :  { %v1701_v53 = vpop.permute.xlu0 %1700 }
0x25a6   :  { %v1703_v55 = vmul.f32 %v1701_v53, %v1686_v31 }
0x25a7   :  { %v1720_v56 = vpop.permute.xlu1 %1719 }
0x25a8   :  { %v1927_v14 = vrot.slane %v1703_v55, 3  ;;  %v2787_v15 = vmul.f32 %v1720_v56, %v1705_v41  ;;  %1724 = vrot.lane.b32.xlu0 %v1703_v55, %s2253_s29 }
0x25aa   :  { %v1938_v57 = vsel %vm953_vm7, %v1937_v34, %v1927_v14  ;;  %1728 = vrot.lane.b32.xlu1 %v2787_v15, %s2252_s28 }
0x261a   :  { %v1725_v61 = vpop.permute.xlu0 %1724 }
0x261c   :  { %v1729_v62 = vpop.permute.xlu1 %1728 }
0x261d   :  { %v1731_v7 = vsel %vm247_vm1, %v1725_v61, %v1729_v62 }
0x261e   :  { %v1732_v8 = vpack.c.bf16 %v1731_v7, %v1731_v7 }
0x2620   :  { %2048 = vmatmul.mubr.msk.bf16.vlgmr.msra.gmra.mxu0 %vm154_vm2, %v1732_v8 }
0x26e0   :  { %v1774_v18 = vpop.f32.mrf.mxu0 }
0x26e1   :  { %v1775_v2 = vadd.f32 %v1774_v18, %v1733_v51 }
0x26e2   :  { %v1776_v58 = vpop.f32.mrf.mxu0 }
0x26e3   :  { %2208 = vtanh.f32 %v1775_v2  ;;  %v1777_v6 = vadd.f32 %v1776_v58, %v1734_v20 }
0x26e4   :  { %v1778_v9 = vpop.f32.mrf.mxu0 }
0x26e5   :  { %2210 = vtanh.f32 %v1777_v6 }
0x26e6   :  { %v1779_v10 = vpop.f32.mrf.mxu0 }
0x26f0   :  { %v2209_v11 = vpop.eup %2208 }
0x26f1   :  { %1787 = vrot.lane.b32.xlu0 %v2209_v11, %s2252_s28  ;;  %v1783_v24 = vadd.f32 1.0, %v2209_v11 }
0x26f2   :  { %v2211_v12 = vpop.eup %2210 }
0x26f3   :  { %1806 = vrot.lane.b32.xlu1 %v2211_v12, %s2252_s28  ;;  %v1802_v30 = vadd.f32 1.0, %v2211_v12  ;;  %v1784_v32 = vmul.f32 0.5, %v1783_v24 }
0x26f5   :  { %v1803_v46 = vmul.f32 0.5, %v1802_v30  ;;  %v1785_v36 = vmul.f32 %v1784_v32, %v1697_v47  ;;  %v1832_v47 = vrot.slane %v1438_v27, 7  ;;  %v1943_v30 = vrot.slane %v2787_v15, 6 }
0x26f7   :  { %v1804_v22 = vmul.f32 %v1803_v46, %v1716_v1 }
0x2763   :  { %v1788_v34 = vpop.permute.xlu0 %1787 }
0x2764   :  { %v1790_v35 = vmul.f32 %v1788_v34, %v1784_v32 }
0x2765   :  { %v1807_v3 = vpop.permute.xlu1 %1806 }
0x2766   :  { %v1809_v21 = vmul.f32 %v1807_v3, %v1803_v46  ;;  %1792 = vrot.lane.b32.xlu0 %v1790_v35, %s2253_s29 }
0x2768   :  { %1811 = vrot.lane.b32.xlu1 %v1809_v21, %s2253_s29  ;;  %v1949_v21 = vrot.slane %v2708_v26, 3  ;;  %v2050_v26 = vld [vmem:[%s2847_s3 + $0x4] sm:$0x3] }
0x27d8   :  { %v1793_v29 = vpop.permute.xlu0 %1792 }
0x27d9   :  { %v1795_v37 = vadd.f32 %v1793_v29, %v1785_v36  ;;  %v1951_v29 = vrot.slane %v2680_v63, 2 }
0x27da   :  { %v1812_v60 = vpop.permute.xlu1 %1811 }
0x27db   :  { %2212 = vtanh.f32 %v1795_v37  ;;  %v1814_v0 = vadd.f32 %v1812_v60, %v1804_v22  ;;  %v1977_v60 = vrot.slane %v2050_v26, %v2345_v17 }
0x27dd   :  { %2214 = vtanh.f32 %v1814_v0 }
0x27e8   :  { %v2213_v5 = vpop.eup %2212 }
0x27e9   :  { %1798 = vrot.lane.b32.xlu0 %v2213_v5, %s2252_s28 }
0x27ea   :  { %v2215_v38 = vpop.eup %2214 }
0x27eb   :  { %1817 = vrot.lane.b32.xlu1 %v2215_v38, %s2252_s28 }
0x285b   :  { %v1799_v13 = vpop.permute.xlu0 %1798 }
0x285c   :  { %v1801_v19 = vmul.f32 %v1799_v13, %v1784_v32  ;;  %v1945_v32 = vrot.slane %v2762_v33, 5  ;;  %v1953_v33 = vrot.slane %v2653_v59, 1 }
0x285d   :  { %v1818_v45 = vpop.permute.xlu1 %1817 }
0x285e   :  { %v1929_v16 = vrot.slane %v1801_v19, 2  ;;  %v1820_v4 = vmul.f32 %v1818_v45, %v1803_v46  ;;  %1822 = vrot.lane.b32.xlu0 %v1801_v19, %s2253_s29  ;;  %v1947_v46 = vrot.slane %v2737_v54, 4 }
0x2860   :  { %1826 = vrot.lane.b32.xlu1 %v1820_v4, %s2252_s28  ;;  %v1939_v31 = vsel %vm955_vm8, %v1938_v57, %v1929_v16  ;;  %v1941_v11 = vrot.slane %v1820_v4, 7 }
0x28d0   :  { %v1823_v40 = vpop.permute.xlu0 %1822 }
0x28d2   :  { %v1827_v39 = vpop.permute.xlu1 %1826 }
0x28d3   :  { %v1829_v41 = vsel %vm247_vm1, %v1823_v40, %v1827_v39 }
0x28d4   :  { %v1830_v42 = vpack.c.bf16 %v1829_v41, %v1829_v41 }
0x28d6   :  { %2049 = vmatmul.mubr.msk.bf16.vlgmr.msra.gmra.mxu1 %vm154_vm2, %v1830_v42 }
0x2996   :  { %v1872_v43 = vpop.f32.mrf.mxu1 }
0x2997   :  { %v1873_v44 = vadd.f32 %v1872_v43, %v1831_v28 }
0x2998   :  { %v1874_v48 = vpop.f32.mrf.mxu1 }
0x2999   :  { %2216 = vtanh.f32 %v1873_v44  ;;  %v1875_v25 = vadd.f32 %v1874_v48, %v1832_v47 }
0x299a   :  { %v1876_v1 = vpop.f32.mrf.mxu1 }
0x299b   :  { %2218 = vtanh.f32 %v1875_v25 }
0x299c   :  { %v1877_v52 = vpop.f32.mrf.mxu1 }
0x29a6   :  { %v2217_v50 = vpop.eup %2216 }
0x29a7   :  { %1885 = vrot.lane.b32.xlu1 %v2217_v50, %s2252_s28  ;;  %v1881_v55 = vadd.f32 1.0, %v2217_v50 }
0x29a8   :  { %v2219_v53 = vpop.eup %2218 }
0x29a9   :  { %1904 = vrot.lane.b32.xlu0 %v2219_v53, %s2252_s28  ;;  %v1900_v56 = vadd.f32 1.0, %v2219_v53  ;;  %v1882_v49 = vmul.f32 0.5, %v1881_v55 }
0x29ab   :  { %v1901_v61 = vmul.f32 0.5, %v1900_v56  ;;  %v1883_v62 = vmul.f32 %v1882_v49, %v1795_v37 }
0x29ad   :  { %v1902_v51 = vmul.f32 %v1901_v61, %v1814_v0 }
0x2a19   :  { %v1886_v14 = vpop.permute.xlu1 %1885 }
0x2a1a   :  { %v1888_v57 = vmul.f32 %v1886_v14, %v1882_v49 }
0x2a1b   :  { %v1905_v23 = vpop.permute.xlu0 %1904 }
0x2a1c   :  { %v1907_v27 = vmul.f32 %v1905_v23, %v1901_v61  ;;  %1890 = vrot.lane.b32.xlu1 %v1888_v57, %s2253_s29 }
0x2a1e   :  { %1909 = vrot.lane.b32.xlu0 %v1907_v27, %s2253_s29 }
0x2a8e   :  { %v1891_v7 = vpop.permute.xlu1 %1890 }
0x2a8f   :  { %v1893_v8 = vadd.f32 %v1891_v7, %v1883_v62 }
0x2a90   :  { %v1910_v18 = vpop.permute.xlu0 %1909 }
0x2a91   :  { %2220 = vtanh.f32 %v1893_v8  ;;  %v1912_v2 = vadd.f32 %v1910_v18, %v1902_v51 }
0x2a93   :  { %2222 = vtanh.f32 %v1912_v2 }
0x2a9e   :  { %v2221_v20 = vpop.eup %2220 }
0x2a9f   :  { %1896 = vrot.lane.b32.xlu1 %v2221_v20, %s2252_s28 }
0x2aa0   :  { %v2223_v58 = vpop.eup %2222 }
0x2aa1   :  { %1915 = vrot.lane.b32.xlu0 %v2223_v58, %s2252_s28 }
0x2b11   :  { %v1897_v6 = vpop.permute.xlu1 %1896 }
0x2b12   :  { %v1899_v9 = vmul.f32 %v1897_v6, %v1882_v49 }
0x2b13   :  { %v1916_v10 = vpop.permute.xlu0 %1915 }
0x2b14   :  { %v1932_v12 = vrot.slane %v1899_v9, 1  ;;  %v1918_v24 = vmul.f32 %v1916_v10, %v1901_v61 }
0x2b16   :  { %v1955_v34 = vsel %vm945_vm3, %v1918_v24, %v1941_v11  ;;  %v1940_v35 = vsel %vm957_vm9, %v1939_v31, %v1932_v12 }
0x2b17   :  { %v1956_v3 = vsel %vm947_vm4, %v1955_v34, %v1943_v30  ;;  %1963 = vrot.lane.b32.xlu0 %v1940_v35, %s2253_s29 }
0x2b18   :  { %v1957_v36 = vsel %vm949_vm5, %v1956_v3, %v1945_v32 }
0x2b19   :  { %v1958_v15 = vsel %vm951_vm6, %v1957_v36, %v1947_v46 }
0x2b1a   :  { %v1959_v37 = vsel %vm953_vm7, %v1958_v15, %v1949_v21 }
0x2b1b   :  { %v1960_v22 = vsel %vm955_vm8, %v1959_v37, %v1951_v29 }
0x2b1c   :  { %v1961_v54 = vsel %vm957_vm9, %v1960_v22, %v1953_v33 }
0x2b1d   :  { %1967 = vrot.lane.b32.xlu1 %v1961_v54, %s2252_s28 }
0x2b89   :  { %v1964_v0 = vpop.permute.xlu0 %1963 }
0x2b8f   :  { %v1968_v63 = vpop.permute.xlu1 %1967 }
0x2b90   :  { %v1970_v5 = vsel %vm247_vm1, %v1964_v0, %v1968_v63 }
0x2b91   :  { %v1979_v38 = vmul.f32 %v1977_v60, %v1970_v5 }
0x2b93   :  { %v1980_v59 = vsel %vm154_vm2, %v1979_v38, 0.0 }
0x2b94   :  { %1981 = vadd.xlane.f32.xlu0 %v1980_v59 }
0x2c1d   :  { %v1982_v13 = vpop.xlane.xlu0 %1981 }
0x2c1e   :  { %v1983_v19 = vadd.f32 %v1982_v13, %v1977_v60 }
0x2c20   :  { %v1984_v45 = vmul.f32 0.5, %v1983_v19 }
0x2c22   :  { %2224 = vtanh.f32 %v1984_v45 }
0x2c2f   :  { %v2225_v16 = vpop.eup %2224 }
0x2c30   :  { %v1986_v4 = vadd.f32 1.0, %v2225_v16 }
0x2c32   :  { %v1987_v31 = vmul.f32 0.5, %v1986_v4 }
0x2c34   :  { %1989 = vrot.lane.b32.xlu1 %v1987_v31, %s2252_s28 }
0x2ca6   :  { %v1990_v40 = vpop.permute.xlu1 %1989 }
0x2ca7   :  { %1993 = vst.msk [vmem:[%s2848_s4] sm:$0xff] %vm1992_vm10, %v1990_v40 }
0x2ca8   :  { %1998 = vsyncpa [#allocation3], 1 }

</bundles_post_ra>
